<compile_context>
chip_gen: v7x
topology: tpu7x:2x2x1
jax: 0.10.0
libtpu: 0.0.40
codegen_flags: <defaults>
</compile_context>

<pallas_src>
import functools

import jax
import jax.numpy as jnp
from jax.experimental import pallas as pl
from jax.experimental.pallas import tpu as pltpu


# -----------------------------------------------------------------------------
# Kernel: one fused GraphConv layer (aggregate + project + bias + activation)
# -----------------------------------------------------------------------------
def _graphconv_layer_kernel(a_ref, fsrc_ref, fdst_ref, wrel_ref, wroot_ref,
                            b_ref, out_ref, acc_ref, *, act):
    """One GraphConv layer over a (row-tile, reduction-tile) grid.

    a_ref:     (TM, TK) bf16  adjacency tile, A[dst, src] = edge multiplicity
    fsrc_ref:  (TK, F)  bf16  source-node features for this reduction tile
    fdst_ref:  (TM, F)  bf16  destination-node features (root/self term)
    wrel_ref:  (F, G)   f32   lin_rel weight
    wroot_ref: (F, G)   f32   lin_root weight
    b_ref:     (1, G)   f32   lin_rel bias
    out_ref:   (TM, G)        layer output tile
    acc_ref:   (TM, F)  f32   VMEM scratch: running sum_j A[i, j] * x_j
    """
    k = pl.program_id(1)

    @pl.when(k == 0)
    def _():
        acc_ref[...] = jnp.zeros_like(acc_ref)

    # Neighbor aggregation: bf16 operands, f32 accumulation on the MXU.
    acc_ref[...] += jnp.dot(a_ref[...], fsrc_ref[...],
                            preferred_element_type=jnp.float32)

    @pl.when(k == pl.num_programs(1) - 1)
    def _():
        agg = acc_ref[...]                          # (TM, F) f32
        root = fdst_ref[...].astype(jnp.float32)    # (TM, F) f32
        # NOTE: kept as two small dots (K = F <= 32) rather than a single
        # concat([agg, root]) @ W_cat; the fold would save one MXU launch per
        # row tile, negligible next to the O(N^2) aggregation matmul above.
        z = (jnp.dot(agg, wrel_ref[...], preferred_element_type=jnp.float32)
             + jnp.dot(root, wroot_ref[...], preferred_element_type=jnp.float32)
             + b_ref[...])
        if act == "relu":
            out_ref[...] = jnp.maximum(z, 0.0).astype(out_ref.dtype)
        elif act == "log_softmax":
            m = jnp.max(z, axis=1, keepdims=True)
            s = z - m
            lse = jnp.log(jnp.sum(jnp.exp(s), axis=1, keepdims=True))
            out_ref[...] = (s - lse).astype(out_ref.dtype)
        else:
            out_ref[...] = z.astype(out_ref.dtype)


def _graphconv_layer(adj_b, feats_b, w_rel, w_root, bias, *, tm, tk, act,
                     out_dtype):
    """Tiled pallas_call for one GraphConv layer on a padded, dense graph."""
    n_pad = adj_b.shape[0]
    f = feats_b.shape[1]
    g = w_rel.shape[1]
    grid = (n_pad // tm, n_pad // tk)

    return pl.pallas_call(
        functools.partial(_graphconv_layer_kernel, act=act),
        out_shape=jax.ShapeDtypeStruct((n_pad, g), out_dtype),
        grid_spec=pltpu.PrefetchScalarGridSpec(
            num_scalar_prefetch=0,
            grid=grid,
            in_specs=[
                pl.BlockSpec((tm, tk), lambda i, k: (i, k)),   # A tile
                pl.BlockSpec((tk, f), lambda i, k: (k, 0)),    # src features
                pl.BlockSpec((tm, f), lambda i, k: (i, 0)),    # dst features
                pl.BlockSpec((f, g), lambda i, k: (0, 0)),     # W_rel (resident)
                pl.BlockSpec((f, g), lambda i, k: (0, 0)),     # W_root (resident)
                pl.BlockSpec((1, g), lambda i, k: (0, 0)),     # bias (resident)
            ],
            out_specs=pl.BlockSpec((tm, g), lambda i, k: (i, 0)),
            scratch_shapes=[pltpu.VMEM((tm, f), jnp.float32)],
        ),
        compiler_params=pltpu.CompilerParams(
            # Row tiles are independent -> megacore-shardable (v7x);
            # the src reduction axis (last) carries the accumulator.
            dimension_semantics=("parallel", "arbitrary")),
    )(adj_b, feats_b, feats_b, w_rel, w_root, bias)


# -----------------------------------------------------------------------------
# Wrapper / glue
# -----------------------------------------------------------------------------
def _round_up(v, m):
    return (v + m - 1) // m * m


def _pad_and_tile(n):
    """Padded node count and square adjacency tile size.

    Bigger tiles amortize the ~0.35us/grid-step overhead; a 512x512 bf16 tile
    is 512 KiB (1 MiB double-buffered), comfortably inside v7x's 64 MiB VMEM.
    """
    if n <= 128:
        tile = 128
    elif n <= 2048:
        tile = 256
    else:
        tile = 512
    return _round_up(n, tile), tile


@functools.partial(jax.jit, static_argnames=("num_nodes",))
def graphconv_net_forward(x, edge_index, params, *, num_nodes):
    """x: [N, F_in] f32; edge_index: [2, E] int32 (row 0 = src, row 1 = dst)."""
    n = num_nodes
    n_pad, tile = _pad_and_tile(n)
    f_in = x.shape[1]

    wrel1, brel1, wroot1, wrel2, brel2, wroot2 = params

    # Plain-JAX glue: densify edge list (messages flow src -> dst), pad to the
    # tile grid, and cast the O(N^2) adjacency + streamed features to bf16
    # (edge multiplicities are small integers, exact in bf16).
    src, dst = edge_index[0], edge_index[1]
    adj = jnp.zeros((n_pad, n_pad), jnp.float32).at[dst, src].add(1.0)
    adj_b = adj.astype(jnp.bfloat16)

    x_pad = jnp.zeros((n_pad, f_in), jnp.float32).at[:n].set(x)
    x_b = x_pad.astype(jnp.bfloat16)

    # Layer 1: GraphConv(F_in -> 16) + ReLU  (output kept bf16 for layer 2's
    # aggregation matmul).
    h_b = _graphconv_layer(adj_b, x_b, wrel1, wroot1, brel1.reshape(1, -1),
                           tm=tile, tk=tile, act="relu",
                           out_dtype=jnp.bfloat16)

    # Layer 2: GraphConv(16 -> C) + log_softmax.
    out = _graphconv_layer(adj_b, h_b, wrel2, wroot2, brel2.reshape(1, -1),
                           tm=tile, tk=tile, act="log_softmax",
                           out_dtype=jnp.float32)

    return out[:n]


# -----------------------------------------------------------------------------
# Parameter init (PyG GraphConv shapes) and reference
# -----------------------------------------------------------------------------
def _init_params(key, f_in, hidden, num_classes):
    """conv.lin_rel: Linear(in, out, bias=True); conv.lin_root: bias=False."""
    k = jax.random.split(key, 6)
    scale1 = 1.0 / jnp.sqrt(jnp.float32(f_in))
    scale2 = 1.0 / jnp.sqrt(jnp.float32(hidden))
    wrel1 = jax.random.uniform(k[0], (f_in, hidden), jnp.float32, -scale1, scale1)
    brel1 = jax.random.uniform(k[1], (hidden,), jnp.float32, -scale1, scale1)
    wroot1 = jax.random.uniform(k[2], (f_in, hidden), jnp.float32, -scale1, scale1)
    wrel2 = jax.random.uniform(k[3], (hidden, num_classes), jnp.float32, -scale2, scale2)
    brel2 = jax.random.uniform(k[4], (num_classes,), jnp.float32, -scale2, scale2)
    wroot2 = jax.random.uniform(k[5], (hidden, num_classes), jnp.float32, -scale2, scale2)
    return (wrel1, brel1, wroot1, wrel2, brel2, wroot2)


def _reference_forward(x, edge_index, params, num_nodes):
    """Pure-JAX reference mirroring the kernel's mixed precision
    (bf16 adjacency / streamed features, f32 accumulation and projections)."""
    wrel1, brel1, wroot1, wrel2, brel2, wroot2 = params
    n = num_nodes
    src, dst = edge_index[0], edge_index[1]
    adj_b = (jnp.zeros((n, n), jnp.float32).at[dst, src].add(1.0)
             .astype(jnp.bfloat16))
    hi = jax.lax.Precision.HIGHEST

    x_b = x.astype(jnp.bfloat16)
    agg1 = jnp.dot(adj_b, x_b, preferred_element_type=jnp.float32)
    h = jnp.maximum(
        jnp.dot(agg1, wrel1, precision=hi)
        + jnp.dot(x_b.astype(jnp.float32), wroot1, precision=hi)
        + brel1, 0.0)
    h_b = h.astype(jnp.bfloat16)

    agg2 = jnp.dot(adj_b, h_b, preferred_element_type=jnp.float32)
    z = (jnp.dot(agg2, wrel2, precision=hi)
         + jnp.dot(h_b.astype(jnp.float32), wroot2, precision=hi)
         + brel2)
    return jax.nn.log_softmax(z, axis=1)


if __name__ == "__main__":
    # Small synthetic graph consistent with the module's forward signature:
    #   conv1 = GraphConv(data.x.size(-1), 16); conv2 = GraphConv(16, C).
    # N = 300 pads to 512 -> a (2, 2) tile grid, exercising both the parallel
    # row axis and the reduction/accumulator axis.
    N = 300
    F_IN = 32
    HIDDEN = 16
    NUM_CLASSES = 8
    NUM_EDGES = 1200

    key = jax.random.PRNGKey(0)
    kx, ke, kp = jax.random.split(key, 3)

    x = jax.random.normal(kx, (N, F_IN), jnp.float32)
    edge_index = jax.random.randint(ke, (2, NUM_EDGES), 0, N, dtype=jnp.int32)
    params = _init_params(kp, F_IN, HIDDEN, NUM_CLASSES)

    out = graphconv_net_forward(x, edge_index, params, num_nodes=N)
    out = jax.block_until_ready(out)

    ref = _reference_forward(x, edge_index, params, N)
    assert out.shape == (N, NUM_CLASSES)
    assert bool(jnp.all(jnp.isfinite(out)))
    assert jnp.allclose(out, ref, atol=1e-3, rtol=1e-3), "mismatch vs JAX reference"

    print("KERNEL_OK")
</pallas_src>

<mosaic_0001>
module attributes {stable_mosaic.version = 11 : i64} {
  func.func private @main(%arg0: i32) attributes {dimension_semantics = [#tpu.dimension_semantics<core_parallel>], iteration_bounds = array<i64: 2>, tpu.core_type = #tpu.core_type<sc_scalar_subcore>, window_params = []} {
    return
  }
}

module attributes {stable_mosaic.version = 11 : i64} {
  func.func private @main(%arg0: i32) attributes {dimension_semantics = [#tpu.dimension_semantics<core_parallel>], iteration_bounds = array<i64: 2>, tpu.core_type = #tpu.core_type<sc_scalar_subcore>, window_params = []} {
    return
  }
}

module attributes {stable_mosaic.version = 11 : i64} {
  func.func @_graphconv_layer_kernel(%arg0: i32, %arg1: i32, %arg2: memref<256x256xbf16, #tpu.memory_space<vmem>>, %arg3: memref<256x16xbf16, #tpu.memory_space<vmem>>, %arg4: memref<256x16xbf16, #tpu.memory_space<vmem>>, %arg5: memref<16x8xf32, #tpu.memory_space<vmem>>, %arg6: memref<16x8xf32, #tpu.memory_space<vmem>>, %arg7: memref<1x8xf32, #tpu.memory_space<vmem>>, %arg8: memref<256x8xf32, #tpu.memory_space<vmem>>, %arg9: memref<256x16xf32, #tpu.memory_space<vmem>>) attributes {dimension_semantics = [#tpu.dimension_semantics<parallel>, #tpu.dimension_semantics<arbitrary>], iteration_bounds = array<i64: 2, 2>, scalar_prefetch = 0 : i64, scratch_operands = 1 : i64, tpu.core_type = #tpu.core_type<tc>, window_params = [{transform_indices = @transform_0, window_bounds = array<i64: 256, 256>}, {transform_indices = @transform_1, window_bounds = array<i64: 256, 16>}, {transform_indices = @transform_2, window_bounds = array<i64: 256, 16>}, {pipeline_mode = #tpu.pipeline_mode<synchronous>, transform_indices = @transform_3, window_bounds = array<i64: 16, 8>}, {pipeline_mode = #tpu.pipeline_mode<synchronous>, transform_indices = @transform_4, window_bounds = array<i64: 16, 8>}, {pipeline_mode = #tpu.pipeline_mode<synchronous>, transform_indices = @transform_5, window_bounds = array<i64: 1, 8>}, {transform_indices = @transform_6, window_bounds = array<i64: 256, 8>}]} {
    %c0_i32 = arith.constant 0 : i32
    %0 = arith.cmpi eq, %arg1, %c0_i32 : i32
    %1 = arith.extui %0 : i1 to i32
    %c0_i32_0 = arith.constant 0 : i32
    %2 = arith.cmpi ne, %1, %c0_i32_0 : i32
    scf.if %2 {
      %cst_9 = arith.constant 0.000000e+00 : f32
      %12 = vector.broadcast %cst_9 : f32 to vector<256x16xf32>
      %c0_10 = arith.constant 0 : index
      %c0_11 = arith.constant 0 : index
      %13 = vector.load %arg9[%c0_10, %c0_11] : memref<256x16xf32, #tpu.memory_space<vmem>>, vector<256x16xf32>
      tpu.vector_store %arg9[%c0_10, %c0_11], %12 {strides = array<i32>} : memref<256x16xf32, #tpu.memory_space<vmem>>, vector<256x16xf32>,
    } else {
    }
    %c0 = arith.constant 0 : index
    %c0_1 = arith.constant 0 : index
    %3 = vector.load %arg9[%c0, %c0_1] : memref<256x16xf32, #tpu.memory_space<vmem>>, vector<256x16xf32>
    %c0_2 = arith.constant 0 : index
    %c0_3 = arith.constant 0 : index
    %4 = vector.load %arg2[%c0_2, %c0_3] : memref<256x256xbf16, #tpu.memory_space<vmem>>, vector<256x256xbf16>
    %c0_4 = arith.constant 0 : index
    %c0_5 = arith.constant 0 : index
    %5 = vector.load %arg3[%c0_4, %c0_5] : memref<256x16xbf16, #tpu.memory_space<vmem>>, vector<256x16xbf16>
    %cst = arith.constant dense<0.000000e+00> : vector<256x16xf32>
    %6 = tpu.matmul %4, %5, %cst {dimension_numbers = #tpu.dot_dimension_numbers<[1], [0], [0], [1], [0, 0, 1, 1], [], []>} : vector<256x256xbf16>, vector<256x16xbf16>, vector<256x16xf32> -> vector<256x16xf32>
    %7 = arith.addf %3, %6 : vector<256x16xf32>
    %c0_6 = arith.constant 0 : index
    %c0_7 = arith.constant 0 : index
    %8 = vector.load %arg9[%c0_6, %c0_7] : memref<256x16xf32, #tpu.memory_space<vmem>>, vector<256x16xf32>
    tpu.vector_store %arg9[%c0_6, %c0_7], %7 {strides = array<i32>} : memref<256x16xf32, #tpu.memory_space<vmem>>, vector<256x16xf32>,
    %c1_i32 = arith.constant 1 : i32
    %9 = arith.cmpi eq, %arg1, %c1_i32 : i32
    %10 = arith.extui %9 : i1 to i32
    %c0_i32_8 = arith.constant 0 : i32
    %11 = arith.cmpi ne, %10, %c0_i32_8 : i32
    scf.if %11 {
      %c0_9 = arith.constant 0 : index
      %c0_10 = arith.constant 0 : index
      %12 = vector.load %arg9[%c0_9, %c0_10] : memref<256x16xf32, #tpu.memory_space<vmem>>, vector<256x16xf32>
      %c0_11 = arith.constant 0 : index
      %c0_12 = arith.constant 0 : index
      %13 = vector.load %arg4[%c0_11, %c0_12] : memref<256x16xbf16, #tpu.memory_space<vmem>>, vector<256x16xbf16>
      %14 = arith.extf %13 : vector<256x16xbf16> to vector<256x16xf32>
      %c0_13 = arith.constant 0 : index
      %c0_14 = arith.constant 0 : index
      %15 = vector.load %arg5[%c0_13, %c0_14] : memref<16x8xf32, #tpu.memory_space<vmem>>, vector<16x8xf32>
      %cst_15 = arith.constant dense<0.000000e+00> : vector<256x8xf32>
      %16 = tpu.matmul %12, %15, %cst_15 {dimension_numbers = #tpu.dot_dimension_numbers<[1], [0], [0], [1], [0, 0, 1, 1], [], []>} : vector<256x16xf32>, vector<16x8xf32>, vector<256x8xf32> -> vector<256x8xf32>
      %c0_16 = arith.constant 0 : index
      %c0_17 = arith.constant 0 : index
      %17 = vector.load %arg6[%c0_16, %c0_17] : memref<16x8xf32, #tpu.memory_space<vmem>>, vector<16x8xf32>
      %cst_18 = arith.constant dense<0.000000e+00> : vector<256x8xf32>
      %18 = tpu.matmul %14, %17, %cst_18 {dimension_numbers = #tpu.dot_dimension_numbers<[1], [0], [0], [1], [0, 0, 1, 1], [], []>} : vector<256x16xf32>, vector<16x8xf32>, vector<256x8xf32> -> vector<256x8xf32>
      %19 = arith.addf %16, %18 : vector<256x8xf32>
      %c0_19 = arith.constant 0 : index
      %c0_20 = arith.constant 0 : index
      %20 = vector.load %arg7[%c0_19, %c0_20] : memref<1x8xf32, #tpu.memory_space<vmem>>, vector<1x8xf32>
      %21 = vector.broadcast %20 : vector<1x8xf32> to vector<256x8xf32>
      %22 = arith.addf %19, %21 : vector<256x8xf32>
      %cst_21 = arith.constant dense<0xFF800000> : vector<256xf32>
      %23 = vector.multi_reduction <maximumf>, %22, %cst_21 [1] : vector<256x8xf32> to vector<256xf32>
      %24 = vector.shape_cast %23 : vector<256xf32> to vector<256x1xf32>
      %25 = vector.broadcast %24 : vector<256x1xf32> to vector<256x8xf32>
      %26 = arith.subf %22, %25 : vector<256x8xf32>
      %27 = math.exp %26 : vector<256x8xf32>
      %cst_22 = arith.constant dense<0.000000e+00> : vector<256xf32>
      %28 = vector.multi_reduction <add>, %27, %cst_22 [1] : vector<256x8xf32> to vector<256xf32>
      %29 = vector.shape_cast %28 : vector<256xf32> to vector<256x1xf32>
      %30 = math.log %29 : vector<256x1xf32>
      %31 = vector.broadcast %30 : vector<256x1xf32> to vector<256x8xf32>
      %32 = arith.subf %26, %31 : vector<256x8xf32>
      %c0_23 = arith.constant 0 : index
      %c0_24 = arith.constant 0 : index
      %33 = vector.load %arg8[%c0_23, %c0_24] : memref<256x8xf32, #tpu.memory_space<vmem>>, vector<256x8xf32>
      tpu.vector_store %arg8[%c0_23, %c0_24], %32 {strides = array<i32>} : memref<256x8xf32, #tpu.memory_space<vmem>>, vector<256x8xf32>,
    } else {
    }
    return
  }
  func.func @transform_0(%arg0: i32, %arg1: i32) -> (i32, i32) {
    %c0_i32 = arith.constant 0 : i32
    return %arg0, %arg1 : i32, i32
  }
  func.func @transform_1(%arg0: i32, %arg1: i32) -> (i32, i32) {
    %c0_i32 = arith.constant 0 : i32
    %c0_i32_0 = arith.constant 0 : i32
    return %arg1, %c0_i32 : i32, i32
  }
  func.func @transform_2(%arg0: i32, %arg1: i32) -> (i32, i32) {
    %c0_i32 = arith.constant 0 : i32
    %c0_i32_0 = arith.constant 0 : i32
    return %arg0, %c0_i32 : i32, i32
  }
  func.func @transform_3(%arg0: i32, %arg1: i32) -> (i32, i32) {
    %c0_i32 = arith.constant 0 : i32
    %c0_i32_0 = arith.constant 0 : i32
    %c0_i32_1 = arith.constant 0 : i32
    return %c0_i32, %c0_i32_0 : i32, i32
  }
  func.func @transform_4(%arg0: i32, %arg1: i32) -> (i32, i32) {
    %c0_i32 = arith.constant 0 : i32
    %c0_i32_0 = arith.constant 0 : i32
    %c0_i32_1 = arith.constant 0 : i32
    return %c0_i32, %c0_i32_0 : i32, i32
  }
  func.func @transform_5(%arg0: i32, %arg1: i32) -> (i32, i32) {
    %c0_i32 = arith.constant 0 : i32
    %c0_i32_0 = arith.constant 0 : i32
    %c0_i32_1 = arith.constant 0 : i32
    return %c0_i32, %c0_i32_0 : i32, i32
  }
  func.func @transform_6(%arg0: i32, %arg1: i32) -> (i32, i32) {
    %c0_i32 = arith.constant 0 : i32
    %c0_i32_0 = arith.constant 0 : i32
    return %arg0, %c0_i32 : i32, i32
  }
}

module attributes {stable_mosaic.version = 11 : i64} {
  func.func @_graphconv_layer_kernel(%arg0: i32, %arg1: i32, %arg2: memref<256x256xbf16, #tpu.memory_space<vmem>>, %arg3: memref<256x32xbf16, #tpu.memory_space<vmem>>, %arg4: memref<256x32xbf16, #tpu.memory_space<vmem>>, %arg5: memref<32x16xf32, #tpu.memory_space<vmem>>, %arg6: memref<32x16xf32, #tpu.memory_space<vmem>>, %arg7: memref<1x16xf32, #tpu.memory_space<vmem>>, %arg8: memref<256x16xbf16, #tpu.memory_space<vmem>>, %arg9: memref<256x32xf32, #tpu.memory_space<vmem>>) attributes {dimension_semantics = [#tpu.dimension_semantics<parallel>, #tpu.dimension_semantics<arbitrary>], iteration_bounds = array<i64: 2, 2>, scalar_prefetch = 0 : i64, scratch_operands = 1 : i64, tpu.core_type = #tpu.core_type<tc>, window_params = [{transform_indices = @transform_0, window_bounds = array<i64: 256, 256>}, {transform_indices = @transform_1, window_bounds = array<i64: 256, 32>}, {transform_indices = @transform_2, window_bounds = array<i64: 256, 32>}, {pipeline_mode = #tpu.pipeline_mode<synchronous>, transform_indices = @transform_3, window_bounds = array<i64: 32, 16>}, {pipeline_mode = #tpu.pipeline_mode<synchronous>, transform_indices = @transform_4, window_bounds = array<i64: 32, 16>}, {pipeline_mode = #tpu.pipeline_mode<synchronous>, transform_indices = @transform_5, window_bounds = array<i64: 1, 16>}, {transform_indices = @transform_6, window_bounds = array<i64: 256, 16>}]} {
    %c0_i32 = arith.constant 0 : i32
    %0 = arith.cmpi eq, %arg1, %c0_i32 : i32
    %1 = arith.extui %0 : i1 to i32
    %c0_i32_0 = arith.constant 0 : i32
    %2 = arith.cmpi ne, %1, %c0_i32_0 : i32
    scf.if %2 {
      %cst_9 = arith.constant 0.000000e+00 : f32
      %12 = vector.broadcast %cst_9 : f32 to vector<256x32xf32>
      %c0_10 = arith.constant 0 : index
      %c0_11 = arith.constant 0 : index
      %13 = vector.load %arg9[%c0_10, %c0_11] : memref<256x32xf32, #tpu.memory_space<vmem>>, vector<256x32xf32>
      tpu.vector_store %arg9[%c0_10, %c0_11], %12 {strides = array<i32>} : memref<256x32xf32, #tpu.memory_space<vmem>>, vector<256x32xf32>,
    } else {
    }
    %c0 = arith.constant 0 : index
    %c0_1 = arith.constant 0 : index
    %3 = vector.load %arg9[%c0, %c0_1] : memref<256x32xf32, #tpu.memory_space<vmem>>, vector<256x32xf32>
    %c0_2 = arith.constant 0 : index
    %c0_3 = arith.constant 0 : index
    %4 = vector.load %arg2[%c0_2, %c0_3] : memref<256x256xbf16, #tpu.memory_space<vmem>>, vector<256x256xbf16>
    %c0_4 = arith.constant 0 : index
    %c0_5 = arith.constant 0 : index
    %5 = vector.load %arg3[%c0_4, %c0_5] : memref<256x32xbf16, #tpu.memory_space<vmem>>, vector<256x32xbf16>
    %cst = arith.constant dense<0.000000e+00> : vector<256x32xf32>
    %6 = tpu.matmul %4, %5, %cst {dimension_numbers = #tpu.dot_dimension_numbers<[1], [0], [0], [1], [0, 0, 1, 1], [], []>} : vector<256x256xbf16>, vector<256x32xbf16>, vector<256x32xf32> -> vector<256x32xf32>
    %7 = arith.addf %3, %6 : vector<256x32xf32>
    %c0_6 = arith.constant 0 : index
    %c0_7 = arith.constant 0 : index
    %8 = vector.load %arg9[%c0_6, %c0_7] : memref<256x32xf32, #tpu.memory_space<vmem>>, vector<256x32xf32>
    tpu.vector_store %arg9[%c0_6, %c0_7], %7 {strides = array<i32>} : memref<256x32xf32, #tpu.memory_space<vmem>>, vector<256x32xf32>,
    %c1_i32 = arith.constant 1 : i32
    %9 = arith.cmpi eq, %arg1, %c1_i32 : i32
    %10 = arith.extui %9 : i1 to i32
    %c0_i32_8 = arith.constant 0 : i32
    %11 = arith.cmpi ne, %10, %c0_i32_8 : i32
    scf.if %11 {
      %c0_9 = arith.constant 0 : index
      %c0_10 = arith.constant 0 : index
      %12 = vector.load %arg9[%c0_9, %c0_10] : memref<256x32xf32, #tpu.memory_space<vmem>>, vector<256x32xf32>
      %c0_11 = arith.constant 0 : index
      %c0_12 = arith.constant 0 : index
      %13 = vector.load %arg4[%c0_11, %c0_12] : memref<256x32xbf16, #tpu.memory_space<vmem>>, vector<256x32xbf16>
      %14 = arith.extf %13 : vector<256x32xbf16> to vector<256x32xf32>
      %c0_13 = arith.constant 0 : index
      %c0_14 = arith.constant 0 : index
      %15 = vector.load %arg5[%c0_13, %c0_14] : memref<32x16xf32, #tpu.memory_space<vmem>>, vector<32x16xf32>
      %cst_15 = arith.constant dense<0.000000e+00> : vector<256x16xf32>
      %16 = tpu.matmul %12, %15, %cst_15 {dimension_numbers = #tpu.dot_dimension_numbers<[1], [0], [0], [1], [0, 0, 1, 1], [], []>} : vector<256x32xf32>, vector<32x16xf32>, vector<256x16xf32> -> vector<256x16xf32>
      %c0_16 = arith.constant 0 : index
      %c0_17 = arith.constant 0 : index
      %17 = vector.load %arg6[%c0_16, %c0_17] : memref<32x16xf32, #tpu.memory_space<vmem>>, vector<32x16xf32>
      %cst_18 = arith.constant dense<0.000000e+00> : vector<256x16xf32>
      %18 = tpu.matmul %14, %17, %cst_18 {dimension_numbers = #tpu.dot_dimension_numbers<[1], [0], [0], [1], [0, 0, 1, 1], [], []>} : vector<256x32xf32>, vector<32x16xf32>, vector<256x16xf32> -> vector<256x16xf32>
      %19 = arith.addf %16, %18 : vector<256x16xf32>
      %c0_19 = arith.constant 0 : index
      %c0_20 = arith.constant 0 : index
      %20 = vector.load %arg7[%c0_19, %c0_20] : memref<1x16xf32, #tpu.memory_space<vmem>>, vector<1x16xf32>
      %21 = vector.broadcast %20 : vector<1x16xf32> to vector<256x16xf32>
      %22 = arith.addf %19, %21 : vector<256x16xf32>
      %cst_21 = arith.constant 0.000000e+00 : f32
      %23 = vector.broadcast %cst_21 : f32 to vector<256x16xf32>
      %24 = arith.maximumf %22, %23 : vector<256x16xf32>
      %25 = arith.truncf %24 : vector<256x16xf32> to vector<256x16xbf16>
      %c0_22 = arith.constant 0 : index
      %c0_23 = arith.constant 0 : index
      %26 = vector.load %arg8[%c0_22, %c0_23] : memref<256x16xbf16, #tpu.memory_space<vmem>>, vector<256x16xbf16>
      tpu.vector_store %arg8[%c0_22, %c0_23], %25 {strides = array<i32>} : memref<256x16xbf16, #tpu.memory_space<vmem>>, vector<256x16xbf16>,
    } else {
    }
    return
  }
  func.func @transform_0(%arg0: i32, %arg1: i32) -> (i32, i32) {
    %c0_i32 = arith.constant 0 : i32
    return %arg0, %arg1 : i32, i32
  }
  func.func @transform_1(%arg0: i32, %arg1: i32) -> (i32, i32) {
    %c0_i32 = arith.constant 0 : i32
    %c0_i32_0 = arith.constant 0 : i32
    return %arg1, %c0_i32 : i32, i32
  }
  func.func @transform_2(%arg0: i32, %arg1: i32) -> (i32, i32) {
    %c0_i32 = arith.constant 0 : i32
    %c0_i32_0 = arith.constant 0 : i32
    return %arg0, %c0_i32 : i32, i32
  }
  func.func @transform_3(%arg0: i32, %arg1: i32) -> (i32, i32) {
    %c0_i32 = arith.constant 0 : i32
    %c0_i32_0 = arith.constant 0 : i32
    %c0_i32_1 = arith.constant 0 : i32
    return %c0_i32, %c0_i32_0 : i32, i32
  }
  func.func @transform_4(%arg0: i32, %arg1: i32) -> (i32, i32) {
    %c0_i32 = arith.constant 0 : i32
    %c0_i32_0 = arith.constant 0 : i32
    %c0_i32_1 = arith.constant 0 : i32
    return %c0_i32, %c0_i32_0 : i32, i32
  }
  func.func @transform_5(%arg0: i32, %arg1: i32) -> (i32, i32) {
    %c0_i32 = arith.constant 0 : i32
    %c0_i32_0 = arith.constant 0 : i32
    %c0_i32_1 = arith.constant 0 : i32
    return %c0_i32, %c0_i32_0 : i32, i32
  }
  func.func @transform_6(%arg0: i32, %arg1: i32) -> (i32, i32) {
    %c0_i32 = arith.constant 0 : i32
    %c0_i32_0 = arith.constant 0 : i32
    return %arg0, %c0_i32 : i32, i32
  }
}

</mosaic_0001>

<bundles_post_ra>
// kernel: graphconv_net_forward.3
= control target key start
LH: loop header
LB: loop body
LE: loop exit
PB: predicated region body
PF: predicated region fallthrough
CT: control target
= control target key end

     0   :  { %s3289_s21 = smov 0   ;;  %s3291_s22 = smov 0   ;;  %s4087_s0 = inlined_call_operand.vmem [shape: bf16[512,512], index: 0, kind: input, shape index: {}]   ;;  %s4088_s1 = inlined_call_operand.vmem [shape: bf16[512,16], index: 1, kind: input, shape index: {}, may-alias: {1,2}]   ;;  %s4089_s2 = inlined_call_operand.vmem [shape: bf16[512,16], index: 2, kind: input, shape index: {}, may-alias: {1,2}]   ;;  %s4090_s3 = inlined_call_operand.vmem [shape: f32[16,8], index: 3, kind: input, shape index: {}]   ;;  %s4091_s4 = inlined_call_operand.vmem [shape: f32[16,8], index: 4, kind: input, shape index: {}]   ;;  %s4092_s5 = inlined_call_operand.vmem [shape: f32[1,8], index: 5, kind: input, shape index: {}]   ;;  %s4093_s6 = inlined_call_operand.vmem [shape: f32[512,8], index: 6, kind: output, shape index: {}]  }
   0x1   :  { %s3293_s23 = smov 0   ;;  %s3295_s24 = smov 0  }
   0x2   :  { %s3297_s25 = smov 0   ;;  %s3299_s26 = smov 0  }
   0x3   :  { %s3301_s27 = smov 0  }
   0x4 LB: > { %s25_s28 = sadd.s32 1, %s3243_s25  ;;  %s28_s29 = sadd.s32 1, %s3247_s26  ;;  %s3251_s27 = sphi %s3301_s27, %s16_s27   ;;  %s3247_s26 = sphi %s3299_s26, %s4099_s26   ;;  %s3243_s25 = sphi %s3297_s25, %s4098_s25   ;;  %s3239_s24 = sphi %s3295_s24, %s4097_s24   ;;  %s3235_s23 = sphi %s3293_s23, %s4096_s23   ;;  %s3231_s22 = sphi %s3291_s22, %s4095_s22   ;;  %s3227_s21 = sphi %s3289_s21, %s4094_s21  }
   0x5   : > { %p26_p0 = scmp.ge.s32.totalorder %s25_s28, 2  ;;  %p44_p1 = scmp.ne.s32.totalorder %s3231_s22, %s3227_s21 }
   0x6   : > { %p45_p2 = scmp.eq.s32.totalorder %s3251_s27, 0  ;;  %s37_s9 = sadd.s32 1, %s3231_s22 }
   0x7   : > { %s4101_s28 = smov (%p26_p0, %s25_s28), 0  ;;  %s4103_s29 = smov (!%p26_p0, %s28_s29), %s3247_s26 }
   0x8   : > { %p46_p3 = por %p45_p2, %p44_p1  ;;  %p30_p4 = scmp.ge.s32.totalorder %s4103_s29, 2 }
   0x9   : > { %s33_s30 = ssub.s32 %s3243_s25, %s4101_s28  ;;  %p2397_p6 = scmp.ge.s32.totalorder %s3251_s27, 4 }
   0xa   : > { %s4105_s29 = smov (%p30_p4, %s4103_s29), 0 }
   0xb   : > { %s32_s7 = ssub.s32 %s3247_s26, %s4105_s29  ;;  %220 = sbr.rel (%p2397_p6) target bundleno = 41 (0x29), region = 28 }
   0xc   : > { %s34_s8 = sor.u32 %s33_s30, %s32_s7 }
   0xd   : > { %p35_p5 = scmp.eq.s32.totalorder %s34_s8, 0 }
   0xf   : > { %s3340_s10 = scalar_select %p35_p5, %s3231_s22, %s37_s9  }
  0x12   : > { %223 = sbr.rel (!%p46_p3) target bundleno = 41 (0x29), region = 32  ;;  %s225_s11 = sand.u32 (%p46_p3), 1, %s3231_s22  }
  0x13   : > { %s2400_s12 = sshll.u32 (%p46_p3), %s3243_s25, 1  ;;  %s2398_s13 = sshll.u32 (%p46_p3), %s225_s11, 8 }
  0x14   : > { %s2528_s14 = sshll.u32 (%p46_p3), %s3247_s26, 7  ;;  %s3354_s20 = scalar_lea.vmem (%p46_p3), [#allocation3], %s2398_s13 }
  0x15   : > { %s231_s15 = sadd.s32 (%p46_p3), %s2528_s14, %s2400_s12 }
  0x16   : > { %s2402_s16 = sshll.u32 (%p46_p3), %s231_s15, 2 }
  0x17   : > { %s3349_s19 = scalar_lea.vmem (%p46_p3), %s4087_s0, %s2402_s16 }
  0x18   : > { %v323_v0 = vld [vmem:[%s3349_s19] sm:$0xff] (%p46_p3)  ;;  %v325_v1 = vld [vmem:[%s3349_s19 + $0x10] sm:$0xff] (%p46_p3) }
  0x19   : > { %v327_v2 = vld [vmem:[%s3349_s19 + $0x20] sm:$0xff]  ;;  %324 = vst [vmem:[%s3354_s20] sm:$0xff] %v323_v0  ;;  %326 = vst [vmem:[%s3354_s20 + $0x8] sm:$0xff] %v325_v1  ;;  %v329_v3 = vld [vmem:[%s3349_s19 + $0x30] sm:$0xff] }
  0x1a   : > { %328 = vst [vmem:[%s3354_s20 + $0x10] sm:$0xff] %v327_v2  ;;  %v331_v4 = vld [vmem:[%s3349_s19 + $0x40] sm:$0xff]  ;;  %v333_v5 = vld [vmem:[%s3349_s19 + $0x50] sm:$0xff]  ;;  %330 = vst [vmem:[%s3354_s20 + $0x18] sm:$0xff] %v329_v3 }
  0x1b   : > { %332 = vst [vmem:[%s3354_s20 + $0x20] sm:$0xff] %v331_v4  ;;  %334 = vst [vmem:[%s3354_s20 + $0x28] sm:$0xff] %v333_v5  ;;  %v335_v6 = vld [vmem:[%s3349_s19 + $0x60] sm:$0xff]  ;;  %v337_v7 = vld [vmem:[%s3349_s19 + $0x70] sm:$0xff] }
  0x1c   : > { %v339_v8 = vld [vmem:[%s3349_s19 + $0x80] sm:$0xff]  ;;  %336 = vst [vmem:[%s3354_s20 + $0x30] sm:$0xff] %v335_v6  ;;  %338 = vst [vmem:[%s3354_s20 + $0x38] sm:$0xff] %v337_v7  ;;  %v341_v9 = vld [vmem:[%s3349_s19 + $0x90] sm:$0xff] }
  0x1d   : > { %340 = vst [vmem:[%s3354_s20 + $0x40] sm:$0xff] %v339_v8  ;;  %v343_v10 = vld [vmem:[%s3349_s19 + $0xa0] sm:$0xff]  ;;  %v345_v11 = vld [vmem:[%s3349_s19 + $0xb0] sm:$0xff]  ;;  %342 = vst [vmem:[%s3354_s20 + $0x48] sm:$0xff] %v341_v9 }
  0x1e   : > { %344 = vst [vmem:[%s3354_s20 + $0x50] sm:$0xff] %v343_v10  ;;  %346 = vst [vmem:[%s3354_s20 + $0x58] sm:$0xff] %v345_v11  ;;  %v347_v12 = vld [vmem:[%s3349_s19 + $0xc0] sm:$0xff]  ;;  %v349_v13 = vld [vmem:[%s3349_s19 + $0xd0] sm:$0xff] }
  0x1f   : > { %v351_v14 = vld [vmem:[%s3349_s19 + $0xe0] sm:$0xff]  ;;  %348 = vst [vmem:[%s3354_s20 + $0x60] sm:$0xff] %v347_v12  ;;  %350 = vst [vmem:[%s3354_s20 + $0x68] sm:$0xff] %v349_v13  ;;  %v353_v15 = vld [vmem:[%s3349_s19 + $0xf0] sm:$0xff] }
  0x20   : > { %352 = vst [vmem:[%s3354_s20 + $0x70] sm:$0xff] %v351_v14  ;;  %v355_v16 = vld [vmem:[%s3349_s19 + $0x100] sm:$0xff]  ;;  %v357_v17 = vld [vmem:[%s3349_s19 + $0x110] sm:$0xff]  ;;  %354 = vst [vmem:[%s3354_s20 + $0x78] sm:$0xff] %v353_v15 }
  0x21   : > { %356 = vst [vmem:[%s3354_s20 + $0x80] sm:$0xff] %v355_v16  ;;  %358 = vst [vmem:[%s3354_s20 + $0x88] sm:$0xff] %v357_v17  ;;  %v359_v18 = vld [vmem:[%s3349_s19 + $0x120] sm:$0xff]  ;;  %v361_v19 = vld [vmem:[%s3349_s19 + $0x130] sm:$0xff] }
  0x22   : > { %v363_v20 = vld [vmem:[%s3349_s19 + $0x140] sm:$0xff]  ;;  %360 = vst [vmem:[%s3354_s20 + $0x90] sm:$0xff] %v359_v18  ;;  %362 = vst [vmem:[%s3354_s20 + $0x98] sm:$0xff] %v361_v19  ;;  %v365_v21 = vld [vmem:[%s3349_s19 + $0x150] sm:$0xff] }
  0x23   : > { %364 = vst [vmem:[%s3354_s20 + $0xa0] sm:$0xff] %v363_v20  ;;  %v367_v22 = vld [vmem:[%s3349_s19 + $0x160] sm:$0xff]  ;;  %v369_v23 = vld [vmem:[%s3349_s19 + $0x170] sm:$0xff]  ;;  %366 = vst [vmem:[%s3354_s20 + $0xa8] sm:$0xff] %v365_v21 }
  0x24   : > { %368 = vst [vmem:[%s3354_s20 + $0xb0] sm:$0xff] %v367_v22  ;;  %370 = vst [vmem:[%s3354_s20 + $0xb8] sm:$0xff] %v369_v23  ;;  %v371_v24 = vld [vmem:[%s3349_s19 + $0x180] sm:$0xff]  ;;  %v373_v25 = vld [vmem:[%s3349_s19 + $0x190] sm:$0xff] }
  0x25   : > { %v375_v26 = vld [vmem:[%s3349_s19 + $0x1a0] sm:$0xff]  ;;  %372 = vst [vmem:[%s3354_s20 + $0xc0] sm:$0xff] %v371_v24  ;;  %374 = vst [vmem:[%s3354_s20 + $0xc8] sm:$0xff] %v373_v25  ;;  %v377_v27 = vld [vmem:[%s3349_s19 + $0x1b0] sm:$0xff] }
  0x26   : > { %376 = vst [vmem:[%s3354_s20 + $0xd0] sm:$0xff] %v375_v26  ;;  %v379_v28 = vld [vmem:[%s3349_s19 + $0x1c0] sm:$0xff]  ;;  %v381_v29 = vld [vmem:[%s3349_s19 + $0x1d0] sm:$0xff]  ;;  %378 = vst [vmem:[%s3354_s20 + $0xd8] sm:$0xff] %v377_v27 }
  0x27   : > { %380 = vst [vmem:[%s3354_s20 + $0xe0] sm:$0xff] %v379_v28  ;;  %382 = vst [vmem:[%s3354_s20 + $0xe8] sm:$0xff] %v381_v29  ;;  %v383_v30 = vld [vmem:[%s3349_s19 + $0x1e0] sm:$0xff]  ;;  %v385_v31 = vld [vmem:[%s3349_s19 + $0x1f0] sm:$0xff] }
  0x28   : > { %384 = vst [vmem:[%s3354_s20 + $0xf0] sm:$0xff] %v383_v30  ;;  %386 = vst [vmem:[%s3354_s20 + $0xf8] sm:$0xff] %v385_v31 }
  0x29 PF: > { %p2403_p7 = scmp.ge.s32.totalorder %s3251_s27, 1  ;;  %p409_p8 = scmp.lt.s32.totalorder %s3251_s27, 5 }
  0x2b   : > { %p410_p9 = pnand %p2403_p7, %p409_p8 }
  0x2c   : > { %s416_s30 = sand.u32 (!%p410_p9), 1, %s3227_s21   ;;  %s2405_s7 = sshll.u32 (!%p410_p9), %s3235_s23, 5 }
  0x2d   : > { %413 = sbr.rel (%p410_p9) target bundleno = 961 (0x3c1), region = 78  ;;  %s2404_s8 = sshll.u32 (!%p410_p9), %s416_s30, 8 }
  0x2e   : > { %p458_p10 = scmp.lt.s32.totalorder (!%p410_p9), %s2405_s7, 63  ;;  %s2407_s9 = sshll.u32 (!%p410_p9), %s3239_s24, 5 }
  0x2f   : > { %p464_p11 = scmp.lt.s32.totalorder (!%p410_p9), %s2407_s9, 63  ;;  %s3437_s30 = scalar_lea.vmem (!%p410_p9), [#allocation3], %s2404_s8 }
  0x30   : > { %p2411_p12 = scmp.ne.s32.totalorder (!%p410_p9), %s3235_s23, 0 }
  0x34   : > { %s4107_s7 = smov (!%p458_p10, %s2405_s7), 63  ;;  %s4109_s9 = smov (!%p464_p11, %s2407_s9), 63 }
  0x35   : > { %s2406_s11 = sshll.u32 %s4107_s7, 2  ;;  %s2408_s15 = sshll.u32 %s4109_s9, 2  ;;  %vm480_vm0 = vcmask (!%p2411_p12), 130048   ;;  %v3253_v32 = vmov (!%p2411_p12), 0.0  }
  0x36   : > { %s3425_s14 = scalar_lea.vmem %s4088_s1, %s2406_s11  ;;  %s2410_s16 = sshll.u32 %s4109_s9, 3  ;;  %481 = vst.msk [vmem:[#allocation2] sm:$0xff] (!%p2411_p12), %vm480_vm0, %v3253_v32  ;;  %482 = vst.msk [vmem:[#allocation2 + $0x8] sm:$0xff] (!%p2411_p12), %vm480_vm0, %v3253_v32 }
  0x37   : > { %s3430_s19 = scalar_lea.vmem %s4089_s2, %s2408_s15  ;;  %s3435_s24 = scalar_lea.vmem %s4093_s6, %s2410_s16  ;;  %483 = vst.msk [vmem:[#allocation2 + $0x10] sm:$0xff] (!%p2411_p12), %vm480_vm0, %v3253_v32  ;;  %484 = vst.msk [vmem:[#allocation2 + $0x18] sm:$0xff] (!%p2411_p12), %vm480_vm0, %v3253_v32 }
  0x38   : > { %479 = sbr.rel (%p2411_p12) target bundleno = 70 (0x46), region = 86  ;;  %485 = vst.msk [vmem:[#allocation2 + $0x20] sm:$0xff] (!%p2411_p12), %vm480_vm0, %v3253_v32  ;;  %486 = vst.msk [vmem:[#allocation2 + $0x28] sm:$0xff] (!%p2411_p12), %vm480_vm0, %v3253_v32 }
  0x39   : > { %487 = vst.msk [vmem:[#allocation2 + $0x30] sm:$0xff] (!%p2411_p12), %vm480_vm0, %v3253_v32  ;;  %488 = vst.msk [vmem:[#allocation2 + $0x38] sm:$0xff] (!%p2411_p12), %vm480_vm0, %v3253_v32 }
  0x3a   : > { %489 = vst.msk [vmem:[#allocation2 + $0x40] sm:$0xff] (!%p2411_p12), %vm480_vm0, %v3253_v32  ;;  %490 = vst.msk [vmem:[#allocation2 + $0x48] sm:$0xff] (!%p2411_p12), %vm480_vm0, %v3253_v32 }
  0x3b   : > { %491 = vst.msk [vmem:[#allocation2 + $0x50] sm:$0xff] (!%p2411_p12), %vm480_vm0, %v3253_v32  ;;  %492 = vst.msk [vmem:[#allocation2 + $0x58] sm:$0xff] (!%p2411_p12), %vm480_vm0, %v3253_v32 }
  0x3c   : > { %493 = vst.msk [vmem:[#allocation2 + $0x60] sm:$0xff] (!%p2411_p12), %vm480_vm0, %v3253_v32  ;;  %494 = vst.msk [vmem:[#allocation2 + $0x68] sm:$0xff] (!%p2411_p12), %vm480_vm0, %v3253_v32 }
  0x3d   : > { %495 = vst.msk [vmem:[#allocation2 + $0x70] sm:$0xff] (!%p2411_p12), %vm480_vm0, %v3253_v32  ;;  %496 = vst.msk [vmem:[#allocation2 + $0x78] sm:$0xff] (!%p2411_p12), %vm480_vm0, %v3253_v32 }
  0x3e   : > { %497 = vst.msk [vmem:[#allocation2 + $0x80] sm:$0xff] (!%p2411_p12), %vm480_vm0, %v3253_v32  ;;  %498 = vst.msk [vmem:[#allocation2 + $0x88] sm:$0xff] (!%p2411_p12), %vm480_vm0, %v3253_v32 }
  0x3f   : > { %499 = vst.msk [vmem:[#allocation2 + $0x90] sm:$0xff] %vm480_vm0, %v3253_v32  ;;  %500 = vst.msk [vmem:[#allocation2 + $0x98] sm:$0xff] %vm480_vm0, %v3253_v32 }
  0x40   : > { %501 = vst.msk [vmem:[#allocation2 + $0xa0] sm:$0xff] %vm480_vm0, %v3253_v32  ;;  %502 = vst.msk [vmem:[#allocation2 + $0xa8] sm:$0xff] %vm480_vm0, %v3253_v32 }
  0x41   : > { %503 = vst.msk [vmem:[#allocation2 + $0xb0] sm:$0xff] %vm480_vm0, %v3253_v32  ;;  %504 = vst.msk [vmem:[#allocation2 + $0xb8] sm:$0xff] %vm480_vm0, %v3253_v32 }
  0x42   : > { %505 = vst.msk [vmem:[#allocation2 + $0xc0] sm:$0xff] %vm480_vm0, %v3253_v32  ;;  %506 = vst.msk [vmem:[#allocation2 + $0xc8] sm:$0xff] %vm480_vm0, %v3253_v32 }
  0x43   : > { %507 = vst.msk [vmem:[#allocation2 + $0xd0] sm:$0xff] %vm480_vm0, %v3253_v32  ;;  %508 = vst.msk [vmem:[#allocation2 + $0xd8] sm:$0xff] %vm480_vm0, %v3253_v32 }
  0x44   : > { %509 = vst.msk [vmem:[#allocation2 + $0xe0] sm:$0xff] %vm480_vm0, %v3253_v32  ;;  %510 = vst.msk [vmem:[#allocation2 + $0xe8] sm:$0xff] %vm480_vm0, %v3253_v32 }
  0x45   : > { %511 = vst.msk [vmem:[#allocation2 + $0xf0] sm:$0xff] %vm480_vm0, %v3253_v32  ;;  %512 = vst.msk [vmem:[#allocation2 + $0xf8] sm:$0xff] %vm480_vm0, %v3253_v32 }
  0x46 PF: > { %v3005_v33 = vld [vmem:[%s3425_s14 + $0x40] sm:$0xff]   ;;  %v3007_v35 = vld [vmem:[%s3425_s14 + $0x48] sm:$0xff]   ;;  %v3009_v37 = vld [vmem:[%s3425_s14 + $0x50] sm:$0xff]   ;;  %vm1058_vm1 = vcmask 130048   ;;  %p2460_p13 = scmp.ne.s32.totalorder %s3235_s23, 1 }
  0x47   : > { %v3006_v34 = vld [vmem:[%s3425_s14] sm:$0xff]   ;;  %2608 = vmatprep.subr.bf16.mxu0 %v3005_v33  ;;  %2900 = vmatprep.subr.bf16.mxu1 %v3005_v33  ;;  %v3008_v36 = vld [vmem:[%s3425_s14 + $0x8] sm:$0xff]   ;;  %v3010_v38 = vld [vmem:[%s3425_s14 + $0x10] sm:$0xff]   ;;  %vm1876_vm2 = vcmask (!%p2460_p13), 64512  }
  0x48   : > { %2609 = vmatpush3.bf16.msra.mxu0 %v3006_v34  ;;  %2908 = vmatpush3.bf16.msra.mxu1 %v3006_v34  ;;  %v3011_v39 = vld [vmem:[%s3425_s14 + $0x58] sm:$0xff]   ;;  %v3013_v41 = vld [vmem:[%s3425_s14 + $0x60] sm:$0xff]   ;;  %v3015_v43 = vld [vmem:[%s3425_s14 + $0x68] sm:$0xff]  }
  0x49   : > { %2610 = vmatprep.subr.bf16.mxu0 %v3007_v35  ;;  %2901 = vmatprep.subr.bf16.mxu1 %v3007_v35  ;;  %v3012_v40 = vld [vmem:[%s3425_s14 + $0x18] sm:$0xff]   ;;  %v3014_v42 = vld [vmem:[%s3425_s14 + $0x20] sm:$0xff]   ;;  %v3016_v46 = vld [vmem:[%s3425_s14 + $0x28] sm:$0xff]  }
  0x4a   : > { %v3023_v44 = vld [vmem:[%s3437_s30 + $0x4] ss:$8 sps:$4 sm:$0xff]   ;;  %v3017_v47 = vld [vmem:[%s3425_s14 + $0x70] sm:$0xff]   ;;  %v3019_v49 = vld [vmem:[%s3425_s14 + $0x78] sm:$0xff]  }
  0x4b   : > { %v3026_v45 = vld [vmem:[%s3437_s30 + $0x84] ss:$8 sps:$4 sm:$0xff]   ;;  %897 = vmatprep.mubr.bf16.mxu0 %v3023_v44  ;;  %v3018_v48 = vld [vmem:[%s3425_s14 + $0x30] sm:$0xff]   ;;  %v3020_v50 = vld [vmem:[%s3425_s14 + $0x38] sm:$0xff]  }
  0x4c   : > { %2611 = vmatpush3.bf16.msra.mxu0 %v3008_v36  ;;  %2909 = vmatpush3.bf16.msra.mxu1 %v3008_v36  ;;  %v3021_v51 = vld [vmem:[%s3437_s30] ss:$8 sps:$4 sm:$0xff]   ;;  %v3027_v53 = vld [vmem:[%s3437_s30 + $0x14] ss:$8 sps:$4 sm:$0xff]   ;;  %v3031_v55 = vld [vmem:[%s3437_s30 + $0x10] ss:$8 sps:$4 sm:$0xff]  }
  0x4d   : > { %2612 = vmatprep.subr.bf16.mxu0 %v3009_v37  ;;  %2902 = vmatprep.subr.bf16.mxu1 %v3009_v37  ;;  %v3024_v52 = vld [vmem:[%s3437_s30 + $0x80] ss:$8 sps:$4 sm:$0xff]   ;;  %v3029_v54 = vld [vmem:[%s3437_s30 + $0x94] ss:$8 sps:$4 sm:$0xff]   ;;  %v3032_v56 = vld [vmem:[%s3437_s30 + $0x90] ss:$8 sps:$4 sm:$0xff]  }
  0x4e   : > { %961 = vmatprep.mubr.bf16.mxu1 %v3026_v45  ;;  %v3033_v57 = vld [vmem:[%s3437_s30 + $0x24] ss:$8 sps:$4 sm:$0xff]   ;;  %v3037_v59 = vld [vmem:[%s3437_s30 + $0x20] ss:$8 sps:$4 sm:$0xff]   ;;  %v3039_v61 = vld [vmem:[%s3437_s30 + $0x34] ss:$8 sps:$4 sm:$0xff]  }
  0x4f   : > { %v3035_v58 = vld [vmem:[%s3437_s30 + $0xa4] ss:$8 sps:$4 sm:$0xff]   ;;  %v3038_v60 = vld [vmem:[%s3437_s30 + $0xa0] ss:$8 sps:$4 sm:$0xff]   ;;  %v3041_v62 = vld [vmem:[%s3437_s30 + $0xb4] ss:$8 sps:$4 sm:$0xff]  }
  0x50   : > { %2613 = vmatpush3.bf16.msra.mxu0 %v3010_v38  ;;  %2910 = vmatpush3.bf16.msra.mxu1 %v3010_v38  ;;  %v3043_v63 = vld [vmem:[%s3437_s30 + $0x30] ss:$8 sps:$4 sm:$0xff]   ;;  %v3045_v1 = vld [vmem:[%s3437_s30 + $0x44] ss:$8 sps:$4 sm:$0xff]   ;;  %v3049_v3 = vld [vmem:[%s3437_s30 + $0x40] ss:$8 sps:$4 sm:$0xff]  }
  0x51   : > { %2614 = vmatprep.subr.bf16.mxu0 %v3011_v39  ;;  %2903 = vmatprep.subr.bf16.mxu1 %v3011_v39  ;;  %v3044_v0 = vld [vmem:[%s3437_s30 + $0xb0] ss:$8 sps:$4 sm:$0xff]   ;;  %v3047_v2 = vld [vmem:[%s3437_s30 + $0xc4] ss:$8 sps:$4 sm:$0xff]   ;;  %v3050_v4 = vld [vmem:[%s3437_s30 + $0xc0] ss:$8 sps:$4 sm:$0xff]  }
  0x52   : > { %v3051_v5 = vld [vmem:[%s3437_s30 + $0x54] ss:$8 sps:$4 sm:$0xff]   ;;  %v3055_v7 = vld [vmem:[%s3437_s30 + $0x50] ss:$8 sps:$4 sm:$0xff]   ;;  %v3057_v9 = vld [vmem:[%s3437_s30 + $0x64] ss:$8 sps:$4 sm:$0xff]  }
  0x53   : > { %v3053_v6 = vld [vmem:[%s3437_s30 + $0xd4] ss:$8 sps:$4 sm:$0xff]   ;;  %v3056_v8 = vld [vmem:[%s3437_s30 + $0xd0] ss:$8 sps:$4 sm:$0xff]   ;;  %v3059_v10 = vld [vmem:[%s3437_s30 + $0xe4] ss:$8 sps:$4 sm:$0xff]  }
  0x54   : > { %2615 = vmatpush3.bf16.msra.mxu0 %v3012_v40  ;;  %2911 = vmatpush3.bf16.msra.mxu1 %v3012_v40  ;;  %v3061_v11 = vld [vmem:[%s3437_s30 + $0x60] ss:$8 sps:$4 sm:$0xff]   ;;  %v3063_v13 = vld [vmem:[%s3437_s30 + $0x74] ss:$8 sps:$4 sm:$0xff]   ;;  %v3067_v15 = vld [vmem:[%s3437_s30 + $0x70] ss:$8 sps:$4 sm:$0xff]  }
  0x55   : > { %2616 = vmatprep.subr.bf16.mxu0 %v3013_v41  ;;  %2904 = vmatprep.subr.bf16.mxu1 %v3013_v41  ;;  %v3062_v12 = vld [vmem:[%s3437_s30 + $0xe0] ss:$8 sps:$4 sm:$0xff]   ;;  %v3065_v14 = vld [vmem:[%s3437_s30 + $0xf4] ss:$8 sps:$4 sm:$0xff]   ;;  %v3068_v16 = vld [vmem:[%s3437_s30 + $0xf0] ss:$8 sps:$4 sm:$0xff]  }
  0x56   : > { %v513_v19 = vld [vmem:[#allocation2] sm:$0xff]  ;;  %v514_v27 = vld [vmem:[#allocation2 + $0x8] sm:$0xff]  ;;  %v515_v39 = vld [vmem:[#allocation2 + $0x10] sm:$0xff] }
  0x57   : > { %v529_v21 = vld [vmem:[#allocation2 + $0x80] sm:$0xff]  ;;  %v530_v29 = vld [vmem:[#allocation2 + $0x88] sm:$0xff]  ;;  %v531_v41 = vld [vmem:[#allocation2 + $0x90] sm:$0xff] }
  0x58   : > { %2617 = vmatpush3.bf16.msra.mxu0 %v3014_v42  ;;  %2912 = vmatpush3.bf16.msra.mxu1 %v3014_v42 }
  0x59   : > { %2618 = vmatprep.subr.bf16.mxu0 %v3015_v43  ;;  %2905 = vmatprep.subr.bf16.mxu1 %v3015_v43 }
  0x5c   : > { %2619 = vmatpush3.bf16.msra.mxu0 %v3016_v46  ;;  %2913 = vmatpush3.bf16.msra.mxu1 %v3016_v46 }
  0x5d   : > { %2620 = vmatprep.subr.bf16.mxu0 %v3017_v47  ;;  %2906 = vmatprep.subr.bf16.mxu1 %v3017_v47  ;;  %v516_v47 = vld [vmem:[#allocation2 + $0x18] sm:$0xff] }
  0x60   : > { %2621 = vmatpush3.bf16.msra.mxu0 %v3018_v48  ;;  %2914 = vmatpush3.bf16.msra.mxu1 %v3018_v48 }
  0x61   : > { %2622 = vmatprep.subr.bf16.mxu0 %v3019_v49  ;;  %2907 = vmatprep.subr.bf16.mxu1 %v3019_v49  ;;  %v532_v49 = vld [vmem:[#allocation2 + $0x98] sm:$0xff] }
  0x64   : > { %2623 = vmatpush3.bf16.msra.mxu0 %v3020_v50  ;;  %2915 = vmatpush3.bf16.msra.mxu1 %v3020_v50 }
  0x67   : > { %898 = vmatmul.mubr.bf16.vlgmr.msra.gmra.mrb[0].mxu0 %v3021_v51  ;;  %962 = vmatmul.mubr.bf16.vlgmr.msra.gmra.mrb[0].mxu1 %v3024_v52 }
  0x68   : > { %905 = vmatprep.mubr.bf16.mxu0 %v3027_v53  ;;  %969 = vmatprep.mubr.bf16.mxu1 %v3029_v54 }
  0x6f   : > { %906 = vmatmul.mubr.bf16.gmra.mrb[4].mxu0 %v3031_v55  ;;  %970 = vmatmul.mubr.bf16.gmra.mrb[4].mxu1 %v3032_v56 }
  0x70   : > { %913 = vmatprep.mubr.bf16.mxu0 %v3033_v57  ;;  %977 = vmatprep.mubr.bf16.mxu1 %v3035_v58 }
  0x77   : > { %914 = vmatmul.mubr.bf16.gmra.mrb[8].mxu0 %v3037_v59  ;;  %978 = vmatmul.mubr.bf16.gmra.mrb[8].mxu1 %v3038_v60  ;;  %v517_v59 = vld [vmem:[#allocation2 + $0x20] sm:$0xff] }
  0x78   : > { %921 = vmatprep.mubr.bf16.mxu0 %v3039_v61  ;;  %985 = vmatprep.mubr.bf16.mxu1 %v3041_v62  ;;  %v533_v61 = vld [vmem:[#allocation2 + $0xa0] sm:$0xff] }
  0x7f   : > { %922 = vmatmul.mubr.bf16.gmra.mrb[12].mxu0 %v3043_v63  ;;  %986 = vmatmul.mubr.bf16.gmra.mrb[12].mxu1 %v3044_v0 }
  0x80   : > { %929 = vmatprep.mubr.bf16.mxu0 %v3045_v1  ;;  %993 = vmatprep.mubr.bf16.mxu1 %v3047_v2 }
  0x87   : > { %930 = vmatmul.mubr.bf16.gmra.mrb[16].mxu0 %v3049_v3  ;;  %994 = vmatmul.mubr.bf16.gmra.mrb[16].mxu1 %v3050_v4  ;;  %v518_v3 = vld [vmem:[#allocation2 + $0x28] sm:$0xff] }
  0x88   : > { %937 = vmatprep.mubr.bf16.mxu0 %v3051_v5  ;;  %1001 = vmatprep.mubr.bf16.mxu1 %v3053_v6  ;;  %v534_v5 = vld [vmem:[#allocation2 + $0xa8] sm:$0xff] }
  0x8f   : > { %938 = vmatmul.mubr.bf16.gmra.mrb[20].mxu0 %v3055_v7  ;;  %1002 = vmatmul.mubr.bf16.gmra.mrb[20].mxu1 %v3056_v8 }
  0x90   : > { %945 = vmatprep.mubr.bf16.mxu0 %v3057_v9  ;;  %1009 = vmatprep.mubr.bf16.mxu1 %v3059_v10 }
  0x97   : > { %946 = vmatmul.mubr.bf16.gmra.mrb[24].mxu0 %v3061_v11  ;;  %1010 = vmatmul.mubr.bf16.gmra.mrb[24].mxu1 %v3062_v12 }
  0x98   : > { %953 = vmatprep.mubr.bf16.mxu0 %v3063_v13  ;;  %1017 = vmatprep.mubr.bf16.mxu1 %v3065_v14 }
  0x9f   : > { %954 = vmatmul.mubr.bf16.gmra.mrb[28].mxu0 %v3067_v15  ;;  %1018 = vmatmul.mubr.bf16.gmra.mrb[28].mxu1 %v3068_v16  ;;  %v519_v15 = vld [vmem:[#allocation2 + $0x30] sm:$0xff] }
 0x13a   : > { %v2624_v17 = vpop.f32.mrb[0].mxu0  ;;  %v2672_v18 = vpop.f32.mrb[0].mxu1 }
 0x13b   : > { %v2625_v20 = vpop.f32.mrb[1].mxu0  ;;  %v2673_v22 = vpop.f32.mrb[1].mxu1 }
 0x13c   : > { %v2626_v23 = vadd.f32 %v2625_v20, %v2624_v17  ;;  %v2674_v24 = vadd.f32 %v2673_v22, %v2672_v18  ;;  %v2627_v25 = vpop.f32.mrb[2].mxu0  ;;  %v2675_v26 = vpop.f32.mrb[2].mxu1  ;;  %v535_v17 = vld [vmem:[#allocation2 + $0xb0] sm:$0xff] }
 0x13d   : > { %v2628_v28 = vpop.f32.mrb[3].mxu0  ;;  %v2676_v30 = vpop.f32.mrb[3].mxu1 }
 0x13e   : > { %v1026_v31 = vadd.f32 %v2626_v23, %v513_v19  ;;  %v1042_v32 = vadd.f32 %v2674_v24, %v529_v21  ;;  %v2629_v33 = vadd.f32 %v2628_v28, %v2627_v25  ;;  %v2677_v34 = vadd.f32 %v2676_v30, %v2675_v26  ;;  %v520_v23 = vld [vmem:[#allocation2 + $0x38] sm:$0xff] }
 0x13f   : > { %v536_v25 = vld [vmem:[#allocation2 + $0xb8] sm:$0xff] }
 0x140   : > { %1059 = vst.msk [vmem:[#allocation2] sm:$0xff] %vm1058_vm1, %v1026_v31  ;;  %1075 = vst.msk [vmem:[#allocation2 + $0x80] sm:$0xff] %vm1058_vm1, %v1042_v32  ;;  %v1027_v35 = vadd.f32 %v2629_v33, %v514_v27  ;;  %v1043_v36 = vadd.f32 %v2677_v34, %v530_v29 }
 0x142   : > { %1060 = vst.msk [vmem:[#allocation2 + $0x8] sm:$0xff] %vm1058_vm1, %v1027_v35  ;;  %1076 = vst.msk [vmem:[#allocation2 + $0x88] sm:$0xff] %vm1058_vm1, %v1043_v36  ;;  %v2630_v37 = vpop.f32.mrb[4].mxu0  ;;  %v2678_v38 = vpop.f32.mrb[4].mxu1  ;;  %v521_v35 = vld [vmem:[#allocation2 + $0x40] sm:$0xff] }
 0x143   : > { %v2631_v40 = vpop.f32.mrb[5].mxu0  ;;  %v2679_v42 = vpop.f32.mrb[5].mxu1 }
 0x144   : > { %v2632_v43 = vadd.f32 %v2631_v40, %v2630_v37  ;;  %v2680_v44 = vadd.f32 %v2679_v42, %v2678_v38  ;;  %v2633_v45 = vpop.f32.mrb[6].mxu0  ;;  %v2681_v46 = vpop.f32.mrb[6].mxu1  ;;  %v537_v37 = vld [vmem:[#allocation2 + $0xc0] sm:$0xff] }
 0x145   : > { %v2634_v48 = vpop.f32.mrb[7].mxu0  ;;  %v2682_v50 = vpop.f32.mrb[7].mxu1 }
 0x146   : > { %v1028_v51 = vadd.f32 %v2632_v43, %v515_v39  ;;  %v1044_v52 = vadd.f32 %v2680_v44, %v531_v41  ;;  %v2635_v53 = vadd.f32 %v2634_v48, %v2633_v45  ;;  %v2683_v54 = vadd.f32 %v2682_v50, %v2681_v46  ;;  %v522_v43 = vld [vmem:[#allocation2 + $0x48] sm:$0xff] }
 0x147   : > { %v538_v45 = vld [vmem:[#allocation2 + $0xc8] sm:$0xff] }
 0x148   : > { %1061 = vst.msk [vmem:[#allocation2 + $0x10] sm:$0xff] %vm1058_vm1, %v1028_v51  ;;  %1077 = vst.msk [vmem:[#allocation2 + $0x90] sm:$0xff] %vm1058_vm1, %v1044_v52  ;;  %v1029_v55 = vadd.f32 %v2635_v53, %v516_v47  ;;  %v1045_v56 = vadd.f32 %v2683_v54, %v532_v49 }
 0x14a   : > { %1062 = vst.msk [vmem:[#allocation2 + $0x18] sm:$0xff] %vm1058_vm1, %v1029_v55  ;;  %1078 = vst.msk [vmem:[#allocation2 + $0x98] sm:$0xff] %vm1058_vm1, %v1045_v56  ;;  %v2636_v57 = vpop.f32.mrb[8].mxu0  ;;  %v2684_v58 = vpop.f32.mrb[8].mxu1  ;;  %v523_v55 = vld [vmem:[#allocation2 + $0x50] sm:$0xff] }
 0x14b   : > { %v2637_v60 = vpop.f32.mrb[9].mxu0  ;;  %v2685_v62 = vpop.f32.mrb[9].mxu1 }
 0x14c   : > { %v2638_v63 = vadd.f32 %v2637_v60, %v2636_v57  ;;  %v2686_v0 = vadd.f32 %v2685_v62, %v2684_v58  ;;  %v2639_v1 = vpop.f32.mrb[10].mxu0  ;;  %v2687_v2 = vpop.f32.mrb[10].mxu1  ;;  %v539_v57 = vld [vmem:[#allocation2 + $0xd0] sm:$0xff] }
 0x14d   : > { %v2640_v4 = vpop.f32.mrb[11].mxu0  ;;  %v2688_v6 = vpop.f32.mrb[11].mxu1 }
 0x14e   : > { %v1030_v7 = vadd.f32 %v2638_v63, %v517_v59  ;;  %v1046_v8 = vadd.f32 %v2686_v0, %v533_v61  ;;  %v2641_v9 = vadd.f32 %v2640_v4, %v2639_v1  ;;  %v2689_v10 = vadd.f32 %v2688_v6, %v2687_v2  ;;  %v524_v63 = vld [vmem:[#allocation2 + $0x58] sm:$0xff] }
 0x14f   : > { %v540_v1 = vld [vmem:[#allocation2 + $0xd8] sm:$0xff] }
 0x150   : > { %1063 = vst.msk [vmem:[#allocation2 + $0x20] sm:$0xff] %vm1058_vm1, %v1030_v7  ;;  %1079 = vst.msk [vmem:[#allocation2 + $0xa0] sm:$0xff] %vm1058_vm1, %v1046_v8  ;;  %v1031_v11 = vadd.f32 %v2641_v9, %v518_v3  ;;  %v1047_v12 = vadd.f32 %v2689_v10, %v534_v5 }
 0x152   : > { %1064 = vst.msk [vmem:[#allocation2 + $0x28] sm:$0xff] %vm1058_vm1, %v1031_v11  ;;  %1080 = vst.msk [vmem:[#allocation2 + $0xa8] sm:$0xff] %vm1058_vm1, %v1047_v12  ;;  %v2642_v13 = vpop.f32.mrb[12].mxu0  ;;  %v2690_v14 = vpop.f32.mrb[12].mxu1  ;;  %v525_v11 = vld [vmem:[#allocation2 + $0x60] sm:$0xff] }
 0x153   : > { %v2643_v16 = vpop.f32.mrb[13].mxu0  ;;  %v2691_v18 = vpop.f32.mrb[13].mxu1 }
 0x154   : > { %v2644_v19 = vadd.f32 %v2643_v16, %v2642_v13  ;;  %v2692_v20 = vadd.f32 %v2691_v18, %v2690_v14  ;;  %v2645_v21 = vpop.f32.mrb[14].mxu0  ;;  %v2693_v22 = vpop.f32.mrb[14].mxu1  ;;  %v541_v13 = vld [vmem:[#allocation2 + $0xe0] sm:$0xff] }
 0x155   : > { %v2646_v24 = vpop.f32.mrb[15].mxu0  ;;  %v2694_v26 = vpop.f32.mrb[15].mxu1 }
 0x156   : > { %v1032_v27 = vadd.f32 %v2644_v19, %v519_v15  ;;  %v1048_v28 = vadd.f32 %v2692_v20, %v535_v17  ;;  %v2647_v29 = vadd.f32 %v2646_v24, %v2645_v21  ;;  %v2695_v30 = vadd.f32 %v2694_v26, %v2693_v22  ;;  %v526_v19 = vld [vmem:[#allocation2 + $0x68] sm:$0xff] }
 0x157   : > { %v542_v21 = vld [vmem:[#allocation2 + $0xe8] sm:$0xff] }
 0x158   : > { %1065 = vst.msk [vmem:[#allocation2 + $0x30] sm:$0xff] %vm1058_vm1, %v1032_v27  ;;  %1081 = vst.msk [vmem:[#allocation2 + $0xb0] sm:$0xff] %vm1058_vm1, %v1048_v28  ;;  %v1033_v31 = vadd.f32 %v2647_v29, %v520_v23  ;;  %v1049_v32 = vadd.f32 %v2695_v30, %v536_v25 }
 0x15a   : > { %1066 = vst.msk [vmem:[#allocation2 + $0x38] sm:$0xff] %vm1058_vm1, %v1033_v31  ;;  %1082 = vst.msk [vmem:[#allocation2 + $0xb8] sm:$0xff] %vm1058_vm1, %v1049_v32  ;;  %v2648_v33 = vpop.f32.mrb[16].mxu0  ;;  %v2696_v34 = vpop.f32.mrb[16].mxu1  ;;  %v527_v31 = vld [vmem:[#allocation2 + $0x70] sm:$0xff] }
 0x15b   : > { %v2649_v36 = vpop.f32.mrb[17].mxu0  ;;  %v2697_v38 = vpop.f32.mrb[17].mxu1 }
 0x15c   : > { %v2650_v39 = vadd.f32 %v2649_v36, %v2648_v33  ;;  %v2698_v40 = vadd.f32 %v2697_v38, %v2696_v34  ;;  %v2651_v41 = vpop.f32.mrb[18].mxu0  ;;  %v2699_v42 = vpop.f32.mrb[18].mxu1  ;;  %v543_v33 = vld [vmem:[#allocation2 + $0xf0] sm:$0xff] }
 0x15d   : > { %v2652_v44 = vpop.f32.mrb[19].mxu0  ;;  %v2700_v46 = vpop.f32.mrb[19].mxu1 }
 0x15e   : > { %v1034_v47 = vadd.f32 %v2650_v39, %v521_v35  ;;  %v1050_v48 = vadd.f32 %v2698_v40, %v537_v37  ;;  %v2653_v49 = vadd.f32 %v2652_v44, %v2651_v41  ;;  %v2701_v50 = vadd.f32 %v2700_v46, %v2699_v42  ;;  %v528_v39 = vld [vmem:[#allocation2 + $0x78] sm:$0xff] }
 0x15f   : > { %v544_v41 = vld [vmem:[#allocation2 + $0xf8] sm:$0xff] }
 0x160   : > { %1067 = vst.msk [vmem:[#allocation2 + $0x40] sm:$0xff] %vm1058_vm1, %v1034_v47  ;;  %1083 = vst.msk [vmem:[#allocation2 + $0xc0] sm:$0xff] %vm1058_vm1, %v1050_v48  ;;  %v1035_v51 = vadd.f32 %v2653_v49, %v522_v43  ;;  %v1051_v52 = vadd.f32 %v2701_v50, %v538_v45  ;;  %v1193_v49 = vld [vmem:[%s4091_s4] sm:$0xff] (!%p2460_p13)  ;;  %v1194_v50 = vld [vmem:[%s4091_s4 + $0x8] sm:$0xff] (!%p2460_p13) }
 0x162   : > { %1068 = vst.msk [vmem:[#allocation2 + $0x48] sm:$0xff] %vm1058_vm1, %v1035_v51  ;;  %1084 = vst.msk [vmem:[#allocation2 + $0xc8] sm:$0xff] %vm1058_vm1, %v1051_v52  ;;  %v2654_v53 = vpop.f32.mrb[20].mxu0  ;;  %v2702_v54 = vpop.f32.mrb[20].mxu1  ;;  %v1191_v51 = vld [vmem:[%s4090_s3] sm:$0xff] (!%p2460_p13)  ;;  %v2892_v52 = vpack.c.bf16 (!%p2460_p13), %v1194_v50, %v1193_v49  ;;  %v1117_v49 = vld [vmem:[#allocation2 + $0xb0] sm:$0xff] (!%p2460_p13) }
 0x163   : > { %v2655_v56 = vpop.f32.mrb[21].mxu0  ;;  %v2703_v58 = vpop.f32.mrb[21].mxu1 }
 0x164   : > { %v2656_v59 = vadd.f32 %v2655_v56, %v2654_v53  ;;  %v2704_v60 = vadd.f32 %v2703_v58, %v2702_v54  ;;  %v2657_v61 = vpop.f32.mrb[22].mxu0  ;;  %v2705_v62 = vpop.f32.mrb[22].mxu1  ;;  %v1192_v53 = vld [vmem:[%s4090_s3 + $0x8] sm:$0xff] (!%p2460_p13)  ;;  %v2530_v54 = vld [vmem:[%s3430_s19] sm:$0xff] (!%p2460_p13)   ;;  %2893 = vmatprep.subr.bf16.mxu1 (!%p2460_p13), %v2892_v52 }
 0x165   : > { %v2658_v0 = vpop.f32.mrb[23].mxu0  ;;  %v2706_v2 = vpop.f32.mrb[23].mxu1  ;;  %v2896_v56 = vpack.c.bf16 (!%p2460_p13), %v1192_v53, %v1191_v51  ;;  %v2593_v58 = vld [vmem:[%s3430_s19 + $0x8] sm:$0xff] (!%p2460_p13)   ;;  %2895 = vmatpush3.bf16.msra.mxu1 (!%p2460_p13), %v2892_v52  ;;  %v1118_v52 = vld [vmem:[#allocation2 + $0xb8] sm:$0xff] (!%p2460_p13) }
 0x166   : > { %v1036_v3 = vadd.f32 %v2656_v59, %v523_v55  ;;  %v1052_v4 = vadd.f32 %v2704_v60, %v539_v57  ;;  %v2659_v5 = vadd.f32 %v2658_v0, %v2657_v61  ;;  %v2707_v6 = vadd.f32 %v2706_v2, %v2705_v62  ;;  %v1095_v55 = vld [vmem:[#allocation2] sm:$0xff] (!%p2460_p13)  ;;  %v1096_v61 = vld [vmem:[#allocation2 + $0x8] sm:$0xff] (!%p2460_p13)  ;;  %v2594_v62 = vld [vmem:[%s3430_s19 + $0x10] sm:$0xff] (!%p2460_p13)  }
 0x167   : > { %v2531_v57 = vunpack.c.l.bf16 (!%p2460_p13), %v2530_v54  ;;  %2844 = vmatprep.mubr.msk.f32.mxu0 (!%p2460_p13), %vm1058_vm1, %v1095_v55  ;;  %v2532_v59 = vunpack.c.h.bf16 (!%p2460_p13), %v2530_v54  ;;  %2897 = vmatprep.subr.bf16.mxu0 (!%p2460_p13), %v2896_v56  ;;  %v2535_v60 = vunpack.c.l.bf16 (!%p2460_p13), %v2593_v58  ;;  %v2536_v0 = vunpack.c.h.bf16 (!%p2460_p13), %v2593_v58  ;;  %v1098_v2 = vld [vmem:[#allocation2 + $0x18] sm:$0xff] (!%p2460_p13)  ;;  %v2605_v53 = vld [vmem:[%s3430_s19 + $0x68] sm:$0xff] (!%p2460_p13)   ;;  %v1119_v54 = vld [vmem:[#allocation2 + $0xc0] sm:$0xff] (!%p2460_p13) }
 0x168   : > { %1069 = vst.msk [vmem:[#allocation2 + $0x50] sm:$0xff] %vm1058_vm1, %v1036_v3  ;;  %1085 = vst.msk [vmem:[#allocation2 + $0xd0] sm:$0xff] %vm1058_vm1, %v1052_v4  ;;  %v1037_v7 = vadd.f32 %v2659_v5, %v524_v63  ;;  %v1053_v8 = vadd.f32 %v2707_v6, %v540_v1  ;;  %2899 = vmatpush3.bf16.msra.mxu0 (!%p2460_p13), %v2896_v56  ;;  %v1097_v63 = vld [vmem:[#allocation2 + $0x10] sm:$0xff] (!%p2460_p13)  ;;  %v2539_v1 = vunpack.c.l.bf16 (!%p2460_p13), %v2594_v62  ;;  %v2595_v3 = vld [vmem:[%s3430_s19 + $0x18] sm:$0xff] (!%p2460_p13)   ;;  %v2540_v5 = vunpack.c.h.bf16 (!%p2460_p13), %v2594_v62 }
 0x169   : > { %2792 = vmatprep.mubr.msk.f32.mxu1 (!%p2460_p13), %vm1058_vm1, %v2531_v57  ;;  %v1099_v4 = vld [vmem:[#allocation2 + $0x20] sm:$0xff] (!%p2460_p13)  ;;  %v2543_v6 = vunpack.c.l.bf16 (!%p2460_p13), %v2595_v3  ;;  %v2583_v56 = vunpack.c.l.bf16 (!%p2460_p13), %v2605_v53  ;;  %v1120_v57 = vld [vmem:[#allocation2 + $0xc8] sm:$0xff] (!%p2460_p13)  ;;  %v2606_v58 = vld [vmem:[%s3430_s19 + $0x70] sm:$0xff] (!%p2460_p13)  }
 0x16a   : > { %1070 = vst.msk [vmem:[#allocation2 + $0x58] sm:$0xff] %vm1058_vm1, %v1037_v7  ;;  %1086 = vst.msk [vmem:[#allocation2 + $0xd8] sm:$0xff] %vm1058_vm1, %v1053_v8  ;;  %v2660_v9 = vpop.f32.mrb[24].mxu0  ;;  %v2708_v10 = vpop.f32.mrb[24].mxu1  ;;  %2793 = vmatmul.mubr.msk.f32.vlgmr.msra.gmra.mrb[0].mxu1 (!%p2460_p13), %vm1058_vm1, %v2532_v59  ;;  %v1100_v7 = vld [vmem:[#allocation2 + $0x28] sm:$0xff] (!%p2460_p13)  ;;  %v2596_v8 = vld [vmem:[%s3430_s19 + $0x20] sm:$0xff] (!%p2460_p13)  }
 0x16b   : > { %v2661_v12 = vpop.f32.mrb[25].mxu0  ;;  %v2709_v14 = vpop.f32.mrb[25].mxu1  ;;  %2845 = vmatmul.mubr.msk.f32.vlgmr.msra.gmra.mrb[0].mxu0 (!%p2460_p13), %vm1058_vm1, %v1096_v61  ;;  %2795 = vmatprep.mubr.msk.f32.mxu1 (!%p2460_p13), %vm1058_vm1, %v2535_v60  ;;  %v2584_v60 = vunpack.c.h.bf16 (!%p2460_p13), %v2605_v53  ;;  %v2587_v61 = vunpack.c.l.bf16 (!%p2460_p13), %v2606_v58 }
 0x16c   : > { %v2662_v15 = vadd.f32 %v2661_v12, %v2660_v9  ;;  %v2710_v16 = vadd.f32 %v2709_v14, %v2708_v10  ;;  %v2663_v17 = vpop.f32.mrb[26].mxu0  ;;  %v2711_v18 = vpop.f32.mrb[26].mxu1  ;;  %2847 = vmatprep.mubr.msk.f32.mxu0 (!%p2460_p13), %vm1058_vm1, %v1097_v63  ;;  %v1101_v9 = vld [vmem:[#allocation2 + $0x30] sm:$0xff] (!%p2460_p13)  ;;  %v2544_v10 = vunpack.c.h.bf16 (!%p2460_p13), %v2595_v3  ;;  %v1102_v12 = vld [vmem:[#allocation2 + $0x38] sm:$0xff] (!%p2460_p13)  ;;  %v1103_v14 = vld [vmem:[#allocation2 + $0x40] sm:$0xff] (!%p2460_p13) }
 0x16d   : > { %v2664_v20 = vpop.f32.mrb[27].mxu0  ;;  %v2712_v22 = vpop.f32.mrb[27].mxu1  ;;  %v2607_v63 = vld [vmem:[%s3430_s19 + $0x78] sm:$0xff] (!%p2460_p13)  }
 0x16e   : > { %v1038_v23 = vadd.f32 %v2662_v15, %v525_v11  ;;  %v1054_v24 = vadd.f32 %v2710_v16, %v541_v13  ;;  %v2665_v25 = vadd.f32 %v2664_v20, %v2663_v17  ;;  %v2713_v26 = vadd.f32 %v2712_v22, %v2711_v18  ;;  %2796 = vmatmul.mubr.msk.f32.gmra.mrb[2].mxu1 (!%p2460_p13), %vm1058_vm1, %v2536_v0  ;;  %v2597_v13 = vld [vmem:[%s3430_s19 + $0x28] sm:$0xff] (!%p2460_p13)   ;;  %v2598_v18 = vld [vmem:[%s3430_s19 + $0x30] sm:$0xff] (!%p2460_p13)  }
 0x16f   : > { %2848 = vmatmul.mubr.msk.f32.gmra.mrb[2].mxu0 (!%p2460_p13), %vm1058_vm1, %v1098_v2  ;;  %2798 = vmatprep.mubr.msk.f32.mxu1 (!%p2460_p13), %vm1058_vm1, %v2539_v1  ;;  %v2547_v11 = vunpack.c.l.bf16 (!%p2460_p13), %v2596_v8  ;;  %v2548_v15 = vunpack.c.h.bf16 (!%p2460_p13), %v2596_v8  ;;  %v2551_v16 = vunpack.c.l.bf16 (!%p2460_p13), %v2597_v13  ;;  %v1104_v17 = vld [vmem:[#allocation2 + $0x48] sm:$0xff] (!%p2460_p13)  ;;  %v2552_v20 = vunpack.c.h.bf16 (!%p2460_p13), %v2597_v13  ;;  %v1121_v59 = vld [vmem:[#allocation2 + $0xd0] sm:$0xff] (!%p2460_p13) }
 0x170   : > { %1071 = vst.msk [vmem:[#allocation2 + $0x60] sm:$0xff] %vm1058_vm1, %v1038_v23  ;;  %1087 = vst.msk [vmem:[#allocation2 + $0xe0] sm:$0xff] %vm1058_vm1, %v1054_v24  ;;  %v1039_v27 = vadd.f32 %v2665_v25, %v526_v19  ;;  %v1055_v28 = vadd.f32 %v2713_v26, %v542_v21  ;;  %2850 = vmatprep.mubr.msk.f32.mxu0 (!%p2460_p13), %vm1058_vm1, %v1099_v4  ;;  %v1105_v19 = vld [vmem:[#allocation2 + $0x50] sm:$0xff] (!%p2460_p13)  ;;  %v2555_v21 = vunpack.c.l.bf16 (!%p2460_p13), %v2598_v18  ;;  %v2599_v23 = vld [vmem:[%s3430_s19 + $0x38] sm:$0xff] (!%p2460_p13)   ;;  %v2556_v25 = vunpack.c.h.bf16 (!%p2460_p13), %v2598_v18 }
 0x171   : > { %v1106_v22 = vld [vmem:[#allocation2 + $0x58] sm:$0xff] (!%p2460_p13)  ;;  %v2559_v26 = vunpack.c.l.bf16 (!%p2460_p13), %v2599_v23  ;;  %v2588_v1 = vunpack.c.h.bf16 (!%p2460_p13), %v2606_v58  ;;  %v2591_v2 = vunpack.c.l.bf16 (!%p2460_p13), %v2607_v63 }
 0x172   : > { %1072 = vst.msk [vmem:[#allocation2 + $0x68] sm:$0xff] %vm1058_vm1, %v1039_v27  ;;  %1088 = vst.msk [vmem:[#allocation2 + $0xe8] sm:$0xff] %vm1058_vm1, %v1055_v28  ;;  %v2666_v29 = vpop.f32.mrb[28].mxu0  ;;  %v2714_v30 = vpop.f32.mrb[28].mxu1  ;;  %2799 = vmatmul.mubr.msk.f32.gmra.mrb[4].mxu1 (!%p2460_p13), %vm1058_vm1, %v2540_v5  ;;  %v2600_v28 = vld [vmem:[%s3430_s19 + $0x40] sm:$0xff] (!%p2460_p13)   ;;  %v1122_v62 = vld [vmem:[#allocation2 + $0xd8] sm:$0xff] (!%p2460_p13)  ;;  %v2592_v5 = vunpack.c.h.bf16 (!%p2460_p13), %v2607_v63 }
 0x173   : > { %v2667_v32 = vpop.f32.mrb[29].mxu0  ;;  %v2715_v34 = vpop.f32.mrb[29].mxu1  ;;  %2851 = vmatmul.mubr.msk.f32.gmra.mrb[4].mxu0 (!%p2460_p13), %vm1058_vm1, %v1100_v7  ;;  %2801 = vmatprep.mubr.msk.f32.mxu1 (!%p2460_p13), %vm1058_vm1, %v2543_v6 }
 0x174   : > { %v2668_v35 = vadd.f32 %v2667_v32, %v2666_v29  ;;  %v2716_v36 = vadd.f32 %v2715_v34, %v2714_v30  ;;  %v2669_v37 = vpop.f32.mrb[30].mxu0  ;;  %v2717_v38 = vpop.f32.mrb[30].mxu1  ;;  %1094 = sbr.rel (%p2460_p13) target bundleno = 961 (0x3c1), region = 90  ;;  %2853 = vmatprep.mubr.msk.f32.mxu0 (!%p2460_p13), %vm1058_vm1, %v1101_v9  ;;  %v2560_v30 = vunpack.c.h.bf16 (!%p2460_p13), %v2599_v23  ;;  %v1111_v34 = vld [vmem:[#allocation2 + $0x80] sm:$0xff] (!%p2460_p13) }
 0x175   : > { %v2670_v40 = vpop.f32.mrb[31].mxu0  ;;  %v2718_v42 = vpop.f32.mrb[31].mxu1 }
 0x176   : > { %v1040_v43 = vadd.f32 %v2668_v35, %v527_v31  ;;  %v1056_v44 = vadd.f32 %v2716_v36, %v543_v33  ;;  %v2671_v45 = vadd.f32 %v2670_v40, %v2669_v37  ;;  %v2719_v46 = vadd.f32 %v2718_v42, %v2717_v38  ;;  %2802 = vmatmul.mubr.msk.f32.gmra.mrb[6].mxu1 (!%p2460_p13), %vm1058_vm1, %v2544_v10  ;;  %v2601_v33 = vld [vmem:[%s3430_s19 + $0x48] sm:$0xff] (!%p2460_p13)   ;;  %v2602_v38 = vld [vmem:[%s3430_s19 + $0x50] sm:$0xff] (!%p2460_p13)   ;;  %v1114_v42 = vld [vmem:[#allocation2 + $0x98] sm:$0xff] (!%p2460_p13) }
 0x177   : > { %2854 = vmatmul.mubr.msk.f32.gmra.mrb[6].mxu0 (!%p2460_p13), %vm1058_vm1, %v1102_v12  ;;  %2804 = vmatprep.mubr.msk.f32.mxu1 (!%p2460_p13), %vm1058_vm1, %v2547_v11  ;;  %v1107_v24 = vld [vmem:[#allocation2 + $0x60] sm:$0xff] (!%p2460_p13)  ;;  %v2563_v31 = vunpack.c.l.bf16 (!%p2460_p13), %v2600_v28  ;;  %v2564_v35 = vunpack.c.h.bf16 (!%p2460_p13), %v2600_v28  ;;  %v2567_v36 = vunpack.c.l.bf16 (!%p2460_p13), %v2601_v33  ;;  %v1112_v37 = vld [vmem:[#allocation2 + $0x88] sm:$0xff] (!%p2460_p13)  ;;  %v2568_v40 = vunpack.c.h.bf16 (!%p2460_p13), %v2601_v33 }
 0x178   : > { %1073 = vst.msk [vmem:[#allocation2 + $0x70] sm:$0xff] %vm1058_vm1, %v1040_v43  ;;  %1089 = vst.msk [vmem:[#allocation2 + $0xf0] sm:$0xff] %vm1058_vm1, %v1056_v44  ;;  %v1041_v47 = vadd.f32 %v2671_v45, %v528_v39  ;;  %v1057_v48 = vadd.f32 %v2719_v46, %v544_v41  ;;  %2856 = vmatprep.mubr.msk.f32.mxu0 (!%p2460_p13), %vm1058_vm1, %v1103_v14  ;;  %v1113_v39 = vld [vmem:[#allocation2 + $0x90] sm:$0xff] (!%p2460_p13)  ;;  %v2571_v41 = vunpack.c.l.bf16 (!%p2460_p13), %v2602_v38  ;;  %v2603_v43 = vld [vmem:[%s3430_s19 + $0x58] sm:$0xff] (!%p2460_p13)   ;;  %v2572_v45 = vunpack.c.h.bf16 (!%p2460_p13), %v2602_v38 }
 0x179   : > { %v1108_v27 = vld [vmem:[#allocation2 + $0x68] sm:$0xff] (!%p2460_p13)  ;;  %v1115_v44 = vld [vmem:[#allocation2 + $0xa0] sm:$0xff] (!%p2460_p13)  ;;  %v2575_v46 = vunpack.c.l.bf16 (!%p2460_p13), %v2603_v43  ;;  %v2576_v50 = vunpack.c.h.bf16 (!%p2460_p13), %v2603_v43 }
 0x17a   : > { %1074 = vst.msk [vmem:[#allocation2 + $0x78] sm:$0xff] %vm1058_vm1, %v1041_v47  ;;  %1090 = vst.msk [vmem:[#allocation2 + $0xf8] sm:$0xff] %vm1058_vm1, %v1057_v48  ;;  %2805 = vmatmul.mubr.msk.f32.gmra.mrb[8].mxu1 (!%p2460_p13), %vm1058_vm1, %v2548_v15  ;;  %v1116_v47 = vld [vmem:[#allocation2 + $0xa8] sm:$0xff] (!%p2460_p13)  ;;  %v2604_v48 = vld [vmem:[%s3430_s19 + $0x60] sm:$0xff] (!%p2460_p13)  }
 0x17b   : > { %2857 = vmatmul.mubr.msk.f32.gmra.mrb[8].mxu0 %vm1058_vm1, %v1104_v17  ;;  %2807 = vmatprep.mubr.msk.f32.mxu1 %vm1058_vm1, %v2551_v16  ;;  %v2579_v51 = vunpack.c.l.bf16 %v2604_v48  ;;  %v2580_v55 = vunpack.c.h.bf16 %v2604_v48  ;;  %v1123_v0 = vld [vmem:[#allocation2 + $0xe0] sm:$0xff]  ;;  %v1124_v3 = vld [vmem:[#allocation2 + $0xe8] sm:$0xff] }
 0x17c   : > { %2859 = vmatprep.mubr.msk.f32.mxu0 %vm1058_vm1, %v1105_v19  ;;  %v3648_v10 = vld [vmem:[%s4092_s5] ss:$0 sm:$0xff] }
 0x17e   : > { %2808 = vmatmul.mubr.msk.f32.gmra.mrb[10].mxu1 %vm1058_vm1, %v2552_v20 }
 0x17f   : > { %2860 = vmatmul.mubr.msk.f32.gmra.mrb[10].mxu0 %vm1058_vm1, %v1106_v22  ;;  %2810 = vmatprep.mubr.msk.f32.mxu1 %vm1058_vm1, %v2555_v21  ;;  %v1109_v29 = vld [vmem:[#allocation2 + $0x70] sm:$0xff] }
 0x180   : > { %2862 = vmatprep.mubr.msk.f32.mxu0 %vm1058_vm1, %v1107_v24  ;;  %v1125_v4 = vld [vmem:[#allocation2 + $0xf0] sm:$0xff] }
 0x181   : > { %v1110_v32 = vld [vmem:[#allocation2 + $0x78] sm:$0xff] }
 0x182   : > { %2811 = vmatmul.mubr.msk.f32.gmra.mrb[12].mxu1 %vm1058_vm1, %v2556_v25  ;;  %v1126_v6 = vld [vmem:[#allocation2 + $0xf8] sm:$0xff] }
 0x183   : > { %2863 = vmatmul.mubr.msk.f32.gmra.mrb[12].mxu0 %vm1058_vm1, %v1108_v27  ;;  %2813 = vmatprep.mubr.msk.f32.mxu1 %vm1058_vm1, %v2559_v26 }
 0x184   : > { %2865 = vmatprep.mubr.msk.f32.mxu0 %vm1058_vm1, %v1109_v29 }
 0x186   : > { %2814 = vmatmul.mubr.msk.f32.gmra.mrb[14].mxu1 %vm1058_vm1, %v2560_v30 }
 0x187   : > { %2866 = vmatmul.mubr.msk.f32.gmra.mrb[14].mxu0 %vm1058_vm1, %v1110_v32  ;;  %2816 = vmatprep.mubr.msk.f32.mxu1 %vm1058_vm1, %v2563_v31 }
 0x188   : > { %2868 = vmatprep.mubr.msk.f32.mxu0 %vm1058_vm1, %v1111_v34 }
 0x18a   : > { %2817 = vmatmul.mubr.msk.f32.gmra.mrb[16].mxu1 %vm1058_vm1, %v2564_v35 }
 0x18b   : > { %2869 = vmatmul.mubr.msk.f32.gmra.mrb[16].mxu0 %vm1058_vm1, %v1112_v37  ;;  %2819 = vmatprep.mubr.msk.f32.mxu1 %vm1058_vm1, %v2567_v36 }
 0x18c   : > { %2871 = vmatprep.mubr.msk.f32.mxu0 %vm1058_vm1, %v1113_v39 }
 0x18e   : > { %2820 = vmatmul.mubr.msk.f32.gmra.mrb[18].mxu1 %vm1058_vm1, %v2568_v40 }
 0x18f   : > { %2872 = vmatmul.mubr.msk.f32.gmra.mrb[18].mxu0 %vm1058_vm1, %v1114_v42  ;;  %2822 = vmatprep.mubr.msk.f32.mxu1 %vm1058_vm1, %v2571_v41 }
 0x190   : > { %2874 = vmatprep.mubr.msk.f32.mxu0 %vm1058_vm1, %v1115_v44 }
 0x192   : > { %2823 = vmatmul.mubr.msk.f32.gmra.mrb[20].mxu1 %vm1058_vm1, %v2572_v45 }
 0x193   : > { %2875 = vmatmul.mubr.msk.f32.gmra.mrb[20].mxu0 %vm1058_vm1, %v1116_v47  ;;  %2825 = vmatprep.mubr.msk.f32.mxu1 %vm1058_vm1, %v2575_v46 }
 0x194   : > { %2877 = vmatprep.mubr.msk.f32.mxu0 %vm1058_vm1, %v1117_v49 }
 0x196   : > { %2826 = vmatmul.mubr.msk.f32.gmra.mrb[22].mxu1 %vm1058_vm1, %v2576_v50 }
 0x197   : > { %2878 = vmatmul.mubr.msk.f32.gmra.mrb[22].mxu0 %vm1058_vm1, %v1118_v52  ;;  %2828 = vmatprep.mubr.msk.f32.mxu1 %vm1058_vm1, %v2579_v51 }
 0x198   : > { %2880 = vmatprep.mubr.msk.f32.mxu0 %vm1058_vm1, %v1119_v54 }
 0x19a   : > { %2829 = vmatmul.mubr.msk.f32.gmra.mrb[24].mxu1 %vm1058_vm1, %v2580_v55 }
 0x19b   : > { %2881 = vmatmul.mubr.msk.f32.gmra.mrb[24].mxu0 %vm1058_vm1, %v1120_v57  ;;  %2831 = vmatprep.mubr.msk.f32.mxu1 %vm1058_vm1, %v2583_v56 }
 0x19c   : > { %2883 = vmatprep.mubr.msk.f32.mxu0 %vm1058_vm1, %v1121_v59 }
 0x19e   : > { %2832 = vmatmul.mubr.msk.f32.gmra.mrb[26].mxu1 %vm1058_vm1, %v2584_v60 }
 0x19f   : > { %2884 = vmatmul.mubr.msk.f32.gmra.mrb[26].mxu0 %vm1058_vm1, %v1122_v62  ;;  %2834 = vmatprep.mubr.msk.f32.mxu1 %vm1058_vm1, %v2587_v61 }
 0x1a0   : > { %2886 = vmatprep.mubr.msk.f32.mxu0 %vm1058_vm1, %v1123_v0 }
 0x1a2   : > { %2835 = vmatmul.mubr.msk.f32.gmra.mrb[28].mxu1 %vm1058_vm1, %v2588_v1 }
 0x1a3   : > { %2887 = vmatmul.mubr.msk.f32.gmra.mrb[28].mxu0 %vm1058_vm1, %v1124_v3  ;;  %2837 = vmatprep.mubr.msk.f32.mxu1 %vm1058_vm1, %v2591_v2 }
 0x1a4   : > { %2889 = vmatprep.mubr.msk.f32.mxu0 %vm1058_vm1, %v1125_v4 }
 0x1a6   : > { %2838 = vmatmul.mubr.msk.f32.gmra.mrb[30].mxu1 %vm1058_vm1, %v2592_v5 }
 0x1a7   : > { %2890 = vmatmul.mubr.msk.f32.gmra.mrb[30].mxu0 %vm1058_vm1, %v1126_v6 }
 0x23d   : > { %v2794_v7 = vpop.f32.mrb[0].mxu1 }
 0x23e   : > { %v2846_v8 = vpop.f32.mrb[0].mxu0  ;;  %v1357_v9 = vpop.f32.mrb[1].mxu1 }
 0x23f   : > { %v1684_v11 = vadd.f32 %v2846_v8, %v2794_v7  ;;  %v1678_v12 = vpop.f32.mrb[1].mxu0 }
 0x240   : > { %v1679_v13 = vadd.f32 %v1678_v12, %v1357_v9 }
 0x241   : > { %v2797_v14 = vpop.f32.mrb[2].mxu1  ;;  %v3651_v15 = vadd.f32 %v3648_v10, %v1684_v11 }
 0x242   : > { %v2849_v16 = vpop.f32.mrb[2].mxu0  ;;  %v1367_v17 = vpop.f32.mrb[3].mxu1  ;;  %v3656_v21 = vadd.f32 %v3648_v10, %v1679_v13 }
 0x243   : > { %v1694_v18 = vadd.f32 %v2849_v16, %v2797_v14  ;;  %v1688_v19 = vpop.f32.mrb[3].mxu0  ;;  %v1880_v20 = vsel %vm1876_vm2, %v3651_v15, -inf }
 0x244   : > { %v1689_v22 = vadd.f32 %v1688_v19, %v1367_v17  ;;  %1881 = vmax.xlane.f32.xlu0 %v1880_v20  ;;  %v1877_v30 = vsel %vm1876_vm2, %v3656_v21, -inf }
 0x245   : > { %v2800_v23 = vpop.f32.mrb[4].mxu1  ;;  %v3659_v24 = vadd.f32 %v3648_v10, %v1694_v18 }
 0x246   : > { %v2852_v25 = vpop.f32.mrb[4].mxu0  ;;  %v1377_v26 = vpop.f32.mrb[5].mxu1  ;;  %v3666_v31 = vadd.f32 %v3648_v10, %v1689_v22 }
 0x247   : > { %v1704_v27 = vadd.f32 %v2852_v25, %v2800_v23  ;;  %v1698_v28 = vpop.f32.mrb[5].mxu0  ;;  %v1886_v29 = vsel %vm1876_vm2, %v3659_v24, -inf }
 0x248   : > { %v1699_v32 = vadd.f32 %v1698_v28, %v1377_v26  ;;  %1887 = vmax.xlane.f32.xlu1 %v1886_v29  ;;  %1878 = vmax.xlane.f32.xlu0 %v1877_v30  ;;  %v1883_v40 = vsel %vm1876_vm2, %v3666_v31, -inf }
 0x249   : > { %v2803_v33 = vpop.f32.mrb[6].mxu1  ;;  %v3669_v34 = vadd.f32 %v3648_v10, %v1704_v27 }
 0x24a   : > { %v2855_v35 = vpop.f32.mrb[6].mxu0  ;;  %v1387_v36 = vpop.f32.mrb[7].mxu1  ;;  %v3672_v37 = vadd.f32 %v3648_v10, %v1699_v32 }
 0x24b   : > { %v1714_v38 = vadd.f32 %v2855_v35, %v2803_v33  ;;  %v1708_v39 = vpop.f32.mrb[7].mxu0  ;;  %v1892_v44 = vsel %vm1876_vm2, %v3669_v34, -inf }
 0x24c   : > { %v1709_v41 = vadd.f32 %v1708_v39, %v1387_v36  ;;  %1884 = vmax.xlane.f32.xlu1 %v1883_v40  ;;  %v1889_v42 = vsel %vm1876_vm2, %v3672_v37, -inf }
 0x24d   : > { %1890 = vmax.xlane.f32.xlu0 %v1889_v42  ;;  %v2806_v43 = vpop.f32.mrb[8].mxu1  ;;  %v3681_v45 = vadd.f32 %v3648_v10, %v1714_v38 }
 0x24e   : > { %v2858_v46 = vpop.f32.mrb[8].mxu0  ;;  %v1397_v47 = vpop.f32.mrb[9].mxu1  ;;  %v3684_v48 = vadd.f32 %v3648_v10, %v1709_v41 }
 0x24f   : > { %v1724_v49 = vadd.f32 %v2858_v46, %v2806_v43  ;;  %v1718_v50 = vpop.f32.mrb[9].mxu0  ;;  %v1898_v54 = vsel %vm1876_vm2, %v3681_v45, -inf }
 0x250   : > { %v1719_v51 = vadd.f32 %v1718_v50, %v1397_v47  ;;  %1893 = vmax.xlane.f32.xlu1 %v1892_v44  ;;  %v1895_v52 = vsel %vm1876_vm2, %v3684_v48, -inf }
 0x251   : > { %1896 = vmax.xlane.f32.xlu0 %v1895_v52  ;;  %v2809_v53 = vpop.f32.mrb[10].mxu1  ;;  %v3691_v55 = vadd.f32 %v3648_v10, %v1724_v49 }
 0x252   : > { %v2861_v56 = vpop.f32.mrb[10].mxu0  ;;  %v1407_v57 = vpop.f32.mrb[11].mxu1  ;;  %v3694_v58 = vadd.f32 %v3648_v10, %v1719_v51 }
 0x253   : > { %v1734_v59 = vadd.f32 %v2861_v56, %v2809_v53  ;;  %v1728_v60 = vpop.f32.mrb[11].mxu0  ;;  %v1904_v0 = vsel %vm1876_vm2, %v3691_v55, -inf }
 0x254   : > { %v1729_v61 = vadd.f32 %v1728_v60, %v1407_v57  ;;  %1899 = vmax.xlane.f32.xlu1 %v1898_v54  ;;  %v1901_v62 = vsel %vm1876_vm2, %v3694_v58, -inf }
 0x255   : > { %1902 = vmax.xlane.f32.xlu0 %v1901_v62  ;;  %v2812_v63 = vpop.f32.mrb[12].mxu1  ;;  %v3701_v1 = vadd.f32 %v3648_v10, %v1734_v59 }
 0x256   : > { %v2864_v2 = vpop.f32.mrb[12].mxu0  ;;  %v1417_v3 = vpop.f32.mrb[13].mxu1  ;;  %v3704_v4 = vadd.f32 %v3648_v10, %v1729_v61 }
 0x257   : > { %v1744_v5 = vadd.f32 %v2864_v2, %v2812_v63  ;;  %v1738_v6 = vpop.f32.mrb[13].mxu0  ;;  %v1910_v11 = vsel %vm1876_vm2, %v3701_v1, -inf }
 0x258   : > { %v1739_v7 = vadd.f32 %v1738_v6, %v1417_v3  ;;  %1905 = vmax.xlane.f32.xlu1 %v1904_v0  ;;  %v1907_v8 = vsel %vm1876_vm2, %v3704_v4, -inf }
 0x259   : > { %1908 = vmax.xlane.f32.xlu0 %v1907_v8  ;;  %v2815_v9 = vpop.f32.mrb[14].mxu1  ;;  %v3711_v12 = vadd.f32 %v3648_v10, %v1744_v5 }
 0x25a   : > { %v2867_v13 = vpop.f32.mrb[14].mxu0  ;;  %v1427_v14 = vpop.f32.mrb[15].mxu1  ;;  %v3714_v16 = vadd.f32 %v3648_v10, %v1739_v7 }
 0x25b   : > { %v1754_v17 = vadd.f32 %v2867_v13, %v2815_v9  ;;  %v1748_v18 = vpop.f32.mrb[15].mxu0  ;;  %v1916_v23 = vsel %vm1876_vm2, %v3711_v12, -inf }
 0x25c   : > { %v1749_v19 = vadd.f32 %v1748_v18, %v1427_v14  ;;  %1911 = vmax.xlane.f32.xlu1 %v1910_v11  ;;  %v1913_v20 = vsel %vm1876_vm2, %v3714_v16, -inf }
 0x25d   : > { %1914 = vmax.xlane.f32.xlu0 %v1913_v20  ;;  %v2818_v22 = vpop.f32.mrb[16].mxu1  ;;  %v3721_v25 = vadd.f32 %v3648_v10, %v1754_v17 }
 0x25e   : > { %v2870_v26 = vpop.f32.mrb[16].mxu0  ;;  %v1437_v27 = vpop.f32.mrb[17].mxu1  ;;  %v3724_v28 = vadd.f32 %v3648_v10, %v1749_v19 }
 0x25f   : > { %v1764_v29 = vadd.f32 %v2870_v26, %v2818_v22  ;;  %v1758_v30 = vpop.f32.mrb[17].mxu0  ;;  %v1922_v36 = vsel %vm1876_vm2, %v3721_v25, -inf }
 0x260   : > { %v1759_v32 = vadd.f32 %v1758_v30, %v1437_v27  ;;  %1917 = vmax.xlane.f32.xlu1 %v1916_v23  ;;  %v1919_v33 = vsel %vm1876_vm2, %v3724_v28, -inf }
 0x261   : > { %1920 = vmax.xlane.f32.xlu0 %v1919_v33  ;;  %v2821_v35 = vpop.f32.mrb[18].mxu1  ;;  %v3731_v38 = vadd.f32 %v3648_v10, %v1764_v29 }
 0x262   : > { %v2873_v39 = vpop.f32.mrb[18].mxu0  ;;  %v1447_v40 = vpop.f32.mrb[19].mxu1  ;;  %v3734_v41 = vadd.f32 %v3648_v10, %v1759_v32 }
 0x263   : > { %v1774_v42 = vadd.f32 %v2873_v39, %v2821_v35  ;;  %v1768_v43 = vpop.f32.mrb[19].mxu0  ;;  %v1928_v49 = vsel %vm1876_vm2, %v3731_v38, -inf }
 0x264   : > { %v1769_v44 = vadd.f32 %v1768_v43, %v1447_v40  ;;  %1923 = vmax.xlane.f32.xlu1 %v1922_v36  ;;  %v1925_v46 = vsel %vm1876_vm2, %v3734_v41, -inf }
 0x265   : > { %1926 = vmax.xlane.f32.xlu0 %v1925_v46  ;;  %v2824_v47 = vpop.f32.mrb[20].mxu1  ;;  %v3741_v50 = vadd.f32 %v3648_v10, %v1774_v42 }
 0x266   : > { %v2876_v51 = vpop.f32.mrb[20].mxu0  ;;  %v1457_v52 = vpop.f32.mrb[21].mxu1  ;;  %v3744_v53 = vadd.f32 %v3648_v10, %v1769_v44 }
 0x267   : > { %v1784_v54 = vadd.f32 %v2876_v51, %v2824_v47  ;;  %v1778_v56 = vpop.f32.mrb[21].mxu0  ;;  %v1934_v61 = vsel %vm1876_vm2, %v3741_v50, -inf }
 0x268   : > { %v1779_v57 = vadd.f32 %v1778_v56, %v1457_v52  ;;  %1929 = vmax.xlane.f32.xlu1 %v1928_v49  ;;  %v1931_v59 = vsel %vm1876_vm2, %v3744_v53, -inf }
 0x269   : > { %1932 = vmax.xlane.f32.xlu0 %v1931_v59  ;;  %v2827_v60 = vpop.f32.mrb[22].mxu1  ;;  %v3751_v62 = vadd.f32 %v3648_v10, %v1784_v54 }
 0x26a   : > { %v2879_v63 = vpop.f32.mrb[22].mxu0  ;;  %v1467_v0 = vpop.f32.mrb[23].mxu1  ;;  %v3754_v2 = vadd.f32 %v3648_v10, %v1779_v57 }
 0x26b   : > { %v1794_v3 = vadd.f32 %v2879_v63, %v2827_v60  ;;  %v1788_v5 = vpop.f32.mrb[23].mxu0  ;;  %v1940_v9 = vsel %vm1876_vm2, %v3751_v62, -inf }
 0x26c   : > { %v1789_v6 = vadd.f32 %v1788_v5, %v1467_v0  ;;  %1935 = vmax.xlane.f32.xlu1 %v1934_v61  ;;  %v1937_v7 = vsel %vm1876_vm2, %v3754_v2, -inf }
 0x26d   : > { %1938 = vmax.xlane.f32.xlu0 %v1937_v7  ;;  %v2830_v8 = vpop.f32.mrb[24].mxu1  ;;  %v3761_v11 = vadd.f32 %v3648_v10, %v1794_v3 }
 0x26e   : > { %v2882_v13 = vpop.f32.mrb[24].mxu0  ;;  %v1477_v14 = vpop.f32.mrb[25].mxu1  ;;  %v3764_v17 = vadd.f32 %v3648_v10, %v1789_v6 }
 0x26f   : > { %v1804_v18 = vadd.f32 %v2882_v13, %v2830_v8  ;;  %v1798_v19 = vpop.f32.mrb[25].mxu0  ;;  %v1946_v26 = vsel %vm1876_vm2, %v3761_v11, -inf }
 0x270   : > { %v1799_v20 = vadd.f32 %v1798_v19, %v1477_v14  ;;  %1941 = vmax.xlane.f32.xlu1 %v1940_v9  ;;  %v1943_v22 = vsel %vm1876_vm2, %v3764_v17, -inf }
 0x271   : > { %1944 = vmax.xlane.f32.xlu0 %v1943_v22  ;;  %v2833_v23 = vpop.f32.mrb[26].mxu1  ;;  %v3771_v27 = vadd.f32 %v3648_v10, %v1804_v18 }
 0x272   : > { %v2885_v29 = vpop.f32.mrb[26].mxu0  ;;  %v1487_v30 = vpop.f32.mrb[27].mxu1  ;;  %v3774_v32 = vadd.f32 %v3648_v10, %v1799_v20 }
 0x273   : > { %v1814_v33 = vadd.f32 %v2885_v29, %v2833_v23  ;;  %v1808_v35 = vpop.f32.mrb[27].mxu0  ;;  %v1952_v42 = vsel %vm1876_vm2, %v3771_v27, -inf }
 0x274   : > { %v1809_v36 = vadd.f32 %v1808_v35, %v1487_v30  ;;  %1947 = vmax.xlane.f32.xlu1 %v1946_v26  ;;  %v1949_v39 = vsel %vm1876_vm2, %v3774_v32, -inf }
 0x275   : > { %1950 = vmax.xlane.f32.xlu0 %v1949_v39  ;;  %v2836_v40 = vpop.f32.mrb[28].mxu1  ;;  %v3781_v43 = vadd.f32 %v3648_v10, %v1814_v33 }
 0x276   : > { %v2888_v44 = vpop.f32.mrb[28].mxu0  ;;  %v1497_v46 = vpop.f32.mrb[29].mxu1  ;;  %v3784_v47 = vadd.f32 %v3648_v10, %v1809_v36 }
 0x277   : > { %v1824_v49 = vadd.f32 %v2888_v44, %v2836_v40  ;;  %v1818_v51 = vpop.f32.mrb[29].mxu0  ;;  %v1958_v57 = vsel %vm1876_vm2, %v3781_v43, -inf }
 0x278   : > { %v1819_v52 = vadd.f32 %v1818_v51, %v1497_v46  ;;  %1953 = vmax.xlane.f32.xlu1 %v1952_v42  ;;  %v1955_v54 = vsel %vm1876_vm2, %v3784_v47, -inf }
 0x279   : > { %1956 = vmax.xlane.f32.xlu0 %v1955_v54  ;;  %v2839_v56 = vpop.f32.mrb[30].mxu1  ;;  %v3791_v59 = vadd.f32 %v3648_v10, %v1824_v49 }
 0x27a   : > { %v2891_v60 = vpop.f32.mrb[30].mxu0  ;;  %v1507_v61 = vpop.f32.mrb[31].mxu1  ;;  %v3794_v63 = vadd.f32 %v3648_v10, %v1819_v52 }
 0x27b   : > { %v1834_v0 = vadd.f32 %v2891_v60, %v2839_v56  ;;  %v1828_v3 = vpop.f32.mrb[31].mxu0  ;;  %v1964_v7 = vsel %vm1876_vm2, %v3791_v59, -inf }
 0x27c   : > { %v1829_v5 = vadd.f32 %v1828_v3, %v1507_v61  ;;  %1959 = vmax.xlane.f32.xlu1 %v1958_v57  ;;  %v1961_v6 = vsel %vm1876_vm2, %v3794_v63, -inf }
 0x27d   : > { %1962 = vmax.xlane.f32.xlu0 %v1961_v6  ;;  %v3801_v8 = vadd.f32 %v3648_v10, %v1834_v0 }
 0x27e   : > { %v3804_v9 = vadd.f32 %v3648_v10, %v1829_v5 }
 0x27f   : > { %v1970_v14 = vsel %vm1876_vm2, %v3801_v8, -inf }
 0x280   : > { %1965 = vmax.xlane.f32.xlu1 %v1964_v7  ;;  %v1967_v13 = vsel %vm1876_vm2, %v3804_v9, -inf }
 0x281   : > { %1968 = vmax.xlane.f32.xlu0 %v1967_v13 }
 0x284   : > { %1971 = vmax.xlane.f32.xlu1 %v1970_v14 }
 0x2d1   : > { %v1882_v18 = vpop.xlane.xlu0 %1881 }
 0x2d2   : > { %v3811_v19 = vsub.f32 %v3651_v15, %v1882_v18 }
 0x2d4   : > { %v2007_v20 = vmul.f32 1.442695, %v3811_v19 }
 0x2d5   : > { %v1888_v22 = vpop.xlane.xlu1 %1887  ;;  %v1879_v23 = vpop.xlane.xlu0 %1878 }
 0x2d6   : > { %3069 = vpow2.f32 %v2007_v20  ;;  %v3815_v10 = vsub.f32 %v3659_v24, %v1888_v22  ;;  %v3818_v26 = vsub.f32 %v3656_v21, %v1879_v23 }
 0x2d8   : > { %v2011_v29 = vmul.f32 1.442695, %v3815_v10  ;;  %v2005_v30 = vmul.f32 1.442695, %v3818_v26 }
 0x2d9   : > { %v1885_v33 = vpop.xlane.xlu1 %1884 }
 0x2da   : > { %3071 = vpow2.f32 %v2011_v29  ;;  %v3823_v15 = vsub.f32 %v3666_v31, %v1885_v33  ;;  %v1891_v35 = vpop.xlane.xlu0 %1890 }
 0x2db   : > { %3073 = vpow2.f32 %v2005_v30  ;;  %v3826_v36 = vsub.f32 %v3672_v37, %v1891_v35 }
 0x2dc   : > { %v2009_v24 = vmul.f32 1.442695, %v3823_v15 }
 0x2dd   : > { %v2013_v39 = vmul.f32 1.442695, %v3826_v36  ;;  %v1894_v21 = vpop.xlane.xlu1 %1893 }
 0x2de   : > { %3075 = vpow2.f32 %v2009_v24  ;;  %v3831_v40 = vsub.f32 %v3669_v34, %v1894_v21  ;;  %v1897_v42 = vpop.xlane.xlu0 %1896 }
 0x2df   : > { %v3834_v44 = vsub.f32 %v3684_v48, %v1897_v42  ;;  %3077 = vpow2.f32 %v2013_v39 }
 0x2e0   : > { %v3070_v31 = vpop.eup %3069  ;;  %v2015_v46 = vmul.f32 1.442695, %v3831_v40 }
 0x2e1   : > { %v2017_v37 = vmul.f32 1.442695, %v3834_v44  ;;  %v1900_v49 = vpop.xlane.xlu1 %1899  ;;  %v2072_v51 = vsel %vm1876_vm2, %v3070_v31, 0.0 }
 0x2e2   : > { %3079 = vpow2.f32 %v2015_v46  ;;  %v3840_v52 = vsub.f32 %v3681_v45, %v1900_v49  ;;  %2073 = vadd.xlane.f32.xlu1 %v2072_v51  ;;  %v1903_v34 = vpop.xlane.xlu0 %1902 }
 0x2e3   : > { %v3843_v54 = vsub.f32 %v3694_v58, %v1903_v34  ;;  %3081 = vpow2.f32 %v2017_v37 }
 0x2e4   : > { %v3072_v48 = vpop.eup %3071  ;;  %v2019_v56 = vmul.f32 1.442695, %v3840_v52 }
 0x2e5   : > { %v3074_v57 = vpop.eup %3073  ;;  %v2021_v60 = vmul.f32 1.442695, %v3843_v54  ;;  %v1906_v61 = vpop.xlane.xlu1 %1905  ;;  %v2078_v0 = vsel %vm1876_vm2, %v3072_v48, 0.0 }
 0x2e6   : > { %3083 = vpow2.f32 %v2019_v56  ;;  %v3849_v3 = vsub.f32 %v3691_v55, %v1906_v61  ;;  %2079 = vadd.xlane.f32.xlu1 %v2078_v0  ;;  %v2069_v45 = vsel %vm1876_vm2, %v3074_v57, 0.0  ;;  %v1909_v5 = vpop.xlane.xlu0 %1908 }
 0x2e7   : > { %2070 = vadd.xlane.f32.xlu0 %v2069_v45  ;;  %v3853_v58 = vsub.f32 %v3704_v4, %v1909_v5  ;;  %3085 = vpow2.f32 %v2021_v60 }
 0x2e8   : > { %v3076_v6 = vpop.eup %3075  ;;  %v2023_v7 = vmul.f32 1.442695, %v3849_v3 }
 0x2e9   : > { %v2025_v13 = vmul.f32 1.442695, %v3853_v58  ;;  %v1912_v14 = vpop.xlane.xlu1 %1911  ;;  %v2075_v18 = vsel %vm1876_vm2, %v3076_v6, 0.0  ;;  %v3078_v22 = vpop.eup %3077 }
 0x2ea   : > { %3087 = vpow2.f32 %v2023_v7  ;;  %v3859_v55 = vsub.f32 %v3701_v1, %v1912_v14  ;;  %v1915_v20 = vpop.xlane.xlu0 %1914  ;;  %v2081_v1 = vsel %vm1876_vm2, %v3078_v22, 0.0 }
 0x2eb   : > { %2076 = vadd.xlane.f32.xlu0 %v2075_v18  ;;  %v3862_v23 = vsub.f32 %v3714_v16, %v1915_v20  ;;  %3089 = vpow2.f32 %v2025_v13 }
 0x2ec   : > { %v3080_v4 = vpop.eup %3079  ;;  %v2027_v29 = vmul.f32 1.442695, %v3859_v55 }
 0x2ed   : > { %v2029_v30 = vmul.f32 1.442695, %v3862_v23  ;;  %v1918_v33 = vpop.xlane.xlu1 %1917  ;;  %v2084_v35 = vsel %vm1876_vm2, %v3080_v4, 0.0  ;;  %v3082_v21 = vpop.eup %3081 }
 0x2ee   : > { %3091 = vpow2.f32 %v2027_v29  ;;  %v3868_v24 = vsub.f32 %v3711_v12, %v1918_v33  ;;  %2085 = vadd.xlane.f32.xlu1 %v2084_v35  ;;  %v1921_v39 = vpop.xlane.xlu0 %1920  ;;  %v2087_v51 = vsel %vm1876_vm2, %v3082_v21, 0.0 }
 0x2ef   : > { %2082 = vadd.xlane.f32.xlu0 %v2081_v1  ;;  %v3872_v16 = vsub.f32 %v3724_v28, %v1921_v39  ;;  %3093 = vpow2.f32 %v2029_v30 }
 0x2f0   : > { %v3084_v42 = vpop.eup %3083  ;;  %v2031_v31 = vmul.f32 1.442695, %v3868_v24 }
 0x2f1   : > { %v2033_v46 = vmul.f32 1.442695, %v3872_v16  ;;  %v1924_v37 = vpop.xlane.xlu1 %1923  ;;  %v2090_v49 = vsel %vm1876_vm2, %v3084_v42, 0.0  ;;  %v3086_v48 = vpop.eup %3085 }
 0x2f2   : > { %3095 = vpow2.f32 %v2031_v31  ;;  %v3878_v12 = vsub.f32 %v3721_v25, %v1924_v37  ;;  %2091 = vadd.xlane.f32.xlu1 %v2090_v49  ;;  %v1927_v34 = vpop.xlane.xlu0 %1926  ;;  %v2093_v45 = vsel %vm1876_vm2, %v3086_v48, 0.0 }
 0x2f3   : > { %2088 = vadd.xlane.f32.xlu0 %v2087_v51  ;;  %v3882_v28 = vsub.f32 %v3734_v41, %v1927_v34  ;;  %3097 = vpow2.f32 %v2033_v46 }
 0x2f4   : > { %v3088_v56 = vpop.eup %3087  ;;  %v2035_v57 = vmul.f32 1.442695, %v3878_v12 }
 0x2f5   : > { %v2037_v60 = vmul.f32 1.442695, %v3882_v28  ;;  %v1930_v61 = vpop.xlane.xlu1 %1929  ;;  %v2096_v0 = vsel %vm1876_vm2, %v3088_v56, 0.0  ;;  %v3090_v6 = vpop.eup %3089 }
 0x2f6   : > { %3099 = vpow2.f32 %v2035_v57  ;;  %v3888_v25 = vsub.f32 %v3731_v38, %v1930_v61  ;;  %2097 = vadd.xlane.f32.xlu1 %v2096_v0  ;;  %v1933_v5 = vpop.xlane.xlu0 %1932  ;;  %v2099_v22 = vsel %vm1876_vm2, %v3090_v6, 0.0 }
 0x2f7   : > { %2094 = vadd.xlane.f32.xlu0 %v2093_v45  ;;  %v3892_v41 = vsub.f32 %v3744_v53, %v1933_v5  ;;  %3101 = vpow2.f32 %v2037_v60 }
 0x2f8   : > { %v3092_v7 = vpop.eup %3091  ;;  %v2039_v13 = vmul.f32 1.442695, %v3888_v25 }
 0x2f9   : > { %v2041_v14 = vmul.f32 1.442695, %v3892_v41  ;;  %v1936_v18 = vpop.xlane.xlu1 %1935  ;;  %v2102_v20 = vsel %vm1876_vm2, %v3092_v7, 0.0  ;;  %v3094_v29 = vpop.eup %3093 }
 0x2fa   : > { %3103 = vpow2.f32 %v2039_v13  ;;  %v3898_v38 = vsub.f32 %v3741_v50, %v1936_v18  ;;  %2103 = vadd.xlane.f32.xlu1 %v2102_v20  ;;  %v1939_v4 = vpop.xlane.xlu0 %1938  ;;  %v2105_v21 = vsel %vm1876_vm2, %v3094_v29, 0.0 }
 0x2fb   : > { %2100 = vadd.xlane.f32.xlu0 %v2099_v22  ;;  %v3902_v53 = vsub.f32 %v3754_v2, %v1939_v4  ;;  %3105 = vpow2.f32 %v2041_v14 }
 0x2fc   : > { %v3096_v30 = vpop.eup %3095  ;;  %v2043_v33 = vmul.f32 1.442695, %v3898_v38 }
 0x2fd   : > { %v2045_v35 = vmul.f32 1.442695, %v3902_v53  ;;  %v1942_v1 = vpop.xlane.xlu1 %1941  ;;  %v2108_v39 = vsel %vm1876_vm2, %v3096_v30, 0.0  ;;  %v3098_v31 = vpop.eup %3097 }
 0x2fe   : > { %3107 = vpow2.f32 %v2043_v33  ;;  %v3908_v50 = vsub.f32 %v3751_v62, %v1942_v1  ;;  %2109 = vadd.xlane.f32.xlu1 %v2108_v39  ;;  %v1945_v42 = vpop.xlane.xlu0 %1944  ;;  %v2111_v48 = vsel %vm1876_vm2, %v3098_v31, 0.0 }
 0x2ff   : > { %2106 = vadd.xlane.f32.xlu0 %v2105_v21  ;;  %v3912_v2 = vsub.f32 %v3764_v17, %v1945_v42  ;;  %3109 = vpow2.f32 %v2045_v35 }
 0x300   : > { %v3100_v46 = vpop.eup %3099  ;;  %v2047_v37 = vmul.f32 1.442695, %v3908_v50 }
 0x301   : > { %v2049_v49 = vmul.f32 1.442695, %v3912_v2  ;;  %v1948_v51 = vpop.xlane.xlu1 %1947  ;;  %v2114_v34 = vsel %vm1876_vm2, %v3100_v46, 0.0  ;;  %v3102_v57 = vpop.eup %3101 }
 0x302   : > { %3111 = vpow2.f32 %v2047_v37  ;;  %v3918_v62 = vsub.f32 %v3761_v11, %v1948_v51  ;;  %2115 = vadd.xlane.f32.xlu1 %v2114_v34  ;;  %v1951_v56 = vpop.xlane.xlu0 %1950  ;;  %v2117_v6 = vsel %vm1876_vm2, %v3102_v57, 0.0 }
 0x303   : > { %2112 = vadd.xlane.f32.xlu0 %v2111_v48  ;;  %v3922_v17 = vsub.f32 %v3774_v32, %v1951_v56  ;;  %3113 = vpow2.f32 %v2049_v49 }
 0x304   : > { %v3104_v60 = vpop.eup %3103  ;;  %v2051_v61 = vmul.f32 1.442695, %v3918_v62 }
 0x305   : > { %v2053_v0 = vmul.f32 1.442695, %v3922_v17  ;;  %v1954_v45 = vpop.xlane.xlu1 %1953  ;;  %v2120_v5 = vsel %vm1876_vm2, %v3104_v60, 0.0  ;;  %v3106_v13 = vpop.eup %3105 }
 0x306   : > { %3115 = vpow2.f32 %v2051_v61  ;;  %v3928_v11 = vsub.f32 %v3771_v27, %v1954_v45  ;;  %2121 = vadd.xlane.f32.xlu1 %v2120_v5  ;;  %v1957_v7 = vpop.xlane.xlu0 %1956  ;;  %v2123_v29 = vsel %vm1876_vm2, %v3106_v13, 0.0 }
 0x307   : > { %2118 = vadd.xlane.f32.xlu0 %v2117_v6  ;;  %v3932_v32 = vsub.f32 %v3784_v47, %v1957_v7  ;;  %3117 = vpow2.f32 %v2053_v0 }
 0x308   : > { %v3108_v14 = vpop.eup %3107  ;;  %v2055_v18 = vmul.f32 1.442695, %v3928_v11 }
 0x309   : > { %v2057_v20 = vmul.f32 1.442695, %v3932_v32  ;;  %v1960_v22 = vpop.xlane.xlu1 %1959  ;;  %v2126_v4 = vsel %vm1876_vm2, %v3108_v14, 0.0  ;;  %v3110_v33 = vpop.eup %3109 }
 0x30a   : > { %3119 = vpow2.f32 %v2055_v18  ;;  %v3938_v27 = vsub.f32 %v3781_v43, %v1960_v22  ;;  %2127 = vadd.xlane.f32.xlu1 %v2126_v4  ;;  %v1963_v30 = vpop.xlane.xlu0 %1962  ;;  %v2129_v31 = vsel %vm1876_vm2, %v3110_v33, 0.0 }
 0x30b   : > { %2124 = vadd.xlane.f32.xlu0 %v2123_v29  ;;  %v3942_v47 = vsub.f32 %v3794_v63, %v1963_v30  ;;  %3121 = vpow2.f32 %v2057_v20 }
 0x30c   : > { %v3112_v35 = vpop.eup %3111  ;;  %v2059_v1 = vmul.f32 1.442695, %v3938_v27 }
 0x30d   : > { %v2061_v39 = vmul.f32 1.442695, %v3942_v47  ;;  %v1966_v21 = vpop.xlane.xlu1 %1965  ;;  %v2132_v42 = vsel %vm1876_vm2, %v3112_v35, 0.0  ;;  %v3114_v37 = vpop.eup %3113 }
 0x30e   : > { %3123 = vpow2.f32 %v2059_v1  ;;  %v3948_v43 = vsub.f32 %v3791_v59, %v1966_v21  ;;  %2133 = vadd.xlane.f32.xlu1 %v2132_v42  ;;  %v1969_v46 = vpop.xlane.xlu0 %1968  ;;  %v2135_v57 = vsel %vm1876_vm2, %v3114_v37, 0.0 }
 0x30f   : > { %2130 = vadd.xlane.f32.xlu0 %v2129_v31  ;;  %v3952_v63 = vsub.f32 %v3804_v9, %v1969_v46  ;;  %3125 = vpow2.f32 %v2061_v39 }
 0x310   : > { %v3116_v49 = vpop.eup %3115  ;;  %v2063_v51 = vmul.f32 1.442695, %v3948_v43 }
 0x311   : > { %v2065_v34 = vmul.f32 1.442695, %v3952_v63  ;;  %v1972_v48 = vpop.xlane.xlu1 %1971  ;;  %v2138_v56 = vsel %vm1876_vm2, %v3116_v49, 0.0  ;;  %v3118_v60 = vpop.eup %3117 }
 0x312   : > { %3127 = vpow2.f32 %v2063_v51  ;;  %v3958_v59 = vsub.f32 %v3801_v8, %v1972_v48  ;;  %2139 = vadd.xlane.f32.xlu1 %v2138_v56  ;;  %v2141_v45 = vsel %vm1876_vm2, %v3118_v60, 0.0 }
 0x313   : > { %2136 = vadd.xlane.f32.xlu0 %v2135_v57  ;;  %3129 = vpow2.f32 %v2065_v34 }
 0x314   : > { %v3120_v9 = vpop.eup %3119  ;;  %v2067_v61 = vmul.f32 1.442695, %v3958_v59 }
 0x315   : > { %v2144_v0 = vsel %vm1876_vm2, %v3120_v9, 0.0  ;;  %v3122_v5 = vpop.eup %3121 }
 0x316   : > { %3131 = vpow2.f32 %v2067_v61  ;;  %2145 = vadd.xlane.f32.xlu1 %v2144_v0  ;;  %v2147_v7 = vsel %vm1876_vm2, %v3122_v5, 0.0 }
 0x317   : > { %2142 = vadd.xlane.f32.xlu0 %v2141_v45 }
 0x318   : > { %v3124_v6 = vpop.eup %3123 }
 0x319   : > { %v2150_v8 = vsel %vm1876_vm2, %v3124_v6, 0.0  ;;  %v3126_v13 = vpop.eup %3125 }
 0x31a   : > { %2151 = vadd.xlane.f32.xlu1 %v2150_v8  ;;  %v2153_v20 = vsel %vm1876_vm2, %v3126_v13, 0.0 }
 0x31b   : > { %2148 = vadd.xlane.f32.xlu0 %v2147_v7 }
 0x31c   : > { %v3128_v14 = vpop.eup %3127 }
 0x31d   : > { %v2156_v18 = vsel %vm1876_vm2, %v3128_v14, 0.0  ;;  %v3130_v22 = vpop.eup %3129 }
 0x31e   : > { %2157 = vadd.xlane.f32.xlu1 %v2156_v18  ;;  %v2159_v30 = vsel %vm1876_vm2, %v3130_v22, 0.0 }
 0x31f   : > { %2154 = vadd.xlane.f32.xlu0 %v2153_v20 }
 0x320   : > { %v3132_v4 = vpop.eup %3131 }
 0x321   : > { %v2162_v29 = vsel %vm1876_vm2, %v3132_v4, 0.0 }
 0x322   : > { %2163 = vadd.xlane.f32.xlu1 %v2162_v29 }
 0x323   : > { %2160 = vadd.xlane.f32.xlu0 %v2159_v30 }
 0x36f   : > { %v2074_v33 = vpop.xlane.xlu1 %2073 }
 0x370   : > { %3133 = vlog2.f32 %v2074_v33 }
 0x373   : > { %v2080_v35 = vpop.xlane.xlu1 %2079 }
 0x374   : > { %3135 = vlog2.f32 %v2080_v35  ;;  %v2071_v1 = vpop.xlane.xlu0 %2070 }
 0x375   : > { %3137 = vlog2.f32 %v2071_v1 }
 0x378   : > { %v2077_v39 = vpop.xlane.xlu0 %2076 }
 0x379   : > { %3139 = vlog2.f32 %v2077_v39 }
 0x37a   : > { %v3134_v21 = vpop.eup %3133 }
 0x37b   : > { %v2168_v42 = vmul.f32 0.6931472, %v3134_v21  ;;  %v2086_v31 = vpop.xlane.xlu1 %2085 }
 0x37c   : > { %3141 = vlog2.f32 %v2086_v31  ;;  %v2083_v46 = vpop.xlane.xlu0 %2082 }
 0x37d   : > { %v2230_v37 = vsub.f32 %v3811_v19, %v2168_v42  ;;  %3143 = vlog2.f32 %v2083_v46 }
 0x37e   : > { %v3136_v49 = vpop.eup %3135 }
 0x37f   : > { %v3138_v51 = vpop.eup %3137  ;;  %2262 = vst.msk [vmem:[%s3435_s24 + $0x8] sm:$0xff] %vm1876_vm2, %v2230_v37  ;;  %v2172_v34 = vmul.f32 0.6931472, %v3136_v49  ;;  %v2092_v48 = vpop.xlane.xlu1 %2091 }
 0x380   : > { %v2166_v56 = vmul.f32 0.6931472, %v3138_v51  ;;  %3145 = vlog2.f32 %v2092_v48  ;;  %v2089_v57 = vpop.xlane.xlu0 %2088 }
 0x381   : > { %v2232_v60 = vsub.f32 %v3815_v10, %v2172_v34  ;;  %3147 = vlog2.f32 %v2089_v57 }
 0x382   : > { %v2229_v9 = vsub.f32 %v3818_v26, %v2166_v56 }
 0x383   : > { %v3140_v61 = vpop.eup %3139  ;;  %2264 = vst.msk [vmem:[%s3435_s24 + $0x18] sm:$0xff] %vm1876_vm2, %v2232_v60  ;;  %v2098_v19 = vpop.xlane.xlu1 %2097 }
 0x384   : > { %2261 = vst.msk [vmem:[%s3435_s24] sm:$0xff] %vm1876_vm2, %v2229_v9  ;;  %v2170_v0 = vmul.f32 0.6931472, %v3140_v61  ;;  %3149 = vlog2.f32 %v2098_v19  ;;  %v2095_v45 = vpop.xlane.xlu0 %2094 }
 0x385   : > { %3151 = vlog2.f32 %v2095_v45 }
 0x386   : > { %v3142_v5 = vpop.eup %3141  ;;  %v2231_v6 = vsub.f32 %v3823_v15, %v2170_v0 }
 0x387   : > { %v3144_v10 = vpop.eup %3143  ;;  %v2176_v8 = vmul.f32 0.6931472, %v3142_v5  ;;  %v2104_v7 = vpop.xlane.xlu1 %2103 }
 0x388   : > { %2263 = vst.msk [vmem:[%s3435_s24 + $0x10] sm:$0xff] %vm1876_vm2, %v2231_v6  ;;  %v2174_v26 = vmul.f32 0.6931472, %v3144_v10  ;;  %3153 = vlog2.f32 %v2104_v7  ;;  %v2101_v13 = vpop.xlane.xlu0 %2100 }
 0x389   : > { %v2234_v14 = vsub.f32 %v3831_v40, %v2176_v8  ;;  %3155 = vlog2.f32 %v2101_v13 }
 0x38a   : > { %v3146_v18 = vpop.eup %3145  ;;  %v2233_v20 = vsub.f32 %v3826_v36, %v2174_v26 }
 0x38b   : > { %v3148_v22 = vpop.eup %3147  ;;  %2266 = vst.msk [vmem:[%s3435_s24 + $0x28] sm:$0xff] %vm1876_vm2, %v2234_v14  ;;  %v2180_v15 = vmul.f32 0.6931472, %v3146_v18  ;;  %v2110_v4 = vpop.xlane.xlu1 %2109 }
 0x38c   : > { %2265 = vst.msk [vmem:[%s3435_s24 + $0x20] sm:$0xff] %vm1876_vm2, %v2233_v20  ;;  %v2178_v29 = vmul.f32 0.6931472, %v3148_v22  ;;  %3157 = vlog2.f32 %v2110_v4  ;;  %v2107_v30 = vpop.xlane.xlu0 %2106 }
 0x38d   : > { %v2236_v33 = vsub.f32 %v3840_v52, %v2180_v15  ;;  %3159 = vlog2.f32 %v2107_v30 }
 0x38e   : > { %v3150_v40 = vpop.eup %3149  ;;  %v2235_v35 = vsub.f32 %v3834_v44, %v2178_v29 }
 0x38f   : > { %v3152_v1 = vpop.eup %3151  ;;  %2268 = vst.msk [vmem:[%s3435_s24 + $0x38] sm:$0xff] %vm1876_vm2, %v2236_v33  ;;  %v2184_v36 = vmul.f32 0.6931472, %v3150_v40  ;;  %v2116_v39 = vpop.xlane.xlu1 %2115 }
 0x390   : > { %2267 = vst.msk [vmem:[%s3435_s24 + $0x30] sm:$0xff] %vm1876_vm2, %v2235_v35  ;;  %v2182_v21 = vmul.f32 0.6931472, %v3152_v1  ;;  %3161 = vlog2.f32 %v2116_v39  ;;  %v2113_v42 = vpop.xlane.xlu0 %2112 }
 0x391   : > { %v2238_v31 = vsub.f32 %v3849_v3, %v2184_v36  ;;  %3163 = vlog2.f32 %v2113_v42 }
 0x392   : > { %v3154_v52 = vpop.eup %3153  ;;  %v2237_v46 = vsub.f32 %v3843_v54, %v2182_v21 }
 0x393   : > { %v3156_v37 = vpop.eup %3155  ;;  %2270 = vst.msk [vmem:[%s3435_s24 + $0x48] sm:$0xff] %vm1876_vm2, %v2238_v31  ;;  %v2188_v44 = vmul.f32 0.6931472, %v3154_v52  ;;  %v2122_v49 = vpop.xlane.xlu1 %2121 }
 0x394   : > { %2269 = vst.msk [vmem:[%s3435_s24 + $0x40] sm:$0xff] %vm1876_vm2, %v2237_v46  ;;  %v2186_v51 = vmul.f32 0.6931472, %v3156_v37  ;;  %3165 = vlog2.f32 %v2122_v49  ;;  %v2119_v34 = vpop.xlane.xlu0 %2118 }
 0x395   : > { %v2240_v48 = vsub.f32 %v3859_v55, %v2188_v44  ;;  %3167 = vlog2.f32 %v2119_v34 }
 0x396   : > { %v3158_v3 = vpop.eup %3157  ;;  %v2239_v56 = vsub.f32 %v3853_v58, %v2186_v51 }
 0x397   : > { %v3160_v57 = vpop.eup %3159  ;;  %2272 = vst.msk [vmem:[%s3435_s24 + $0x58] sm:$0xff] %vm1876_vm2, %v2240_v48  ;;  %v2192_v54 = vmul.f32 0.6931472, %v3158_v3  ;;  %v2128_v60 = vpop.xlane.xlu1 %2127 }
 0x398   : > { %2271 = vst.msk [vmem:[%s3435_s24 + $0x50] sm:$0xff] %vm1876_vm2, %v2239_v56  ;;  %v2190_v9 = vmul.f32 0.6931472, %v3160_v57  ;;  %3169 = vlog2.f32 %v2128_v60  ;;  %v2125_v61 = vpop.xlane.xlu0 %2124 }
 0x399   : > { %v2242_v19 = vsub.f32 %v3868_v24, %v2192_v54  ;;  %3171 = vlog2.f32 %v2125_v61 }
 0x39a   : > { %v3162_v55 = vpop.eup %3161  ;;  %v2241_v0 = vsub.f32 %v3862_v23, %v2190_v9 }
 0x39b   : > { %v3164_v45 = vpop.eup %3163  ;;  %2274 = vst.msk [vmem:[%s3435_s24 + $0x68] sm:$0xff] %vm1876_vm2, %v2242_v19  ;;  %v2196_v58 = vmul.f32 0.6931472, %v3162_v55  ;;  %v2134_v5 = vpop.xlane.xlu1 %2133 }
 0x39c   : > { %2273 = vst.msk [vmem:[%s3435_s24 + $0x60] sm:$0xff] %vm1876_vm2, %v2241_v0  ;;  %v2194_v6 = vmul.f32 0.6931472, %v3164_v45  ;;  %3173 = vlog2.f32 %v2134_v5  ;;  %v2131_v10 = vpop.xlane.xlu0 %2130 }
 0x39d   : > { %v2244_v8 = vsub.f32 %v3878_v12, %v2196_v58  ;;  %3175 = vlog2.f32 %v2131_v10 }
 0x39e   : > { %v3166_v24 = vpop.eup %3165  ;;  %v2243_v7 = vsub.f32 %v3872_v16, %v2194_v6 }
 0x39f   : > { %v3168_v26 = vpop.eup %3167  ;;  %2276 = vst.msk [vmem:[%s3435_s24 + $0x78] sm:$0xff] %vm1876_vm2, %v2244_v8  ;;  %v2200_v23 = vmul.f32 0.6931472, %v3166_v24  ;;  %v2140_v13 = vpop.xlane.xlu1 %2139 }
 0x3a0   : > { %2275 = vst.msk [vmem:[%s3435_s24 + $0x70] sm:$0xff] %vm1876_vm2, %v2243_v7  ;;  %v2198_v14 = vmul.f32 0.6931472, %v3168_v26  ;;  %3177 = vlog2.f32 %v2140_v13  ;;  %v2137_v18 = vpop.xlane.xlu0 %2136 }
 0x3a1   : > { %v2246_v20 = vsub.f32 %v3888_v25, %v2200_v23  ;;  %3179 = vlog2.f32 %v2137_v18 }
 0x3a2   : > { %v3170_v12 = vpop.eup %3169  ;;  %v2245_v22 = vsub.f32 %v3882_v28, %v2198_v14 }
 0x3a3   : > { %v3172_v15 = vpop.eup %3171  ;;  %2278 = vst.msk [vmem:[%s3435_s24 + $0x88] sm:$0xff] %vm1876_vm2, %v2246_v20  ;;  %v2204_v16 = vmul.f32 0.6931472, %v3170_v12  ;;  %v2146_v4 = vpop.xlane.xlu1 %2145 }
 0x3a4   : > { %2277 = vst.msk [vmem:[%s3435_s24 + $0x80] sm:$0xff] %vm1876_vm2, %v2245_v22  ;;  %v2202_v29 = vmul.f32 0.6931472, %v3172_v15  ;;  %3181 = vlog2.f32 %v2146_v4  ;;  %v2143_v30 = vpop.xlane.xlu0 %2142 }
 0x3a5   : > { %v2248_v33 = vsub.f32 %v3898_v38, %v2204_v16  ;;  %3183 = vlog2.f32 %v2143_v30 }
 0x3a6   : > { %v3174_v25 = vpop.eup %3173  ;;  %v2247_v40 = vsub.f32 %v3892_v41, %v2202_v29 }
 0x3a7   : > { %v3176_v35 = vpop.eup %3175  ;;  %2280 = vst.msk [vmem:[%s3435_s24 + $0x98] sm:$0xff] %vm1876_vm2, %v2248_v33  ;;  %v2208_v28 = vmul.f32 0.6931472, %v3174_v25  ;;  %v2152_v1 = vpop.xlane.xlu1 %2151 }
 0x3a8   : > { %2279 = vst.msk [vmem:[%s3435_s24 + $0x90] sm:$0xff] %vm1876_vm2, %v2247_v40  ;;  %v2206_v36 = vmul.f32 0.6931472, %v3176_v35  ;;  %3185 = vlog2.f32 %v2152_v1  ;;  %v2149_v39 = vpop.xlane.xlu0 %2148 }
 0x3a9   : > { %v2250_v21 = vsub.f32 %v3908_v50, %v2208_v28  ;;  %3187 = vlog2.f32 %v2149_v39 }
 0x3aa   : > { %v3178_v38 = vpop.eup %3177  ;;  %v2249_v42 = vsub.f32 %v3902_v53, %v2206_v36 }
 0x3ab   : > { %v3180_v31 = vpop.eup %3179  ;;  %2282 = vst.msk [vmem:[%s3435_s24 + $0xa8] sm:$0xff] %vm1876_vm2, %v2250_v21  ;;  %v2212_v41 = vmul.f32 0.6931472, %v3178_v38  ;;  %v2158_v52 = vpop.xlane.xlu1 %2157 }
 0x3ac   : > { %2281 = vst.msk [vmem:[%s3435_s24 + $0xa0] sm:$0xff] %vm1876_vm2, %v2249_v42  ;;  %v2210_v46 = vmul.f32 0.6931472, %v3180_v31  ;;  %3189 = vlog2.f32 %v2158_v52  ;;  %v2155_v37 = vpop.xlane.xlu0 %2154 }
 0x3ad   : > { %v2252_v44 = vsub.f32 %v3918_v62, %v2212_v41  ;;  %3191 = vlog2.f32 %v2155_v37 }
 0x3ae   : > { %v3182_v50 = vpop.eup %3181  ;;  %v2251_v49 = vsub.f32 %v3912_v2, %v2210_v46 }
 0x3af   : > { %v3184_v53 = vpop.eup %3183  ;;  %2284 = vst.msk [vmem:[%s3435_s24 + $0xb8] sm:$0xff] %vm1876_vm2, %v2252_v44  ;;  %v2216_v51 = vmul.f32 0.6931472, %v3182_v50  ;;  %v2164_v34 = vpop.xlane.xlu1 %2163 }
 0x3b0   : > { %2283 = vst.msk [vmem:[%s3435_s24 + $0xb0] sm:$0xff] %vm1876_vm2, %v2251_v49  ;;  %v2214_v48 = vmul.f32 0.6931472, %v3184_v53  ;;  %3193 = vlog2.f32 %v2164_v34  ;;  %v2161_v3 = vpop.xlane.xlu0 %2160 }
 0x3b1   : > { %v2254_v62 = vsub.f32 %v3928_v11, %v2216_v51  ;;  %3195 = vlog2.f32 %v2161_v3 }
 0x3b2   : > { %v3186_v56 = vpop.eup %3185  ;;  %v2253_v57 = vsub.f32 %v3922_v17, %v2214_v48 }
 0x3b3   : > { %v3188_v2 = vpop.eup %3187  ;;  %2286 = vst.msk [vmem:[%s3435_s24 + $0xc8] sm:$0xff] %vm1876_vm2, %v2254_v62  ;;  %v2220_v54 = vmul.f32 0.6931472, %v3186_v56 }
 0x3b4   : > { %2285 = vst.msk [vmem:[%s3435_s24 + $0xc0] sm:$0xff] %vm1876_vm2, %v2253_v57  ;;  %v2218_v60 = vmul.f32 0.6931472, %v3188_v2 }
 0x3b5   : > { %v2256_v9 = vsub.f32 %v3938_v27, %v2220_v54 }
 0x3b6   : > { %v3190_v61 = vpop.eup %3189  ;;  %v2255_v19 = vsub.f32 %v3932_v32, %v2218_v60 }
 0x3b7   : > { %v3192_v11 = vpop.eup %3191  ;;  %2288 = vst.msk [vmem:[%s3435_s24 + $0xd8] sm:$0xff] %vm1876_vm2, %v2256_v9  ;;  %v2224_v17 = vmul.f32 0.6931472, %v3190_v61 }
 0x3b8   : > { %2287 = vst.msk [vmem:[%s3435_s24 + $0xd0] sm:$0xff] %vm1876_vm2, %v2255_v19  ;;  %v2222_v55 = vmul.f32 0.6931472, %v3192_v11 }
 0x3b9   : > { %v2258_v0 = vsub.f32 %v3948_v43, %v2224_v17 }
 0x3ba   : > { %v3194_v45 = vpop.eup %3193  ;;  %v2257_v58 = vsub.f32 %v3942_v47, %v2222_v55 }
 0x3bb   : > { %v3196_v5 = vpop.eup %3195  ;;  %2290 = vst.msk [vmem:[%s3435_s24 + $0xe8] sm:$0xff] %vm1876_vm2, %v2258_v0  ;;  %v2228_v27 = vmul.f32 0.6931472, %v3194_v45 }
 0x3bc   : > { %2289 = vst.msk [vmem:[%s3435_s24 + $0xe0] sm:$0xff] %vm1876_vm2, %v2257_v58  ;;  %v2226_v32 = vmul.f32 0.6931472, %v3196_v5 }
 0x3bd   : > { %v2260_v6 = vsub.f32 %v3958_v59, %v2228_v27 }
 0x3be   : > { %v2259_v10 = vsub.f32 %v3952_v63, %v2226_v32 }
 0x3bf   : > { %2292 = vst.msk [vmem:[%s3435_s24 + $0xf8] sm:$0xff] %vm1876_vm2, %v2260_v6 }
 0x3c0   : > { %2291 = vst.msk [vmem:[%s3435_s24 + $0xf0] sm:$0xff] %vm1876_vm2, %v2259_v10 }
 0x3c1 PF: > { %s16_s27 = sadd.s32 1, %s3251_s27   ;;  %s4094_s21 = smov %s3231_s22 }
 0x3c2   : > { %p13_p0 = scmp.ge.s32.totalorder %s16_s27, 6   ;;  %s4095_s22 = smov %s3340_s10 }
 0x3c3   : > { %s4096_s23 = smov %s3243_s25  ;;  %s4097_s24 = smov %s3247_s26 }
 0x3c4   : > { %s4098_s25 = smov %s4101_s28  ;;  %s4099_s26 = smov %s4105_s29 }
 0x3c5   :  { %15 = sbr.rel (!%p13_p0) target bundleno = 4 (0x4), region = 131 }

// kernel: graphconv_net_forward.2
= control target key start
LH: loop header
LB: loop body
LE: loop exit
PB: predicated region body
PF: predicated region fallthrough
CT: control target
= control target key end

     0   :  { %s3025_s21 = smov 0   ;;  %s3027_s22 = smov 0   ;;  %s3515_s0 = inlined_call_operand.vmem [shape: bf16[512,512], index: 0, kind: input, shape index: {}]   ;;  %s3516_s1 = inlined_call_operand.vmem [shape: bf16[512,32], index: 1, kind: input, shape index: {}, may-alias: {1,2}]   ;;  %s3517_s2 = inlined_call_operand.vmem [shape: bf16[512,32], index: 2, kind: input, shape index: {}, may-alias: {1,2}]   ;;  %s3518_s3 = inlined_call_operand.vmem [shape: f32[32,16], index: 3, kind: input, shape index: {}]   ;;  %s3519_s4 = inlined_call_operand.vmem [shape: f32[32,16], index: 4, kind: input, shape index: {}]   ;;  %s3520_s5 = inlined_call_operand.vmem [shape: f32[1,16], index: 5, kind: input, shape index: {}]   ;;  %s3521_s6 = inlined_call_operand.vmem [shape: bf16[512,16], index: 6, kind: output, shape index: {}]  }
   0x1   :  { %s3029_s23 = smov 0   ;;  %s3031_s24 = smov 0  }
   0x2   :  { %s3033_s25 = smov 0   ;;  %s3035_s26 = smov 0  }
   0x3   :  { %s3037_s27 = smov 0  }
   0x4 LB: > { %s25_s28 = sadd.s32 1, %s2979_s25  ;;  %s28_s29 = sadd.s32 1, %s2983_s26  ;;  %s2987_s27 = sphi %s3037_s27, %s16_s27   ;;  %s2983_s26 = sphi %s3035_s26, %s3527_s26   ;;  %s2979_s25 = sphi %s3033_s25, %s3526_s25   ;;  %s2975_s24 = sphi %s3031_s24, %s3525_s24   ;;  %s2971_s23 = sphi %s3029_s23, %s3524_s23   ;;  %s2967_s22 = sphi %s3027_s22, %s3523_s22   ;;  %s2963_s21 = sphi %s3025_s21, %s3522_s21  }
   0x5   : > { %p26_p0 = scmp.ge.s32.totalorder %s25_s28, 2  ;;  %p44_p1 = scmp.ne.s32.totalorder %s2967_s22, %s2963_s21 }
   0x6   : > { %p45_p2 = scmp.eq.s32.totalorder %s2987_s27, 0  ;;  %s37_s9 = sadd.s32 1, %s2967_s22 }
   0x7   : > { %s3529_s28 = smov (%p26_p0, %s25_s28), 0  ;;  %s3531_s29 = smov (!%p26_p0, %s28_s29), %s2983_s26 }
   0x8   : > { %p46_p3 = por %p45_p2, %p44_p1  ;;  %p30_p4 = scmp.ge.s32.totalorder %s3531_s29, 2 }
   0x9   : > { %s33_s30 = ssub.s32 %s2979_s25, %s3529_s28  ;;  %p2177_p6 = scmp.ge.s32.totalorder %s2987_s27, 4 }
   0xa   : > { %s3533_s29 = smov (%p30_p4, %s3531_s29), 0 }
   0xb   : > { %s32_s7 = ssub.s32 %s2983_s26, %s3533_s29  ;;  %220 = sbr.rel (%p2177_p6) target bundleno = 41 (0x29), region = 28 }
   0xc   : > { %s34_s8 = sor.u32 %s33_s30, %s32_s7 }
   0xd   : > { %p35_p5 = scmp.eq.s32.totalorder %s34_s8, 0 }
   0xf   : > { %s3076_s10 = scalar_select %p35_p5, %s2967_s22, %s37_s9  }
  0x12   : > { %223 = sbr.rel (!%p46_p3) target bundleno = 41 (0x29), region = 32  ;;  %s225_s11 = sand.u32 (%p46_p3), 1, %s2967_s22  }
  0x13   : > { %s2180_s12 = sshll.u32 (%p46_p3), %s2979_s25, 1  ;;  %s2178_s13 = sshll.u32 (%p46_p3), %s225_s11, 8 }
  0x14   : > { %s2340_s14 = sshll.u32 (%p46_p3), %s2983_s26, 7  ;;  %s3090_s20 = scalar_lea.vmem (%p46_p3), [#allocation3], %s2178_s13 }
  0x15   : > { %s231_s15 = sadd.s32 (%p46_p3), %s2340_s14, %s2180_s12 }
  0x16   : > { %s2182_s16 = sshll.u32 (%p46_p3), %s231_s15, 2 }
  0x17   : > { %s3085_s19 = scalar_lea.vmem (%p46_p3), %s3515_s0, %s2182_s16 }
  0x18   : > { %v323_v0 = vld [vmem:[%s3085_s19] sm:$0xff] (%p46_p3)  ;;  %v325_v1 = vld [vmem:[%s3085_s19 + $0x10] sm:$0xff] (%p46_p3) }
  0x19   : > { %v327_v2 = vld [vmem:[%s3085_s19 + $0x20] sm:$0xff]  ;;  %324 = vst [vmem:[%s3090_s20] sm:$0xff] %v323_v0  ;;  %326 = vst [vmem:[%s3090_s20 + $0x8] sm:$0xff] %v325_v1  ;;  %v329_v3 = vld [vmem:[%s3085_s19 + $0x30] sm:$0xff] }
  0x1a   : > { %328 = vst [vmem:[%s3090_s20 + $0x10] sm:$0xff] %v327_v2  ;;  %v331_v4 = vld [vmem:[%s3085_s19 + $0x40] sm:$0xff]  ;;  %v333_v5 = vld [vmem:[%s3085_s19 + $0x50] sm:$0xff]  ;;  %330 = vst [vmem:[%s3090_s20 + $0x18] sm:$0xff] %v329_v3 }
  0x1b   : > { %332 = vst [vmem:[%s3090_s20 + $0x20] sm:$0xff] %v331_v4  ;;  %334 = vst [vmem:[%s3090_s20 + $0x28] sm:$0xff] %v333_v5  ;;  %v335_v6 = vld [vmem:[%s3085_s19 + $0x60] sm:$0xff]  ;;  %v337_v7 = vld [vmem:[%s3085_s19 + $0x70] sm:$0xff] }
  0x1c   : > { %v339_v8 = vld [vmem:[%s3085_s19 + $0x80] sm:$0xff]  ;;  %336 = vst [vmem:[%s3090_s20 + $0x30] sm:$0xff] %v335_v6  ;;  %338 = vst [vmem:[%s3090_s20 + $0x38] sm:$0xff] %v337_v7  ;;  %v341_v9 = vld [vmem:[%s3085_s19 + $0x90] sm:$0xff] }
  0x1d   : > { %340 = vst [vmem:[%s3090_s20 + $0x40] sm:$0xff] %v339_v8  ;;  %v343_v10 = vld [vmem:[%s3085_s19 + $0xa0] sm:$0xff]  ;;  %v345_v11 = vld [vmem:[%s3085_s19 + $0xb0] sm:$0xff]  ;;  %342 = vst [vmem:[%s3090_s20 + $0x48] sm:$0xff] %v341_v9 }
  0x1e   : > { %344 = vst [vmem:[%s3090_s20 + $0x50] sm:$0xff] %v343_v10  ;;  %346 = vst [vmem:[%s3090_s20 + $0x58] sm:$0xff] %v345_v11  ;;  %v347_v12 = vld [vmem:[%s3085_s19 + $0xc0] sm:$0xff]  ;;  %v349_v13 = vld [vmem:[%s3085_s19 + $0xd0] sm:$0xff] }
  0x1f   : > { %v351_v14 = vld [vmem:[%s3085_s19 + $0xe0] sm:$0xff]  ;;  %348 = vst [vmem:[%s3090_s20 + $0x60] sm:$0xff] %v347_v12  ;;  %350 = vst [vmem:[%s3090_s20 + $0x68] sm:$0xff] %v349_v13  ;;  %v353_v15 = vld [vmem:[%s3085_s19 + $0xf0] sm:$0xff] }
  0x20   : > { %352 = vst [vmem:[%s3090_s20 + $0x70] sm:$0xff] %v351_v14  ;;  %v355_v16 = vld [vmem:[%s3085_s19 + $0x100] sm:$0xff]  ;;  %v357_v17 = vld [vmem:[%s3085_s19 + $0x110] sm:$0xff]  ;;  %354 = vst [vmem:[%s3090_s20 + $0x78] sm:$0xff] %v353_v15 }
  0x21   : > { %356 = vst [vmem:[%s3090_s20 + $0x80] sm:$0xff] %v355_v16  ;;  %358 = vst [vmem:[%s3090_s20 + $0x88] sm:$0xff] %v357_v17  ;;  %v359_v18 = vld [vmem:[%s3085_s19 + $0x120] sm:$0xff]  ;;  %v361_v19 = vld [vmem:[%s3085_s19 + $0x130] sm:$0xff] }
  0x22   : > { %v363_v20 = vld [vmem:[%s3085_s19 + $0x140] sm:$0xff]  ;;  %360 = vst [vmem:[%s3090_s20 + $0x90] sm:$0xff] %v359_v18  ;;  %362 = vst [vmem:[%s3090_s20 + $0x98] sm:$0xff] %v361_v19  ;;  %v365_v21 = vld [vmem:[%s3085_s19 + $0x150] sm:$0xff] }
  0x23   : > { %364 = vst [vmem:[%s3090_s20 + $0xa0] sm:$0xff] %v363_v20  ;;  %v367_v22 = vld [vmem:[%s3085_s19 + $0x160] sm:$0xff]  ;;  %v369_v23 = vld [vmem:[%s3085_s19 + $0x170] sm:$0xff]  ;;  %366 = vst [vmem:[%s3090_s20 + $0xa8] sm:$0xff] %v365_v21 }
  0x24   : > { %368 = vst [vmem:[%s3090_s20 + $0xb0] sm:$0xff] %v367_v22  ;;  %370 = vst [vmem:[%s3090_s20 + $0xb8] sm:$0xff] %v369_v23  ;;  %v371_v24 = vld [vmem:[%s3085_s19 + $0x180] sm:$0xff]  ;;  %v373_v25 = vld [vmem:[%s3085_s19 + $0x190] sm:$0xff] }
  0x25   : > { %v375_v26 = vld [vmem:[%s3085_s19 + $0x1a0] sm:$0xff]  ;;  %372 = vst [vmem:[%s3090_s20 + $0xc0] sm:$0xff] %v371_v24  ;;  %374 = vst [vmem:[%s3090_s20 + $0xc8] sm:$0xff] %v373_v25  ;;  %v377_v27 = vld [vmem:[%s3085_s19 + $0x1b0] sm:$0xff] }
  0x26   : > { %376 = vst [vmem:[%s3090_s20 + $0xd0] sm:$0xff] %v375_v26  ;;  %v379_v28 = vld [vmem:[%s3085_s19 + $0x1c0] sm:$0xff]  ;;  %v381_v29 = vld [vmem:[%s3085_s19 + $0x1d0] sm:$0xff]  ;;  %378 = vst [vmem:[%s3090_s20 + $0xd8] sm:$0xff] %v377_v27 }
  0x27   : > { %380 = vst [vmem:[%s3090_s20 + $0xe0] sm:$0xff] %v379_v28  ;;  %382 = vst [vmem:[%s3090_s20 + $0xe8] sm:$0xff] %v381_v29  ;;  %v383_v30 = vld [vmem:[%s3085_s19 + $0x1e0] sm:$0xff]  ;;  %v385_v31 = vld [vmem:[%s3085_s19 + $0x1f0] sm:$0xff] }
  0x28   : > { %384 = vst [vmem:[%s3090_s20 + $0xf0] sm:$0xff] %v383_v30  ;;  %386 = vst [vmem:[%s3090_s20 + $0xf8] sm:$0xff] %v385_v31 }
  0x29 PF: > { %p2183_p7 = scmp.ge.s32.totalorder %s2987_s27, 1  ;;  %p409_p8 = scmp.lt.s32.totalorder %s2987_s27, 5 }
  0x2b   : > { %p410_p9 = pnand %p2183_p7, %p409_p8 }
  0x2c   : > { %s416_s30 = sand.u32 (!%p410_p9), 1, %s2963_s21   ;;  %s2185_s7 = sshll.u32 (!%p410_p9), %s2971_s23, 5 }
  0x2d   : > { %413 = sbr.rel (%p410_p9) target bundleno = 649 (0x289), region = 78  ;;  %s2184_s8 = sshll.u32 (!%p410_p9), %s416_s30, 8 }
  0x2e   : > { %p458_p10 = scmp.lt.s32.totalorder (!%p410_p9), %s2185_s7, 63  ;;  %s2187_s9 = sshll.u32 (!%p410_p9), %s2975_s24, 5 }
  0x2f   : > { %p464_p11 = scmp.lt.s32.totalorder (!%p410_p9), %s2187_s9, 63  ;;  %s3173_s24 = scalar_lea.vmem (!%p410_p9), [#allocation3], %s2184_s8 }
  0x30   : > { %p2191_p12 = scmp.ne.s32.totalorder (!%p410_p9), %s2971_s23, 0 }
  0x34   : > { %s3535_s7 = smov (!%p458_p10, %s2185_s7), 63  ;;  %s3537_s9 = smov (!%p464_p11, %s2187_s9), 63 }
  0x35   : > { %s2186_s11 = sshll.u32 %s3535_s7, 2  ;;  %s2188_s15 = sshll.u32 %s3537_s9, 2  ;;  %vm480_vm0 = vcmask (!%p2191_p12), 261120   ;;  %v2989_v32 = vmov (!%p2191_p12), 0.0  }
  0x36   : > { %s3161_s14 = scalar_lea.vmem %s3516_s1, %s2186_s11  ;;  %s3166_s18 = scalar_lea.vmem %s3517_s2, %s2188_s15  ;;  %481 = vst.msk [vmem:[#allocation2] sm:$0xff] (!%p2191_p12), %vm480_vm0, %v2989_v32  ;;  %482 = vst.msk [vmem:[#allocation2 + $0x8] sm:$0xff] (!%p2191_p12), %vm480_vm0, %v2989_v32 }
  0x37   : > { %s3171_s20 = scalar_lea.vmem %s3521_s6, %s2188_s15  ;;  %479 = sbr.rel (%p2191_p12) target bundleno = 70 (0x46), region = 86  ;;  %483 = vst.msk [vmem:[#allocation2 + $0x10] sm:$0xff] (!%p2191_p12), %vm480_vm0, %v2989_v32  ;;  %484 = vst.msk [vmem:[#allocation2 + $0x18] sm:$0xff] (!%p2191_p12), %vm480_vm0, %v2989_v32 }
  0x38   : > { %485 = vst.msk [vmem:[#allocation2 + $0x20] sm:$0xff] (!%p2191_p12), %vm480_vm0, %v2989_v32  ;;  %486 = vst.msk [vmem:[#allocation2 + $0x28] sm:$0xff] (!%p2191_p12), %vm480_vm0, %v2989_v32 }
  0x39   : > { %487 = vst.msk [vmem:[#allocation2 + $0x30] sm:$0xff] (!%p2191_p12), %vm480_vm0, %v2989_v32  ;;  %488 = vst.msk [vmem:[#allocation2 + $0x38] sm:$0xff] (!%p2191_p12), %vm480_vm0, %v2989_v32 }
  0x3a   : > { %489 = vst.msk [vmem:[#allocation2 + $0x40] sm:$0xff] (!%p2191_p12), %vm480_vm0, %v2989_v32  ;;  %490 = vst.msk [vmem:[#allocation2 + $0x48] sm:$0xff] (!%p2191_p12), %vm480_vm0, %v2989_v32 }
  0x3b   : > { %491 = vst.msk [vmem:[#allocation2 + $0x50] sm:$0xff] (!%p2191_p12), %vm480_vm0, %v2989_v32  ;;  %492 = vst.msk [vmem:[#allocation2 + $0x58] sm:$0xff] (!%p2191_p12), %vm480_vm0, %v2989_v32 }
  0x3c   : > { %493 = vst.msk [vmem:[#allocation2 + $0x60] sm:$0xff] (!%p2191_p12), %vm480_vm0, %v2989_v32  ;;  %494 = vst.msk [vmem:[#allocation2 + $0x68] sm:$0xff] (!%p2191_p12), %vm480_vm0, %v2989_v32 }
  0x3d   : > { %495 = vst.msk [vmem:[#allocation2 + $0x70] sm:$0xff] (!%p2191_p12), %vm480_vm0, %v2989_v32  ;;  %496 = vst.msk [vmem:[#allocation2 + $0x78] sm:$0xff] (!%p2191_p12), %vm480_vm0, %v2989_v32 }
  0x3e   : > { %497 = vst.msk [vmem:[#allocation2 + $0x80] sm:$0xff] %vm480_vm0, %v2989_v32  ;;  %498 = vst.msk [vmem:[#allocation2 + $0x88] sm:$0xff] %vm480_vm0, %v2989_v32 }
  0x3f   : > { %499 = vst.msk [vmem:[#allocation2 + $0x90] sm:$0xff] %vm480_vm0, %v2989_v32  ;;  %500 = vst.msk [vmem:[#allocation2 + $0x98] sm:$0xff] %vm480_vm0, %v2989_v32 }
  0x40   : > { %501 = vst.msk [vmem:[#allocation2 + $0xa0] sm:$0xff] %vm480_vm0, %v2989_v32  ;;  %502 = vst.msk [vmem:[#allocation2 + $0xa8] sm:$0xff] %vm480_vm0, %v2989_v32 }
  0x41   : > { %503 = vst.msk [vmem:[#allocation2 + $0xb0] sm:$0xff] %vm480_vm0, %v2989_v32  ;;  %504 = vst.msk [vmem:[#allocation2 + $0xb8] sm:$0xff] %vm480_vm0, %v2989_v32 }
  0x42   : > { %505 = vst.msk [vmem:[#allocation2 + $0xc0] sm:$0xff] %vm480_vm0, %v2989_v32  ;;  %506 = vst.msk [vmem:[#allocation2 + $0xc8] sm:$0xff] %vm480_vm0, %v2989_v32 }
  0x43   : > { %507 = vst.msk [vmem:[#allocation2 + $0xd0] sm:$0xff] %vm480_vm0, %v2989_v32  ;;  %508 = vst.msk [vmem:[#allocation2 + $0xd8] sm:$0xff] %vm480_vm0, %v2989_v32 }
  0x44   : > { %509 = vst.msk [vmem:[#allocation2 + $0xe0] sm:$0xff] %vm480_vm0, %v2989_v32  ;;  %510 = vst.msk [vmem:[#allocation2 + $0xe8] sm:$0xff] %vm480_vm0, %v2989_v32 }
  0x45   : > { %511 = vst.msk [vmem:[#allocation2 + $0xf0] sm:$0xff] %vm480_vm0, %v2989_v32  ;;  %512 = vst.msk [vmem:[#allocation2 + $0xf8] sm:$0xff] %vm480_vm0, %v2989_v32 }
  0x46 PF: > { %v2869_v33 = vld [vmem:[%s3161_s14 + $0x40] sm:$0xff]   ;;  %v2871_v35 = vld [vmem:[%s3161_s14 + $0x48] sm:$0xff]   ;;  %v2873_v37 = vld [vmem:[%s3161_s14 + $0x50] sm:$0xff]   ;;  %vm1058_vm1 = vcmask 261120   ;;  %p2240_p13 = scmp.ne.s32.totalorder %s2971_s23, 1 }
  0x47   : > { %v2870_v34 = vld [vmem:[%s3161_s14] sm:$0xff]   ;;  %2452 = vmatprep.subr.bf16.mxu0 %v2869_v33  ;;  %2764 = vmatprep.subr.bf16.mxu1 %v2869_v33  ;;  %v2872_v36 = vld [vmem:[%s3161_s14 + $0x8] sm:$0xff]   ;;  %v2874_v38 = vld [vmem:[%s3161_s14 + $0x10] sm:$0xff]   ;;  %vm2040_vm2 = vcmask (!%p2240_p13), 125952  }
  0x48   : > { %2453 = vmatpush3.bf16.msra.mxu0 %v2870_v34  ;;  %2772 = vmatpush3.bf16.msra.mxu1 %v2870_v34  ;;  %v2875_v39 = vld [vmem:[%s3161_s14 + $0x58] sm:$0xff]   ;;  %v2877_v41 = vld [vmem:[%s3161_s14 + $0x60] sm:$0xff]   ;;  %v2879_v43 = vld [vmem:[%s3161_s14 + $0x68] sm:$0xff]  }
  0x49   : > { %2454 = vmatprep.subr.bf16.mxu0 %v2871_v35  ;;  %2765 = vmatprep.subr.bf16.mxu1 %v2871_v35  ;;  %v2876_v40 = vld [vmem:[%s3161_s14 + $0x18] sm:$0xff]   ;;  %v2878_v42 = vld [vmem:[%s3161_s14 + $0x20] sm:$0xff]   ;;  %v2880_v46 = vld [vmem:[%s3161_s14 + $0x28] sm:$0xff]  }
  0x4a   : > { %v2887_v44 = vld [vmem:[%s3173_s24 + $0x4] ss:$8 sps:$4 sm:$0xff]   ;;  %v2881_v47 = vld [vmem:[%s3161_s14 + $0x70] sm:$0xff]   ;;  %v2883_v49 = vld [vmem:[%s3161_s14 + $0x78] sm:$0xff]  }
  0x4b   : > { %v2890_v45 = vld [vmem:[%s3173_s24 + $0x84] ss:$8 sps:$4 sm:$0xff]   ;;  %897 = vmatprep.mubr.bf16.mxu0 %v2887_v44  ;;  %v2882_v48 = vld [vmem:[%s3161_s14 + $0x30] sm:$0xff]   ;;  %v2884_v50 = vld [vmem:[%s3161_s14 + $0x38] sm:$0xff]  }
  0x4c   : > { %2455 = vmatpush3.bf16.msra.mxu0 %v2872_v36  ;;  %2773 = vmatpush3.bf16.msra.mxu1 %v2872_v36  ;;  %v2885_v51 = vld [vmem:[%s3173_s24] ss:$8 sps:$4 sm:$0xff]   ;;  %v2891_v53 = vld [vmem:[%s3173_s24 + $0x14] ss:$8 sps:$4 sm:$0xff]   ;;  %v2895_v55 = vld [vmem:[%s3173_s24 + $0x10] ss:$8 sps:$4 sm:$0xff]  }
  0x4d   : > { %2456 = vmatprep.subr.bf16.mxu0 %v2873_v37  ;;  %2766 = vmatprep.subr.bf16.mxu1 %v2873_v37  ;;  %v2888_v52 = vld [vmem:[%s3173_s24 + $0x80] ss:$8 sps:$4 sm:$0xff]   ;;  %v2893_v54 = vld [vmem:[%s3173_s24 + $0x94] ss:$8 sps:$4 sm:$0xff]   ;;  %v2896_v56 = vld [vmem:[%s3173_s24 + $0x90] ss:$8 sps:$4 sm:$0xff]  }
  0x4e   : > { %961 = vmatprep.mubr.bf16.mxu1 %v2890_v45  ;;  %v2897_v57 = vld [vmem:[%s3173_s24 + $0x24] ss:$8 sps:$4 sm:$0xff]   ;;  %v2901_v59 = vld [vmem:[%s3173_s24 + $0x20] ss:$8 sps:$4 sm:$0xff]   ;;  %v2903_v61 = vld [vmem:[%s3173_s24 + $0x34] ss:$8 sps:$4 sm:$0xff]  }
  0x4f   : > { %v2899_v58 = vld [vmem:[%s3173_s24 + $0xa4] ss:$8 sps:$4 sm:$0xff]   ;;  %v2902_v60 = vld [vmem:[%s3173_s24 + $0xa0] ss:$8 sps:$4 sm:$0xff]   ;;  %v2905_v62 = vld [vmem:[%s3173_s24 + $0xb4] ss:$8 sps:$4 sm:$0xff]  }
  0x50   : > { %2457 = vmatpush3.bf16.msra.mxu0 %v2874_v38  ;;  %2774 = vmatpush3.bf16.msra.mxu1 %v2874_v38  ;;  %v2907_v63 = vld [vmem:[%s3173_s24 + $0x30] ss:$8 sps:$4 sm:$0xff]   ;;  %v2909_v1 = vld [vmem:[%s3173_s24 + $0x44] ss:$8 sps:$4 sm:$0xff]   ;;  %v2913_v3 = vld [vmem:[%s3173_s24 + $0x40] ss:$8 sps:$4 sm:$0xff]  }
  0x51   : > { %2458 = vmatprep.subr.bf16.mxu0 %v2875_v39  ;;  %2767 = vmatprep.subr.bf16.mxu1 %v2875_v39  ;;  %v2908_v0 = vld [vmem:[%s3173_s24 + $0xb0] ss:$8 sps:$4 sm:$0xff]   ;;  %v2911_v2 = vld [vmem:[%s3173_s24 + $0xc4] ss:$8 sps:$4 sm:$0xff]   ;;  %v2914_v4 = vld [vmem:[%s3173_s24 + $0xc0] ss:$8 sps:$4 sm:$0xff]  }
  0x52   : > { %v2915_v5 = vld [vmem:[%s3173_s24 + $0x54] ss:$8 sps:$4 sm:$0xff]   ;;  %v2919_v7 = vld [vmem:[%s3173_s24 + $0x50] ss:$8 sps:$4 sm:$0xff]   ;;  %v2921_v9 = vld [vmem:[%s3173_s24 + $0x64] ss:$8 sps:$4 sm:$0xff]  }
  0x53   : > { %v2917_v6 = vld [vmem:[%s3173_s24 + $0xd4] ss:$8 sps:$4 sm:$0xff]   ;;  %v2920_v8 = vld [vmem:[%s3173_s24 + $0xd0] ss:$8 sps:$4 sm:$0xff]   ;;  %v2923_v10 = vld [vmem:[%s3173_s24 + $0xe4] ss:$8 sps:$4 sm:$0xff]  }
  0x54   : > { %2459 = vmatpush3.bf16.msra.mxu0 %v2876_v40  ;;  %2775 = vmatpush3.bf16.msra.mxu1 %v2876_v40  ;;  %v2925_v11 = vld [vmem:[%s3173_s24 + $0x60] ss:$8 sps:$4 sm:$0xff]   ;;  %v2927_v13 = vld [vmem:[%s3173_s24 + $0x74] ss:$8 sps:$4 sm:$0xff]   ;;  %v2931_v15 = vld [vmem:[%s3173_s24 + $0x70] ss:$8 sps:$4 sm:$0xff]  }
  0x55   : > { %2460 = vmatprep.subr.bf16.mxu0 %v2877_v41  ;;  %2768 = vmatprep.subr.bf16.mxu1 %v2877_v41  ;;  %v2926_v12 = vld [vmem:[%s3173_s24 + $0xe0] ss:$8 sps:$4 sm:$0xff]   ;;  %v2929_v14 = vld [vmem:[%s3173_s24 + $0xf4] ss:$8 sps:$4 sm:$0xff]   ;;  %v2932_v16 = vld [vmem:[%s3173_s24 + $0xf0] ss:$8 sps:$4 sm:$0xff]  }
  0x56   : > { %v513_v19 = vld [vmem:[#allocation2] sm:$0xff]  ;;  %v514_v27 = vld [vmem:[#allocation2 + $0x8] sm:$0xff]  ;;  %v515_v39 = vld [vmem:[#allocation2 + $0x10] sm:$0xff] }
  0x57   : > { %v529_v21 = vld [vmem:[#allocation2 + $0x80] sm:$0xff]  ;;  %v530_v29 = vld [vmem:[#allocation2 + $0x88] sm:$0xff]  ;;  %v531_v41 = vld [vmem:[#allocation2 + $0x90] sm:$0xff] }
  0x58   : > { %2461 = vmatpush3.bf16.msra.mxu0 %v2878_v42  ;;  %2776 = vmatpush3.bf16.msra.mxu1 %v2878_v42 }
  0x59   : > { %2462 = vmatprep.subr.bf16.mxu0 %v2879_v43  ;;  %2769 = vmatprep.subr.bf16.mxu1 %v2879_v43 }
  0x5c   : > { %2463 = vmatpush3.bf16.msra.mxu0 %v2880_v46  ;;  %2777 = vmatpush3.bf16.msra.mxu1 %v2880_v46 }
  0x5d   : > { %2464 = vmatprep.subr.bf16.mxu0 %v2881_v47  ;;  %2770 = vmatprep.subr.bf16.mxu1 %v2881_v47  ;;  %v516_v47 = vld [vmem:[#allocation2 + $0x18] sm:$0xff] }
  0x60   : > { %2465 = vmatpush3.bf16.msra.mxu0 %v2882_v48  ;;  %2778 = vmatpush3.bf16.msra.mxu1 %v2882_v48 }
  0x61   : > { %2466 = vmatprep.subr.bf16.mxu0 %v2883_v49  ;;  %2771 = vmatprep.subr.bf16.mxu1 %v2883_v49  ;;  %v532_v49 = vld [vmem:[#allocation2 + $0x98] sm:$0xff] }
  0x64   : > { %2467 = vmatpush3.bf16.msra.mxu0 %v2884_v50  ;;  %2779 = vmatpush3.bf16.msra.mxu1 %v2884_v50 }
  0x67   : > { %898 = vmatmul.mubr.bf16.vlgmr.msra.gmra.mrb[0].mxu0 %v2885_v51  ;;  %962 = vmatmul.mubr.bf16.vlgmr.msra.gmra.mrb[0].mxu1 %v2888_v52 }
  0x68   : > { %905 = vmatprep.mubr.bf16.mxu0 %v2891_v53  ;;  %969 = vmatprep.mubr.bf16.mxu1 %v2893_v54 }
  0x6f   : > { %906 = vmatmul.mubr.bf16.gmra.mrb[4].mxu0 %v2895_v55  ;;  %970 = vmatmul.mubr.bf16.gmra.mrb[4].mxu1 %v2896_v56 }
  0x70   : > { %913 = vmatprep.mubr.bf16.mxu0 %v2897_v57  ;;  %977 = vmatprep.mubr.bf16.mxu1 %v2899_v58 }
  0x77   : > { %914 = vmatmul.mubr.bf16.gmra.mrb[8].mxu0 %v2901_v59  ;;  %978 = vmatmul.mubr.bf16.gmra.mrb[8].mxu1 %v2902_v60  ;;  %v517_v59 = vld [vmem:[#allocation2 + $0x20] sm:$0xff] }
  0x78   : > { %921 = vmatprep.mubr.bf16.mxu0 %v2903_v61  ;;  %985 = vmatprep.mubr.bf16.mxu1 %v2905_v62  ;;  %v533_v61 = vld [vmem:[#allocation2 + $0xa0] sm:$0xff] }
  0x7f   : > { %922 = vmatmul.mubr.bf16.gmra.mrb[12].mxu0 %v2907_v63  ;;  %986 = vmatmul.mubr.bf16.gmra.mrb[12].mxu1 %v2908_v0 }
  0x80   : > { %929 = vmatprep.mubr.bf16.mxu0 %v2909_v1  ;;  %993 = vmatprep.mubr.bf16.mxu1 %v2911_v2 }
  0x87   : > { %930 = vmatmul.mubr.bf16.gmra.mrb[16].mxu0 %v2913_v3  ;;  %994 = vmatmul.mubr.bf16.gmra.mrb[16].mxu1 %v2914_v4  ;;  %v518_v3 = vld [vmem:[#allocation2 + $0x28] sm:$0xff] }
  0x88   : > { %937 = vmatprep.mubr.bf16.mxu0 %v2915_v5  ;;  %1001 = vmatprep.mubr.bf16.mxu1 %v2917_v6  ;;  %v534_v5 = vld [vmem:[#allocation2 + $0xa8] sm:$0xff] }
  0x8f   : > { %938 = vmatmul.mubr.bf16.gmra.mrb[20].mxu0 %v2919_v7  ;;  %1002 = vmatmul.mubr.bf16.gmra.mrb[20].mxu1 %v2920_v8 }
  0x90   : > { %945 = vmatprep.mubr.bf16.mxu0 %v2921_v9  ;;  %1009 = vmatprep.mubr.bf16.mxu1 %v2923_v10 }
  0x97   : > { %946 = vmatmul.mubr.bf16.gmra.mrb[24].mxu0 %v2925_v11  ;;  %1010 = vmatmul.mubr.bf16.gmra.mrb[24].mxu1 %v2926_v12 }
  0x98   : > { %953 = vmatprep.mubr.bf16.mxu0 %v2927_v13  ;;  %1017 = vmatprep.mubr.bf16.mxu1 %v2929_v14 }
  0x9f   : > { %954 = vmatmul.mubr.bf16.gmra.mrb[28].mxu0 %v2931_v15  ;;  %1018 = vmatmul.mubr.bf16.gmra.mrb[28].mxu1 %v2932_v16  ;;  %v519_v15 = vld [vmem:[#allocation2 + $0x30] sm:$0xff] }
 0x13a   : > { %v2468_v17 = vpop.f32.mrb[0].mxu0  ;;  %v2516_v18 = vpop.f32.mrb[0].mxu1 }
 0x13b   : > { %v2469_v20 = vpop.f32.mrb[1].mxu0  ;;  %v2517_v22 = vpop.f32.mrb[1].mxu1 }
 0x13c   : > { %v2470_v23 = vadd.f32 %v2469_v20, %v2468_v17  ;;  %v2518_v24 = vadd.f32 %v2517_v22, %v2516_v18  ;;  %v2471_v25 = vpop.f32.mrb[2].mxu0  ;;  %v2519_v26 = vpop.f32.mrb[2].mxu1  ;;  %v535_v17 = vld [vmem:[#allocation2 + $0xb0] sm:$0xff] }
 0x13d   : > { %v2472_v28 = vpop.f32.mrb[3].mxu0  ;;  %v2520_v30 = vpop.f32.mrb[3].mxu1 }
 0x13e   : > { %v1026_v31 = vadd.f32 %v2470_v23, %v513_v19  ;;  %v1042_v32 = vadd.f32 %v2518_v24, %v529_v21  ;;  %v2473_v33 = vadd.f32 %v2472_v28, %v2471_v25  ;;  %v2521_v34 = vadd.f32 %v2520_v30, %v2519_v26  ;;  %v520_v23 = vld [vmem:[#allocation2 + $0x38] sm:$0xff] }
 0x13f   : > { %v536_v25 = vld [vmem:[#allocation2 + $0xb8] sm:$0xff] }
 0x140   : > { %1059 = vst.msk [vmem:[#allocation2] sm:$0xff] %vm1058_vm1, %v1026_v31  ;;  %1075 = vst.msk [vmem:[#allocation2 + $0x80] sm:$0xff] %vm1058_vm1, %v1042_v32  ;;  %v1027_v35 = vadd.f32 %v2473_v33, %v514_v27  ;;  %v1043_v36 = vadd.f32 %v2521_v34, %v530_v29 }
 0x142   : > { %1060 = vst.msk [vmem:[#allocation2 + $0x8] sm:$0xff] %vm1058_vm1, %v1027_v35  ;;  %1076 = vst.msk [vmem:[#allocation2 + $0x88] sm:$0xff] %vm1058_vm1, %v1043_v36  ;;  %v2474_v37 = vpop.f32.mrb[4].mxu0  ;;  %v2522_v38 = vpop.f32.mrb[4].mxu1  ;;  %v521_v35 = vld [vmem:[#allocation2 + $0x40] sm:$0xff] }
 0x143   : > { %v2475_v40 = vpop.f32.mrb[5].mxu0  ;;  %v2523_v42 = vpop.f32.mrb[5].mxu1 }
 0x144   : > { %v2476_v43 = vadd.f32 %v2475_v40, %v2474_v37  ;;  %v2524_v44 = vadd.f32 %v2523_v42, %v2522_v38  ;;  %v2477_v45 = vpop.f32.mrb[6].mxu0  ;;  %v2525_v46 = vpop.f32.mrb[6].mxu1  ;;  %v537_v37 = vld [vmem:[#allocation2 + $0xc0] sm:$0xff] }
 0x145   : > { %v2478_v48 = vpop.f32.mrb[7].mxu0  ;;  %v2526_v50 = vpop.f32.mrb[7].mxu1 }
 0x146   : > { %v1028_v51 = vadd.f32 %v2476_v43, %v515_v39  ;;  %v1044_v52 = vadd.f32 %v2524_v44, %v531_v41  ;;  %v2479_v53 = vadd.f32 %v2478_v48, %v2477_v45  ;;  %v2527_v54 = vadd.f32 %v2526_v50, %v2525_v46  ;;  %v522_v43 = vld [vmem:[#allocation2 + $0x48] sm:$0xff] }
 0x147   : > { %v538_v45 = vld [vmem:[#allocation2 + $0xc8] sm:$0xff] }
 0x148   : > { %1061 = vst.msk [vmem:[#allocation2 + $0x10] sm:$0xff] %vm1058_vm1, %v1028_v51  ;;  %1077 = vst.msk [vmem:[#allocation2 + $0x90] sm:$0xff] %vm1058_vm1, %v1044_v52  ;;  %v1029_v55 = vadd.f32 %v2479_v53, %v516_v47  ;;  %v1045_v56 = vadd.f32 %v2527_v54, %v532_v49 }
 0x14a   : > { %1062 = vst.msk [vmem:[#allocation2 + $0x18] sm:$0xff] %vm1058_vm1, %v1029_v55  ;;  %1078 = vst.msk [vmem:[#allocation2 + $0x98] sm:$0xff] %vm1058_vm1, %v1045_v56  ;;  %v2480_v57 = vpop.f32.mrb[8].mxu0  ;;  %v2528_v58 = vpop.f32.mrb[8].mxu1  ;;  %v523_v55 = vld [vmem:[#allocation2 + $0x50] sm:$0xff] }
 0x14b   : > { %v2481_v60 = vpop.f32.mrb[9].mxu0  ;;  %v2529_v62 = vpop.f32.mrb[9].mxu1 }
 0x14c   : > { %v2482_v63 = vadd.f32 %v2481_v60, %v2480_v57  ;;  %v2530_v0 = vadd.f32 %v2529_v62, %v2528_v58  ;;  %v2483_v1 = vpop.f32.mrb[10].mxu0  ;;  %v2531_v2 = vpop.f32.mrb[10].mxu1  ;;  %v539_v57 = vld [vmem:[#allocation2 + $0xd0] sm:$0xff] }
 0x14d   : > { %v2484_v4 = vpop.f32.mrb[11].mxu0  ;;  %v2532_v6 = vpop.f32.mrb[11].mxu1 }
 0x14e   : > { %v1030_v7 = vadd.f32 %v2482_v63, %v517_v59  ;;  %v1046_v8 = vadd.f32 %v2530_v0, %v533_v61  ;;  %v2485_v9 = vadd.f32 %v2484_v4, %v2483_v1  ;;  %v2533_v10 = vadd.f32 %v2532_v6, %v2531_v2  ;;  %v524_v63 = vld [vmem:[#allocation2 + $0x58] sm:$0xff] }
 0x14f   : > { %v540_v1 = vld [vmem:[#allocation2 + $0xd8] sm:$0xff] }
 0x150   : > { %1063 = vst.msk [vmem:[#allocation2 + $0x20] sm:$0xff] %vm1058_vm1, %v1030_v7  ;;  %1079 = vst.msk [vmem:[#allocation2 + $0xa0] sm:$0xff] %vm1058_vm1, %v1046_v8  ;;  %v1031_v11 = vadd.f32 %v2485_v9, %v518_v3  ;;  %v1047_v12 = vadd.f32 %v2533_v10, %v534_v5 }
 0x152   : > { %1064 = vst.msk [vmem:[#allocation2 + $0x28] sm:$0xff] %vm1058_vm1, %v1031_v11  ;;  %1080 = vst.msk [vmem:[#allocation2 + $0xa8] sm:$0xff] %vm1058_vm1, %v1047_v12  ;;  %v2486_v13 = vpop.f32.mrb[12].mxu0  ;;  %v2534_v14 = vpop.f32.mrb[12].mxu1  ;;  %v525_v11 = vld [vmem:[#allocation2 + $0x60] sm:$0xff] }
 0x153   : > { %v2487_v16 = vpop.f32.mrb[13].mxu0  ;;  %v2535_v18 = vpop.f32.mrb[13].mxu1 }
 0x154   : > { %v2488_v19 = vadd.f32 %v2487_v16, %v2486_v13  ;;  %v2536_v20 = vadd.f32 %v2535_v18, %v2534_v14  ;;  %v2489_v21 = vpop.f32.mrb[14].mxu0  ;;  %v2537_v22 = vpop.f32.mrb[14].mxu1  ;;  %v541_v13 = vld [vmem:[#allocation2 + $0xe0] sm:$0xff] }
 0x155   : > { %v2490_v24 = vpop.f32.mrb[15].mxu0  ;;  %v2538_v26 = vpop.f32.mrb[15].mxu1 }
 0x156   : > { %v1032_v27 = vadd.f32 %v2488_v19, %v519_v15  ;;  %v1048_v28 = vadd.f32 %v2536_v20, %v535_v17  ;;  %v2491_v29 = vadd.f32 %v2490_v24, %v2489_v21  ;;  %v2539_v30 = vadd.f32 %v2538_v26, %v2537_v22  ;;  %v526_v19 = vld [vmem:[#allocation2 + $0x68] sm:$0xff] }
 0x157   : > { %v542_v21 = vld [vmem:[#allocation2 + $0xe8] sm:$0xff] }
 0x158   : > { %1065 = vst.msk [vmem:[#allocation2 + $0x30] sm:$0xff] %vm1058_vm1, %v1032_v27  ;;  %1081 = vst.msk [vmem:[#allocation2 + $0xb0] sm:$0xff] %vm1058_vm1, %v1048_v28  ;;  %v1033_v31 = vadd.f32 %v2491_v29, %v520_v23  ;;  %v1049_v32 = vadd.f32 %v2539_v30, %v536_v25 }
 0x15a   : > { %1066 = vst.msk [vmem:[#allocation2 + $0x38] sm:$0xff] %vm1058_vm1, %v1033_v31  ;;  %1082 = vst.msk [vmem:[#allocation2 + $0xb8] sm:$0xff] %vm1058_vm1, %v1049_v32  ;;  %v2492_v33 = vpop.f32.mrb[16].mxu0  ;;  %v2540_v34 = vpop.f32.mrb[16].mxu1  ;;  %v527_v31 = vld [vmem:[#allocation2 + $0x70] sm:$0xff] }
 0x15b   : > { %v2493_v36 = vpop.f32.mrb[17].mxu0  ;;  %v2541_v38 = vpop.f32.mrb[17].mxu1 }
 0x15c   : > { %v2494_v39 = vadd.f32 %v2493_v36, %v2492_v33  ;;  %v2542_v40 = vadd.f32 %v2541_v38, %v2540_v34  ;;  %v2495_v41 = vpop.f32.mrb[18].mxu0  ;;  %v2543_v42 = vpop.f32.mrb[18].mxu1  ;;  %v543_v33 = vld [vmem:[#allocation2 + $0xf0] sm:$0xff] }
 0x15d   : > { %v2496_v44 = vpop.f32.mrb[19].mxu0  ;;  %v2544_v46 = vpop.f32.mrb[19].mxu1 }
 0x15e   : > { %v1034_v47 = vadd.f32 %v2494_v39, %v521_v35  ;;  %v1050_v48 = vadd.f32 %v2542_v40, %v537_v37  ;;  %v2497_v49 = vadd.f32 %v2496_v44, %v2495_v41  ;;  %v2545_v50 = vadd.f32 %v2544_v46, %v2543_v42  ;;  %v528_v39 = vld [vmem:[#allocation2 + $0x78] sm:$0xff] }
 0x15f   : > { %v544_v41 = vld [vmem:[#allocation2 + $0xf8] sm:$0xff] }
 0x160   : > { %1067 = vst.msk [vmem:[#allocation2 + $0x40] sm:$0xff] %vm1058_vm1, %v1034_v47  ;;  %1083 = vst.msk [vmem:[#allocation2 + $0xc0] sm:$0xff] %vm1058_vm1, %v1050_v48  ;;  %v1035_v51 = vadd.f32 %v2497_v49, %v522_v43  ;;  %v1051_v52 = vadd.f32 %v2545_v50, %v538_v45  ;;  %v1195_v49 = vld [vmem:[%s3519_s4] sm:$0xff] (!%p2240_p13)  ;;  %v1196_v50 = vld [vmem:[%s3519_s4 + $0x8] sm:$0xff] (!%p2240_p13) }
 0x162   : > { %1068 = vst.msk [vmem:[#allocation2 + $0x48] sm:$0xff] %vm1058_vm1, %v1035_v51  ;;  %1084 = vst.msk [vmem:[#allocation2 + $0xc8] sm:$0xff] %vm1058_vm1, %v1051_v52  ;;  %v2498_v53 = vpop.f32.mrb[20].mxu0  ;;  %v2546_v54 = vpop.f32.mrb[20].mxu1  ;;  %v1191_v51 = vld [vmem:[%s3518_s3] sm:$0xff] (!%p2240_p13)  ;;  %v2748_v52 = vpack.c.bf16 (!%p2240_p13), %v1196_v50, %v1195_v49  ;;  %v2447_v49 = vld [vmem:[%s3166_s18 + $0x58] sm:$0xff] (!%p2240_p13)  }
 0x163   : > { %v2499_v56 = vpop.f32.mrb[21].mxu0  ;;  %v2547_v58 = vpop.f32.mrb[21].mxu1  ;;  %v1115_v50 = vld [vmem:[#allocation2 + $0xa0] sm:$0xff] (!%p2240_p13) }
 0x164   : > { %v2500_v59 = vadd.f32 %v2499_v56, %v2498_v53  ;;  %v2548_v60 = vadd.f32 %v2547_v58, %v2546_v54  ;;  %v2501_v61 = vpop.f32.mrb[22].mxu0  ;;  %v2549_v62 = vpop.f32.mrb[22].mxu1  ;;  %v1192_v53 = vld [vmem:[%s3518_s3 + $0x8] sm:$0xff] (!%p2240_p13)  ;;  %v1197_v54 = vld [vmem:[%s3519_s4 + $0x10] sm:$0xff] (!%p2240_p13)  ;;  %2749 = vmatprep.subr.bf16.mxu1 (!%p2240_p13), %v2748_v52 }
 0x165   : > { %v2502_v0 = vpop.f32.mrb[23].mxu0  ;;  %v2550_v2 = vpop.f32.mrb[23].mxu1  ;;  %v2756_v56 = vpack.c.bf16 (!%p2240_p13), %v1192_v53, %v1191_v51  ;;  %v1193_v58 = vld [vmem:[%s3518_s3 + $0x10] sm:$0xff] (!%p2240_p13)  ;;  %2751 = vmatpush3.bf16.msra.mxu1 (!%p2240_p13), %v2748_v52  ;;  %v2419_v52 = vunpack.c.l.bf16 (!%p2240_p13), %v2447_v49  ;;  %v1116_v53 = vld [vmem:[#allocation2 + $0xa8] sm:$0xff] (!%p2240_p13) }
 0x166   : > { %v1036_v3 = vadd.f32 %v2500_v59, %v523_v55  ;;  %v1052_v4 = vadd.f32 %v2548_v60, %v539_v57  ;;  %v2503_v5 = vadd.f32 %v2502_v0, %v2501_v61  ;;  %v2551_v6 = vadd.f32 %v2550_v2, %v2549_v62  ;;  %v1198_v55 = vld [vmem:[%s3519_s4 + $0x18] sm:$0xff] (!%p2240_p13)  ;;  %v2374_v60 = vld [vmem:[%s3166_s18] sm:$0xff] (!%p2240_p13)   ;;  %v2437_v0 = vld [vmem:[%s3166_s18 + $0x8] sm:$0xff] (!%p2240_p13)  }
 0x167   : > { %v2752_v57 = vpack.c.bf16 (!%p2240_p13), %v1198_v55, %v1197_v54  ;;  %v1194_v59 = vld [vmem:[%s3518_s3 + $0x18] sm:$0xff] (!%p2240_p13)  ;;  %v2375_v62 = vunpack.c.l.bf16 (!%p2240_p13), %v2374_v60  ;;  %2757 = vmatprep.subr.bf16.mxu0 (!%p2240_p13), %v2756_v56  ;;  %v2379_v2 = vunpack.c.l.bf16 (!%p2240_p13), %v2437_v0  ;;  %v2448_v54 = vld [vmem:[%s3166_s18 + $0x60] sm:$0xff] (!%p2240_p13)   ;;  %v1117_v55 = vld [vmem:[#allocation2 + $0xb0] sm:$0xff] (!%p2240_p13) }
 0x168   : > { %1069 = vst.msk [vmem:[#allocation2 + $0x50] sm:$0xff] %vm1058_vm1, %v1036_v3  ;;  %1085 = vst.msk [vmem:[#allocation2 + $0xd0] sm:$0xff] %vm1058_vm1, %v1052_v4  ;;  %v1037_v7 = vadd.f32 %v2503_v5, %v524_v63  ;;  %v1053_v8 = vadd.f32 %v2551_v6, %v540_v1  ;;  %v2760_v61 = vpack.c.bf16 (!%p2240_p13), %v1194_v59, %v1193_v58  ;;  %v1095_v63 = vld [vmem:[#allocation2] sm:$0xff] (!%p2240_p13)  ;;  %2759 = vmatpush3.bf16.msra.mxu0 (!%p2240_p13), %v2756_v56  ;;  %v1096_v3 = vld [vmem:[#allocation2 + $0x8] sm:$0xff] (!%p2240_p13) }
 0x169   : > { %2753 = vmatprep.subr.bf16.mxu1 (!%p2240_p13), %v2752_v57  ;;  %2644 = vmatprep.mubr.msk.f32.mxu1 (!%p2240_p13), %vm1058_vm1, %v2375_v62  ;;  %v2376_v1 = vunpack.c.h.bf16 (!%p2240_p13), %v2374_v60  ;;  %v2438_v4 = vld [vmem:[%s3166_s18 + $0x10] sm:$0xff] (!%p2240_p13)   ;;  %v2380_v6 = vunpack.c.h.bf16 (!%p2240_p13), %v2437_v0  ;;  %v2420_v56 = vunpack.c.h.bf16 (!%p2240_p13), %v2447_v49  ;;  %v1118_v58 = vld [vmem:[#allocation2 + $0xb8] sm:$0xff] (!%p2240_p13)  ;;  %v2449_v59 = vld [vmem:[%s3166_s18 + $0x68] sm:$0xff] (!%p2240_p13)  }
 0x16a   : > { %1070 = vst.msk [vmem:[#allocation2 + $0x58] sm:$0xff] %vm1058_vm1, %v1037_v7  ;;  %1086 = vst.msk [vmem:[#allocation2 + $0xd8] sm:$0xff] %vm1058_vm1, %v1053_v8  ;;  %v2504_v9 = vpop.f32.mrb[24].mxu0  ;;  %v2552_v10 = vpop.f32.mrb[24].mxu1  ;;  %2761 = vmatprep.subr.bf16.mxu0 (!%p2240_p13), %v2760_v61  ;;  %2700 = vmatprep.mubr.msk.f32.mxu0 (!%p2240_p13), %vm1058_vm1, %v1095_v63  ;;  %v1097_v5 = vld [vmem:[#allocation2 + $0x10] sm:$0xff] (!%p2240_p13)  ;;  %v2383_v7 = vunpack.c.l.bf16 (!%p2240_p13), %v2438_v4  ;;  %v1098_v8 = vld [vmem:[#allocation2 + $0x18] sm:$0xff] (!%p2240_p13)  ;;  %v2427_v62 = vunpack.c.l.bf16 (!%p2240_p13), %v2449_v59 }
 0x16b   : > { %v2505_v12 = vpop.f32.mrb[25].mxu0  ;;  %v2553_v14 = vpop.f32.mrb[25].mxu1  ;;  %2755 = vmatpush3.bf16.msra.mxu1 (!%p2240_p13), %v2752_v57  ;;  %v2423_v57 = vunpack.c.l.bf16 (!%p2240_p13), %v2448_v54  ;;  %v1119_v60 = vld [vmem:[#allocation2 + $0xc0] sm:$0xff] (!%p2240_p13)  ;;  %v1120_v63 = vld [vmem:[#allocation2 + $0xc8] sm:$0xff] (!%p2240_p13)  ;;  %v2450_v0 = vld [vmem:[%s3166_s18 + $0x70] sm:$0xff] (!%p2240_p13)  }
 0x16c   : > { %v2506_v15 = vadd.f32 %v2505_v12, %v2504_v9  ;;  %v2554_v16 = vadd.f32 %v2553_v14, %v2552_v10  ;;  %v2507_v17 = vpop.f32.mrb[26].mxu0  ;;  %v2555_v18 = vpop.f32.mrb[26].mxu1  ;;  %2763 = vmatpush3.bf16.msra.mxu0 (!%p2240_p13), %v2760_v61  ;;  %v2439_v9 = vld [vmem:[%s3166_s18 + $0x18] sm:$0xff] (!%p2240_p13)   ;;  %v1099_v10 = vld [vmem:[#allocation2 + $0x20] sm:$0xff] (!%p2240_p13)  ;;  %v2424_v61 = vunpack.c.h.bf16 (!%p2240_p13), %v2448_v54 }
 0x16d   : > { %v2508_v20 = vpop.f32.mrb[27].mxu0  ;;  %v2556_v22 = vpop.f32.mrb[27].mxu1  ;;  %v2387_v12 = vunpack.c.l.bf16 (!%p2240_p13), %v2439_v9  ;;  %v2440_v14 = vld [vmem:[%s3166_s18 + $0x20] sm:$0xff] (!%p2240_p13)  }
 0x16e   : > { %v1038_v23 = vadd.f32 %v2506_v15, %v525_v11  ;;  %v1054_v24 = vadd.f32 %v2554_v16, %v541_v13  ;;  %v2509_v25 = vadd.f32 %v2508_v20, %v2507_v17  ;;  %v2557_v26 = vadd.f32 %v2556_v22, %v2555_v18  ;;  %2645 = vmatmul.mubr.msk.f32.vlgmr.msra.gmra.mrb[0].mxu1 (!%p2240_p13), %vm1058_vm1, %v2376_v1  ;;  %v1100_v13 = vld [vmem:[#allocation2 + $0x28] sm:$0xff] (!%p2240_p13)  ;;  %v1101_v15 = vld [vmem:[#allocation2 + $0x30] sm:$0xff] (!%p2240_p13)  ;;  %v1102_v18 = vld [vmem:[#allocation2 + $0x38] sm:$0xff] (!%p2240_p13) }
 0x16f   : > { %2701 = vmatmul.mubr.msk.f32.vlgmr.msra.gmra.mrb[0].mxu0 (!%p2240_p13), %vm1058_vm1, %v1096_v3  ;;  %2647 = vmatprep.mubr.msk.f32.mxu1 (!%p2240_p13), %vm1058_vm1, %v2379_v2  ;;  %v2384_v11 = vunpack.c.h.bf16 (!%p2240_p13), %v2438_v4  ;;  %v2388_v16 = vunpack.c.h.bf16 (!%p2240_p13), %v2439_v9  ;;  %v2391_v17 = vunpack.c.l.bf16 (!%p2240_p13), %v2440_v14  ;;  %v1103_v20 = vld [vmem:[#allocation2 + $0x40] sm:$0xff] (!%p2240_p13)  ;;  %v1121_v1 = vld [vmem:[#allocation2 + $0xd0] sm:$0xff] (!%p2240_p13)  ;;  %v2428_v2 = vunpack.c.h.bf16 (!%p2240_p13), %v2449_v59 }
 0x170   : > { %1071 = vst.msk [vmem:[#allocation2 + $0x60] sm:$0xff] %vm1058_vm1, %v1038_v23  ;;  %1087 = vst.msk [vmem:[#allocation2 + $0xe0] sm:$0xff] %vm1058_vm1, %v1054_v24  ;;  %v1039_v27 = vadd.f32 %v2509_v25, %v526_v19  ;;  %v1055_v28 = vadd.f32 %v2557_v26, %v542_v21  ;;  %2703 = vmatprep.mubr.msk.f32.mxu0 (!%p2240_p13), %vm1058_vm1, %v1097_v5  ;;  %v2441_v19 = vld [vmem:[%s3166_s18 + $0x28] sm:$0xff] (!%p2240_p13)   ;;  %v2392_v21 = vunpack.c.h.bf16 (!%p2240_p13), %v2440_v14  ;;  %v2442_v24 = vld [vmem:[%s3166_s18 + $0x30] sm:$0xff] (!%p2240_p13)   ;;  %v2431_v3 = vunpack.c.l.bf16 (!%p2240_p13), %v2450_v0 }
 0x171   : > { %v2395_v22 = vunpack.c.l.bf16 (!%p2240_p13), %v2441_v19  ;;  %v1104_v23 = vld [vmem:[#allocation2 + $0x48] sm:$0xff] (!%p2240_p13)  ;;  %v1105_v25 = vld [vmem:[#allocation2 + $0x50] sm:$0xff] (!%p2240_p13)  ;;  %v2396_v26 = vunpack.c.h.bf16 (!%p2240_p13), %v2441_v19  ;;  %v1122_v4 = vld [vmem:[#allocation2 + $0xd8] sm:$0xff] (!%p2240_p13) }
 0x172   : > { %1072 = vst.msk [vmem:[#allocation2 + $0x68] sm:$0xff] %vm1058_vm1, %v1039_v27  ;;  %1088 = vst.msk [vmem:[#allocation2 + $0xe8] sm:$0xff] %vm1058_vm1, %v1055_v28  ;;  %v2510_v29 = vpop.f32.mrb[28].mxu0  ;;  %v2558_v30 = vpop.f32.mrb[28].mxu1  ;;  %2648 = vmatmul.mubr.msk.f32.gmra.mrb[2].mxu1 (!%p2240_p13), %vm1058_vm1, %v2380_v6  ;;  %v2399_v27 = vunpack.c.l.bf16 (!%p2240_p13), %v2442_v24  ;;  %v1106_v28 = vld [vmem:[#allocation2 + $0x58] sm:$0xff] (!%p2240_p13) }
 0x173   : > { %v2511_v32 = vpop.f32.mrb[29].mxu0  ;;  %v2559_v34 = vpop.f32.mrb[29].mxu1  ;;  %2704 = vmatmul.mubr.msk.f32.gmra.mrb[2].mxu0 (!%p2240_p13), %vm1058_vm1, %v1098_v8  ;;  %2650 = vmatprep.mubr.msk.f32.mxu1 (!%p2240_p13), %vm1058_vm1, %v2383_v7  ;;  %v2451_v5 = vld [vmem:[%s3166_s18 + $0x78] sm:$0xff] (!%p2240_p13)   ;;  %v2432_v7 = vunpack.c.h.bf16 (!%p2240_p13), %v2450_v0 }
 0x174   : > { %v2512_v35 = vadd.f32 %v2511_v32, %v2510_v29  ;;  %v2560_v36 = vadd.f32 %v2559_v34, %v2558_v30  ;;  %v2513_v37 = vpop.f32.mrb[30].mxu0  ;;  %v2561_v38 = vpop.f32.mrb[30].mxu1  ;;  %1094 = sbr.rel (%p2240_p13) target bundleno = 649 (0x289), region = 90  ;;  %2706 = vmatprep.mubr.msk.f32.mxu0 (!%p2240_p13), %vm1058_vm1, %v1099_v10  ;;  %v2443_v29 = vld [vmem:[%s3166_s18 + $0x38] sm:$0xff] (!%p2240_p13)   ;;  %v2444_v34 = vld [vmem:[%s3166_s18 + $0x40] sm:$0xff] (!%p2240_p13)   ;;  %v2435_v8 = vunpack.c.l.bf16 (!%p2240_p13), %v2451_v5 }
 0x175   : > { %v2514_v40 = vpop.f32.mrb[31].mxu0  ;;  %v2562_v42 = vpop.f32.mrb[31].mxu1  ;;  %v2403_v32 = vunpack.c.l.bf16 (!%p2240_p13), %v2443_v29 }
 0x176   : > { %v1040_v43 = vadd.f32 %v2512_v35, %v527_v31  ;;  %v1056_v44 = vadd.f32 %v2560_v36, %v543_v33  ;;  %v2515_v45 = vadd.f32 %v2514_v40, %v2513_v37  ;;  %v2563_v46 = vadd.f32 %v2562_v42, %v2561_v38  ;;  %2651 = vmatmul.mubr.msk.f32.gmra.mrb[4].mxu1 (!%p2240_p13), %vm1058_vm1, %v2384_v11  ;;  %v1111_v40 = vld [vmem:[#allocation2 + $0x80] sm:$0xff] (!%p2240_p13) }
 0x177   : > { %2707 = vmatmul.mubr.msk.f32.gmra.mrb[4].mxu0 (!%p2240_p13), %vm1058_vm1, %v1100_v13  ;;  %2653 = vmatprep.mubr.msk.f32.mxu1 (!%p2240_p13), %vm1058_vm1, %v2387_v12  ;;  %v1107_v30 = vld [vmem:[#allocation2 + $0x60] sm:$0xff] (!%p2240_p13)  ;;  %v2400_v31 = vunpack.c.h.bf16 (!%p2240_p13), %v2442_v24  ;;  %v2404_v36 = vunpack.c.h.bf16 (!%p2240_p13), %v2443_v29  ;;  %v2407_v37 = vunpack.c.l.bf16 (!%p2240_p13), %v2444_v34  ;;  %v2436_v11 = vunpack.c.h.bf16 (!%p2240_p13), %v2451_v5 }
 0x178   : > { %1073 = vst.msk [vmem:[#allocation2 + $0x70] sm:$0xff] %vm1058_vm1, %v1040_v43  ;;  %1089 = vst.msk [vmem:[#allocation2 + $0xf0] sm:$0xff] %vm1058_vm1, %v1056_v44  ;;  %v1041_v47 = vadd.f32 %v2515_v45, %v528_v39  ;;  %v1057_v48 = vadd.f32 %v2563_v46, %v544_v41  ;;  %2709 = vmatprep.mubr.msk.f32.mxu0 (!%p2240_p13), %vm1058_vm1, %v1101_v15  ;;  %v2445_v39 = vld [vmem:[%s3166_s18 + $0x48] sm:$0xff] (!%p2240_p13)   ;;  %v2408_v41 = vunpack.c.h.bf16 (!%p2240_p13), %v2444_v34  ;;  %v2446_v44 = vld [vmem:[%s3166_s18 + $0x50] sm:$0xff] (!%p2240_p13)  }
 0x179   : > { %v1108_v33 = vld [vmem:[#allocation2 + $0x68] sm:$0xff] (!%p2240_p13)  ;;  %v2411_v42 = vunpack.c.l.bf16 (!%p2240_p13), %v2445_v39  ;;  %v1113_v45 = vld [vmem:[#allocation2 + $0x90] sm:$0xff] (!%p2240_p13)  ;;  %v2412_v46 = vunpack.c.h.bf16 (!%p2240_p13), %v2445_v39  ;;  %v2416_v51 = vunpack.c.h.bf16 (!%p2240_p13), %v2446_v44  ;;  %v1123_v6 = vld [vmem:[#allocation2 + $0xe0] sm:$0xff] (!%p2240_p13) }
 0x17a   : > { %1074 = vst.msk [vmem:[#allocation2 + $0x78] sm:$0xff] %vm1058_vm1, %v1041_v47  ;;  %1090 = vst.msk [vmem:[#allocation2 + $0xf8] sm:$0xff] %vm1058_vm1, %v1057_v48  ;;  %2654 = vmatmul.mubr.msk.f32.gmra.mrb[6].mxu1 (!%p2240_p13), %vm1058_vm1, %v2388_v16  ;;  %v1112_v43 = vld [vmem:[#allocation2 + $0x88] sm:$0xff] (!%p2240_p13)  ;;  %v2415_v47 = vunpack.c.l.bf16 (!%p2240_p13), %v2446_v44  ;;  %v1114_v48 = vld [vmem:[#allocation2 + $0x98] sm:$0xff] (!%p2240_p13) }
 0x17b   : > { %2710 = vmatmul.mubr.msk.f32.gmra.mrb[6].mxu0 %vm1058_vm1, %v1102_v18  ;;  %2656 = vmatprep.mubr.msk.f32.mxu1 %vm1058_vm1, %v2391_v17  ;;  %v1124_v9 = vld [vmem:[#allocation2 + $0xe8] sm:$0xff]  ;;  %v3396_v15 = vld [vmem:[%s3520_s5] ss:$0 sm:$0xff] }
 0x17c   : > { %2712 = vmatprep.mubr.msk.f32.mxu0 %vm1058_vm1, %v1103_v20 }
 0x17e   : > { %2657 = vmatmul.mubr.msk.f32.gmra.mrb[8].mxu1 %vm1058_vm1, %v2392_v21 }
 0x17f   : > { %2713 = vmatmul.mubr.msk.f32.gmra.mrb[8].mxu0 %vm1058_vm1, %v1104_v23  ;;  %2659 = vmatprep.mubr.msk.f32.mxu1 %vm1058_vm1, %v2395_v22  ;;  %v1109_v35 = vld [vmem:[#allocation2 + $0x70] sm:$0xff] }
 0x180   : > { %2715 = vmatprep.mubr.msk.f32.mxu0 %vm1058_vm1, %v1105_v25  ;;  %v1125_v10 = vld [vmem:[#allocation2 + $0xf0] sm:$0xff] }
 0x181   : > { %v1110_v38 = vld [vmem:[#allocation2 + $0x78] sm:$0xff] }
 0x182   : > { %2660 = vmatmul.mubr.msk.f32.gmra.mrb[10].mxu1 %vm1058_vm1, %v2396_v26  ;;  %v1126_v12 = vld [vmem:[#allocation2 + $0xf8] sm:$0xff] }
 0x183   : > { %2716 = vmatmul.mubr.msk.f32.gmra.mrb[10].mxu0 %vm1058_vm1, %v1106_v28  ;;  %2662 = vmatprep.mubr.msk.f32.mxu1 %vm1058_vm1, %v2399_v27 }
 0x184   : > { %2718 = vmatprep.mubr.msk.f32.mxu0 %vm1058_vm1, %v1107_v30 }
 0x186   : > { %2663 = vmatmul.mubr.msk.f32.gmra.mrb[12].mxu1 %vm1058_vm1, %v2400_v31 }
 0x187   : > { %2719 = vmatmul.mubr.msk.f32.gmra.mrb[12].mxu0 %vm1058_vm1, %v1108_v33  ;;  %2665 = vmatprep.mubr.msk.f32.mxu1 %vm1058_vm1, %v2403_v32 }
 0x188   : > { %2721 = vmatprep.mubr.msk.f32.mxu0 %vm1058_vm1, %v1109_v35 }
 0x18a   : > { %2666 = vmatmul.mubr.msk.f32.gmra.mrb[14].mxu1 %vm1058_vm1, %v2404_v36 }
 0x18b   : > { %2722 = vmatmul.mubr.msk.f32.gmra.mrb[14].mxu0 %vm1058_vm1, %v1110_v38  ;;  %2668 = vmatprep.mubr.msk.f32.mxu1 %vm1058_vm1, %v2407_v37 }
 0x18c   : > { %2724 = vmatprep.mubr.msk.f32.mxu0 %vm1058_vm1, %v1111_v40 }
 0x18e   : > { %2669 = vmatmul.mubr.msk.f32.gmra.mrb[16].mxu1 %vm1058_vm1, %v2408_v41 }
 0x18f   : > { %2725 = vmatmul.mubr.msk.f32.gmra.mrb[16].mxu0 %vm1058_vm1, %v1112_v43  ;;  %2671 = vmatprep.mubr.msk.f32.mxu1 %vm1058_vm1, %v2411_v42 }
 0x190   : > { %2727 = vmatprep.mubr.msk.f32.mxu0 %vm1058_vm1, %v1113_v45 }
 0x192   : > { %2672 = vmatmul.mubr.msk.f32.gmra.mrb[18].mxu1 %vm1058_vm1, %v2412_v46 }
 0x193   : > { %2728 = vmatmul.mubr.msk.f32.gmra.mrb[18].mxu0 %vm1058_vm1, %v1114_v48  ;;  %2674 = vmatprep.mubr.msk.f32.mxu1 %vm1058_vm1, %v2415_v47 }
 0x194   : > { %2730 = vmatprep.mubr.msk.f32.mxu0 %vm1058_vm1, %v1115_v50 }
 0x196   : > { %2675 = vmatmul.mubr.msk.f32.gmra.mrb[20].mxu1 %vm1058_vm1, %v2416_v51 }
 0x197   : > { %2731 = vmatmul.mubr.msk.f32.gmra.mrb[20].mxu0 %vm1058_vm1, %v1116_v53  ;;  %2677 = vmatprep.mubr.msk.f32.mxu1 %vm1058_vm1, %v2419_v52 }
 0x198   : > { %2733 = vmatprep.mubr.msk.f32.mxu0 %vm1058_vm1, %v1117_v55 }
 0x19a   : > { %2678 = vmatmul.mubr.msk.f32.gmra.mrb[22].mxu1 %vm1058_vm1, %v2420_v56 }
 0x19b   : > { %2734 = vmatmul.mubr.msk.f32.gmra.mrb[22].mxu0 %vm1058_vm1, %v1118_v58  ;;  %2680 = vmatprep.mubr.msk.f32.mxu1 %vm1058_vm1, %v2423_v57 }
 0x19c   : > { %2736 = vmatprep.mubr.msk.f32.mxu0 %vm1058_vm1, %v1119_v60 }
 0x19e   : > { %2681 = vmatmul.mubr.msk.f32.gmra.mrb[24].mxu1 %vm1058_vm1, %v2424_v61 }
 0x19f   : > { %2737 = vmatmul.mubr.msk.f32.gmra.mrb[24].mxu0 %vm1058_vm1, %v1120_v63  ;;  %2683 = vmatprep.mubr.msk.f32.mxu1 %vm1058_vm1, %v2427_v62 }
 0x1a0   : > { %2739 = vmatprep.mubr.msk.f32.mxu0 %vm1058_vm1, %v1121_v1 }
 0x1a2   : > { %2684 = vmatmul.mubr.msk.f32.gmra.mrb[26].mxu1 %vm1058_vm1, %v2428_v2 }
 0x1a3   : > { %2740 = vmatmul.mubr.msk.f32.gmra.mrb[26].mxu0 %vm1058_vm1, %v1122_v4  ;;  %2686 = vmatprep.mubr.msk.f32.mxu1 %vm1058_vm1, %v2431_v3 }
 0x1a4   : > { %2742 = vmatprep.mubr.msk.f32.mxu0 %vm1058_vm1, %v1123_v6 }
 0x1a6   : > { %2687 = vmatmul.mubr.msk.f32.gmra.mrb[28].mxu1 %vm1058_vm1, %v2432_v7 }
 0x1a7   : > { %2743 = vmatmul.mubr.msk.f32.gmra.mrb[28].mxu0 %vm1058_vm1, %v1124_v9  ;;  %2689 = vmatprep.mubr.msk.f32.mxu1 %vm1058_vm1, %v2435_v8 }
 0x1a8   : > { %2745 = vmatprep.mubr.msk.f32.mxu0 %vm1058_vm1, %v1125_v10 }
 0x1aa   : > { %2690 = vmatmul.mubr.msk.f32.gmra.mrb[30].mxu1 %vm1058_vm1, %v2436_v11 }
 0x1ab   : > { %2746 = vmatmul.mubr.msk.f32.gmra.mrb[30].mxu0 %vm1058_vm1, %v1126_v12 }
 0x241   : > { %v2646_v13 = vpop.f32.mrb[0].mxu1 }
 0x242   : > { %v2702_v14 = vpop.f32.mrb[0].mxu0  ;;  %v1361_v16 = vpop.f32.mrb[1].mxu1 }
 0x243   : > { %v1688_v17 = vadd.f32 %v2702_v14, %v2646_v13  ;;  %v1682_v18 = vpop.f32.mrb[1].mxu0 }
 0x244   : > { %v1683_v19 = vadd.f32 %v1682_v18, %v1361_v16 }
 0x245   : > { %v1849_v20 = vadd.f32 %v3396_v15, %v1688_v17  ;;  %v2649_v21 = vpop.f32.mrb[2].mxu1 }
 0x246   : > { %v1848_v22 = vadd.f32 %v3396_v15, %v1683_v19  ;;  %v2705_v23 = vpop.f32.mrb[2].mxu0  ;;  %v1371_v24 = vpop.f32.mrb[3].mxu1 }
 0x247   : > { %v1881_v25 = vmax.f32 %v1849_v20, 0.0  ;;  %v1698_v26 = vadd.f32 %v2705_v23, %v2649_v21  ;;  %v1692_v27 = vpop.f32.mrb[3].mxu0 }
 0x248   : > { %v1880_v28 = vmax.f32 %v1848_v22, 0.0  ;;  %v1693_v29 = vadd.f32 %v1692_v27, %v1371_v24 }
 0x249   : > { %v2342_v30 = vpack.c.bf16 %v1881_v25, %v1881_v25  ;;  %v1851_v31 = vadd.f32 %v3396_v15, %v1698_v26  ;;  %v2652_v32 = vpop.f32.mrb[4].mxu1 }
 0x24a   : > { %v2341_v33 = vpack.c.bf16 %v1880_v28, %v1880_v28  ;;  %v1850_v34 = vadd.f32 %v3396_v15, %v1693_v29  ;;  %v2708_v35 = vpop.f32.mrb[4].mxu0  ;;  %v1381_v36 = vpop.f32.mrb[5].mxu1 }
 0x24b   : > { %2042 = vst.msk [vmem:[%s3171_s20 + $0x4] sm:$0xf] %vm2040_vm2, %v2342_v30  ;;  %v1883_v37 = vmax.f32 %v1851_v31, 0.0  ;;  %v1708_v38 = vadd.f32 %v2708_v35, %v2652_v32  ;;  %v1702_v39 = vpop.f32.mrb[5].mxu0 }
 0x24c   : > { %2041 = vst.msk [vmem:[%s3171_s20] sm:$0xf] %vm2040_vm2, %v2341_v33  ;;  %v1882_v40 = vmax.f32 %v1850_v34, 0.0  ;;  %v1703_v41 = vadd.f32 %v1702_v39, %v1381_v36 }
 0x24d   : > { %v2344_v42 = vpack.c.bf16 %v1883_v37, %v1883_v37  ;;  %v1853_v43 = vadd.f32 %v3396_v15, %v1708_v38  ;;  %v2655_v44 = vpop.f32.mrb[6].mxu1 }
 0x24e   : > { %v2343_v45 = vpack.c.bf16 %v1882_v40, %v1882_v40  ;;  %v1852_v46 = vadd.f32 %v3396_v15, %v1703_v41  ;;  %v2711_v47 = vpop.f32.mrb[6].mxu0  ;;  %v1391_v48 = vpop.f32.mrb[7].mxu1 }
 0x24f   : > { %2044 = vst.msk [vmem:[%s3171_s20 + $0xc] sm:$0xf] %vm2040_vm2, %v2344_v42  ;;  %v1885_v49 = vmax.f32 %v1853_v43, 0.0  ;;  %v1718_v50 = vadd.f32 %v2711_v47, %v2655_v44  ;;  %v1712_v51 = vpop.f32.mrb[7].mxu0 }
 0x250   : > { %2043 = vst.msk [vmem:[%s3171_s20 + $0x8] sm:$0xf] %vm2040_vm2, %v2343_v45  ;;  %v1884_v52 = vmax.f32 %v1852_v46, 0.0  ;;  %v1713_v53 = vadd.f32 %v1712_v51, %v1391_v48 }
 0x251   : > { %v2346_v54 = vpack.c.bf16 %v1885_v49, %v1885_v49  ;;  %v1855_v55 = vadd.f32 %v3396_v15, %v1718_v50  ;;  %v2658_v56 = vpop.f32.mrb[8].mxu1 }
 0x252   : > { %v2345_v57 = vpack.c.bf16 %v1884_v52, %v1884_v52  ;;  %v1854_v58 = vadd.f32 %v3396_v15, %v1713_v53  ;;  %v2714_v59 = vpop.f32.mrb[8].mxu0  ;;  %v1401_v60 = vpop.f32.mrb[9].mxu1 }
 0x253   : > { %2046 = vst.msk [vmem:[%s3171_s20 + $0x14] sm:$0xf] %vm2040_vm2, %v2346_v54  ;;  %v1887_v61 = vmax.f32 %v1855_v55, 0.0  ;;  %v1728_v62 = vadd.f32 %v2714_v59, %v2658_v56  ;;  %v1722_v63 = vpop.f32.mrb[9].mxu0 }
 0x254   : > { %2045 = vst.msk [vmem:[%s3171_s20 + $0x10] sm:$0xf] %vm2040_vm2, %v2345_v57  ;;  %v1886_v0 = vmax.f32 %v1854_v58, 0.0  ;;  %v1723_v1 = vadd.f32 %v1722_v63, %v1401_v60 }
 0x255   : > { %v2348_v2 = vpack.c.bf16 %v1887_v61, %v1887_v61  ;;  %v1857_v3 = vadd.f32 %v3396_v15, %v1728_v62  ;;  %v2661_v4 = vpop.f32.mrb[10].mxu1 }
 0x256   : > { %v2347_v5 = vpack.c.bf16 %v1886_v0, %v1886_v0  ;;  %v1856_v6 = vadd.f32 %v3396_v15, %v1723_v1  ;;  %v2717_v7 = vpop.f32.mrb[10].mxu0  ;;  %v1411_v8 = vpop.f32.mrb[11].mxu1 }
 0x257   : > { %2048 = vst.msk [vmem:[%s3171_s20 + $0x1c] sm:$0xf] %vm2040_vm2, %v2348_v2  ;;  %v1889_v9 = vmax.f32 %v1857_v3, 0.0  ;;  %v1738_v10 = vadd.f32 %v2717_v7, %v2661_v4  ;;  %v1732_v11 = vpop.f32.mrb[11].mxu0 }
 0x258   : > { %2047 = vst.msk [vmem:[%s3171_s20 + $0x18] sm:$0xf] %vm2040_vm2, %v2347_v5  ;;  %v1888_v12 = vmax.f32 %v1856_v6, 0.0  ;;  %v1733_v13 = vadd.f32 %v1732_v11, %v1411_v8 }
 0x259   : > { %v2350_v14 = vpack.c.bf16 %v1889_v9, %v1889_v9  ;;  %v1859_v16 = vadd.f32 %v3396_v15, %v1738_v10  ;;  %v2664_v17 = vpop.f32.mrb[12].mxu1 }
 0x25a   : > { %v2349_v18 = vpack.c.bf16 %v1888_v12, %v1888_v12  ;;  %v1858_v19 = vadd.f32 %v3396_v15, %v1733_v13  ;;  %v2720_v20 = vpop.f32.mrb[12].mxu0  ;;  %v1421_v21 = vpop.f32.mrb[13].mxu1 }
 0x25b   : > { %2050 = vst.msk [vmem:[%s3171_s20 + $0x24] sm:$0xf] %vm2040_vm2, %v2350_v14  ;;  %v1891_v22 = vmax.f32 %v1859_v16, 0.0  ;;  %v1748_v23 = vadd.f32 %v2720_v20, %v2664_v17  ;;  %v1742_v24 = vpop.f32.mrb[13].mxu0 }
 0x25c   : > { %2049 = vst.msk [vmem:[%s3171_s20 + $0x20] sm:$0xf] %vm2040_vm2, %v2349_v18  ;;  %v1890_v25 = vmax.f32 %v1858_v19, 0.0  ;;  %v1743_v26 = vadd.f32 %v1742_v24, %v1421_v21 }
 0x25d   : > { %v2352_v27 = vpack.c.bf16 %v1891_v22, %v1891_v22  ;;  %v1861_v28 = vadd.f32 %v3396_v15, %v1748_v23  ;;  %v2667_v29 = vpop.f32.mrb[14].mxu1 }
 0x25e   : > { %v2351_v30 = vpack.c.bf16 %v1890_v25, %v1890_v25  ;;  %v1860_v31 = vadd.f32 %v3396_v15, %v1743_v26  ;;  %v2723_v32 = vpop.f32.mrb[14].mxu0  ;;  %v1431_v33 = vpop.f32.mrb[15].mxu1 }
 0x25f   : > { %2052 = vst.msk [vmem:[%s3171_s20 + $0x2c] sm:$0xf] %vm2040_vm2, %v2352_v27  ;;  %v1893_v34 = vmax.f32 %v1861_v28, 0.0  ;;  %v1758_v35 = vadd.f32 %v2723_v32, %v2667_v29  ;;  %v1752_v36 = vpop.f32.mrb[15].mxu0 }
 0x260   : > { %2051 = vst.msk [vmem:[%s3171_s20 + $0x28] sm:$0xf] %vm2040_vm2, %v2351_v30  ;;  %v1892_v37 = vmax.f32 %v1860_v31, 0.0  ;;  %v1753_v38 = vadd.f32 %v1752_v36, %v1431_v33 }
 0x261   : > { %v2354_v39 = vpack.c.bf16 %v1893_v34, %v1893_v34  ;;  %v1863_v40 = vadd.f32 %v3396_v15, %v1758_v35  ;;  %v2670_v41 = vpop.f32.mrb[16].mxu1 }
 0x262   : > { %v2353_v42 = vpack.c.bf16 %v1892_v37, %v1892_v37  ;;  %v1862_v43 = vadd.f32 %v3396_v15, %v1753_v38  ;;  %v2726_v44 = vpop.f32.mrb[16].mxu0  ;;  %v1441_v45 = vpop.f32.mrb[17].mxu1 }
 0x263   : > { %2054 = vst.msk [vmem:[%s3171_s20 + $0x34] sm:$0xf] %vm2040_vm2, %v2354_v39  ;;  %v1895_v46 = vmax.f32 %v1863_v40, 0.0  ;;  %v1768_v47 = vadd.f32 %v2726_v44, %v2670_v41  ;;  %v1762_v48 = vpop.f32.mrb[17].mxu0 }
 0x264   : > { %2053 = vst.msk [vmem:[%s3171_s20 + $0x30] sm:$0xf] %vm2040_vm2, %v2353_v42  ;;  %v1894_v49 = vmax.f32 %v1862_v43, 0.0  ;;  %v1763_v50 = vadd.f32 %v1762_v48, %v1441_v45 }
 0x265   : > { %v2356_v51 = vpack.c.bf16 %v1895_v46, %v1895_v46  ;;  %v1865_v52 = vadd.f32 %v3396_v15, %v1768_v47  ;;  %v2673_v53 = vpop.f32.mrb[18].mxu1 }
 0x266   : > { %v2355_v54 = vpack.c.bf16 %v1894_v49, %v1894_v49  ;;  %v1864_v55 = vadd.f32 %v3396_v15, %v1763_v50  ;;  %v2729_v56 = vpop.f32.mrb[18].mxu0  ;;  %v1451_v57 = vpop.f32.mrb[19].mxu1 }
 0x267   : > { %2056 = vst.msk [vmem:[%s3171_s20 + $0x3c] sm:$0xf] %vm2040_vm2, %v2356_v51  ;;  %v1897_v58 = vmax.f32 %v1865_v52, 0.0  ;;  %v1778_v59 = vadd.f32 %v2729_v56, %v2673_v53  ;;  %v1772_v60 = vpop.f32.mrb[19].mxu0 }
 0x268   : > { %2055 = vst.msk [vmem:[%s3171_s20 + $0x38] sm:$0xf] %vm2040_vm2, %v2355_v54  ;;  %v1896_v61 = vmax.f32 %v1864_v55, 0.0  ;;  %v1773_v62 = vadd.f32 %v1772_v60, %v1451_v57 }
 0x269   : > { %v2358_v63 = vpack.c.bf16 %v1897_v58, %v1897_v58  ;;  %v1867_v0 = vadd.f32 %v3396_v15, %v1778_v59  ;;  %v2676_v1 = vpop.f32.mrb[20].mxu1 }
 0x26a   : > { %v2357_v2 = vpack.c.bf16 %v1896_v61, %v1896_v61  ;;  %v1866_v3 = vadd.f32 %v3396_v15, %v1773_v62  ;;  %v2732_v4 = vpop.f32.mrb[20].mxu0  ;;  %v1461_v5 = vpop.f32.mrb[21].mxu1 }
 0x26b   : > { %2058 = vst.msk [vmem:[%s3171_s20 + $0x44] sm:$0xf] %vm2040_vm2, %v2358_v63  ;;  %v1899_v6 = vmax.f32 %v1867_v0, 0.0  ;;  %v1788_v7 = vadd.f32 %v2732_v4, %v2676_v1  ;;  %v1782_v8 = vpop.f32.mrb[21].mxu0 }
 0x26c   : > { %2057 = vst.msk [vmem:[%s3171_s20 + $0x40] sm:$0xf] %vm2040_vm2, %v2357_v2  ;;  %v1898_v9 = vmax.f32 %v1866_v3, 0.0  ;;  %v1783_v10 = vadd.f32 %v1782_v8, %v1461_v5 }
 0x26d   : > { %v2360_v11 = vpack.c.bf16 %v1899_v6, %v1899_v6  ;;  %v1869_v12 = vadd.f32 %v3396_v15, %v1788_v7  ;;  %v2679_v13 = vpop.f32.mrb[22].mxu1 }
 0x26e   : > { %v2359_v14 = vpack.c.bf16 %v1898_v9, %v1898_v9  ;;  %v1868_v16 = vadd.f32 %v3396_v15, %v1783_v10  ;;  %v2735_v17 = vpop.f32.mrb[22].mxu0  ;;  %v1471_v18 = vpop.f32.mrb[23].mxu1 }
 0x26f   : > { %2060 = vst.msk [vmem:[%s3171_s20 + $0x4c] sm:$0xf] %vm2040_vm2, %v2360_v11  ;;  %v1901_v19 = vmax.f32 %v1869_v12, 0.0  ;;  %v1798_v20 = vadd.f32 %v2735_v17, %v2679_v13  ;;  %v1792_v21 = vpop.f32.mrb[23].mxu0 }
 0x270   : > { %2059 = vst.msk [vmem:[%s3171_s20 + $0x48] sm:$0xf] %vm2040_vm2, %v2359_v14  ;;  %v1900_v22 = vmax.f32 %v1868_v16, 0.0  ;;  %v1793_v23 = vadd.f32 %v1792_v21, %v1471_v18 }
 0x271   : > { %v2362_v24 = vpack.c.bf16 %v1901_v19, %v1901_v19  ;;  %v1871_v25 = vadd.f32 %v3396_v15, %v1798_v20  ;;  %v2682_v26 = vpop.f32.mrb[24].mxu1 }
 0x272   : > { %v2361_v27 = vpack.c.bf16 %v1900_v22, %v1900_v22  ;;  %v1870_v28 = vadd.f32 %v3396_v15, %v1793_v23  ;;  %v2738_v29 = vpop.f32.mrb[24].mxu0  ;;  %v1481_v30 = vpop.f32.mrb[25].mxu1 }
 0x273   : > { %2062 = vst.msk [vmem:[%s3171_s20 + $0x54] sm:$0xf] %vm2040_vm2, %v2362_v24  ;;  %v1903_v31 = vmax.f32 %v1871_v25, 0.0  ;;  %v1808_v32 = vadd.f32 %v2738_v29, %v2682_v26  ;;  %v1802_v33 = vpop.f32.mrb[25].mxu0 }
 0x274   : > { %2061 = vst.msk [vmem:[%s3171_s20 + $0x50] sm:$0xf] %vm2040_vm2, %v2361_v27  ;;  %v1902_v34 = vmax.f32 %v1870_v28, 0.0  ;;  %v1803_v35 = vadd.f32 %v1802_v33, %v1481_v30 }
 0x275   : > { %v2364_v36 = vpack.c.bf16 %v1903_v31, %v1903_v31  ;;  %v1873_v37 = vadd.f32 %v3396_v15, %v1808_v32  ;;  %v2685_v38 = vpop.f32.mrb[26].mxu1 }
 0x276   : > { %v2363_v39 = vpack.c.bf16 %v1902_v34, %v1902_v34  ;;  %v1872_v40 = vadd.f32 %v3396_v15, %v1803_v35  ;;  %v2741_v41 = vpop.f32.mrb[26].mxu0  ;;  %v1491_v42 = vpop.f32.mrb[27].mxu1 }
 0x277   : > { %2064 = vst.msk [vmem:[%s3171_s20 + $0x5c] sm:$0xf] %vm2040_vm2, %v2364_v36  ;;  %v1905_v43 = vmax.f32 %v1873_v37, 0.0  ;;  %v1818_v44 = vadd.f32 %v2741_v41, %v2685_v38  ;;  %v1812_v45 = vpop.f32.mrb[27].mxu0 }
 0x278   : > { %2063 = vst.msk [vmem:[%s3171_s20 + $0x58] sm:$0xf] %vm2040_vm2, %v2363_v39  ;;  %v1904_v46 = vmax.f32 %v1872_v40, 0.0  ;;  %v1813_v47 = vadd.f32 %v1812_v45, %v1491_v42 }
 0x279   : > { %v2366_v48 = vpack.c.bf16 %v1905_v43, %v1905_v43  ;;  %v1875_v49 = vadd.f32 %v3396_v15, %v1818_v44  ;;  %v2688_v50 = vpop.f32.mrb[28].mxu1 }
 0x27a   : > { %v2365_v51 = vpack.c.bf16 %v1904_v46, %v1904_v46  ;;  %v1874_v52 = vadd.f32 %v3396_v15, %v1813_v47  ;;  %v2744_v53 = vpop.f32.mrb[28].mxu0  ;;  %v1501_v54 = vpop.f32.mrb[29].mxu1 }
 0x27b   : > { %2066 = vst.msk [vmem:[%s3171_s20 + $0x64] sm:$0xf] %vm2040_vm2, %v2366_v48  ;;  %v1907_v55 = vmax.f32 %v1875_v49, 0.0  ;;  %v1828_v56 = vadd.f32 %v2744_v53, %v2688_v50  ;;  %v1822_v57 = vpop.f32.mrb[29].mxu0 }
 0x27c   : > { %2065 = vst.msk [vmem:[%s3171_s20 + $0x60] sm:$0xf] %vm2040_vm2, %v2365_v51  ;;  %v1906_v58 = vmax.f32 %v1874_v52, 0.0  ;;  %v1823_v59 = vadd.f32 %v1822_v57, %v1501_v54 }
 0x27d   : > { %v2368_v60 = vpack.c.bf16 %v1907_v55, %v1907_v55  ;;  %v1877_v61 = vadd.f32 %v3396_v15, %v1828_v56  ;;  %v2691_v62 = vpop.f32.mrb[30].mxu1 }
 0x27e   : > { %v2367_v63 = vpack.c.bf16 %v1906_v58, %v1906_v58  ;;  %v1876_v0 = vadd.f32 %v3396_v15, %v1823_v59  ;;  %v2747_v1 = vpop.f32.mrb[30].mxu0  ;;  %v1511_v2 = vpop.f32.mrb[31].mxu1 }
 0x27f   : > { %2068 = vst.msk [vmem:[%s3171_s20 + $0x6c] sm:$0xf] %vm2040_vm2, %v2368_v60  ;;  %v1909_v3 = vmax.f32 %v1877_v61, 0.0  ;;  %v1838_v4 = vadd.f32 %v2747_v1, %v2691_v62  ;;  %v1832_v5 = vpop.f32.mrb[31].mxu0 }
 0x280   : > { %2067 = vst.msk [vmem:[%s3171_s20 + $0x68] sm:$0xf] %vm2040_vm2, %v2367_v63  ;;  %v1908_v6 = vmax.f32 %v1876_v0, 0.0  ;;  %v1833_v7 = vadd.f32 %v1832_v5, %v1511_v2 }
 0x281   : > { %v2370_v8 = vpack.c.bf16 %v1909_v3, %v1909_v3  ;;  %v1879_v9 = vadd.f32 %v3396_v15, %v1838_v4 }
 0x282   : > { %v2369_v10 = vpack.c.bf16 %v1908_v6, %v1908_v6  ;;  %v1878_v11 = vadd.f32 %v3396_v15, %v1833_v7 }
 0x283   : > { %2070 = vst.msk [vmem:[%s3171_s20 + $0x74] sm:$0xf] %vm2040_vm2, %v2370_v8  ;;  %v1911_v12 = vmax.f32 %v1879_v9, 0.0 }
 0x284   : > { %2069 = vst.msk [vmem:[%s3171_s20 + $0x70] sm:$0xf] %vm2040_vm2, %v2369_v10  ;;  %v1910_v13 = vmax.f32 %v1878_v11, 0.0 }
 0x285   : > { %v2372_v14 = vpack.c.bf16 %v1911_v12, %v1911_v12 }
 0x286   : > { %v2371_v16 = vpack.c.bf16 %v1910_v13, %v1910_v13 }
 0x287   : > { %2072 = vst.msk [vmem:[%s3171_s20 + $0x7c] sm:$0xf] %vm2040_vm2, %v2372_v14 }
 0x288   : > { %2071 = vst.msk [vmem:[%s3171_s20 + $0x78] sm:$0xf] %vm2040_vm2, %v2371_v16 }
 0x289 PF: > { %s16_s27 = sadd.s32 1, %s2987_s27   ;;  %s3522_s21 = smov %s2967_s22 }
 0x28a   : > { %p13_p0 = scmp.ge.s32.totalorder %s16_s27, 6   ;;  %s3523_s22 = smov %s3076_s10 }
 0x28b   : > { %s3524_s23 = smov %s2979_s25  ;;  %s3525_s24 = smov %s2983_s26 }
 0x28c   : > { %s3526_s25 = smov %s3529_s28  ;;  %s3527_s26 = smov %s3533_s29 }
 0x28d   :  { %15 = sbr.rel (!%p13_p0) target bundleno = 4 (0x4), region = 131 }

</bundles_post_ra>
